<compile_context>
chip_gen: v7x
topology: tpu7x:2x2x1
jax: 0.10.0
libtpu: 0.0.40
codegen_flags: <defaults>
</compile_context>

<pallas_src>
import functools

import numpy as np
import jax
import jax.numpy as jnp
from jax import lax
from jax.experimental import pallas as pl
from jax.experimental.pallas import tpu as pltpu


# ---------------------------------------------------------------------------
# align_corners=True bilinear interpolation matrix (exact F.interpolate math)
# ---------------------------------------------------------------------------
def _interp_matrix(n_out, n_in):
    m = np.zeros((n_out, n_in), np.float32)
    if n_out == 1 or n_in == 1:
        m[:, 0] = 1.0
        return m
    src = np.arange(n_out, dtype=np.float64) * (n_in - 1) / (n_out - 1)
    i0 = np.clip(np.floor(src).astype(np.int64), 0, n_in - 1)
    i1 = np.clip(i0 + 1, 0, n_in - 1)
    frac = (src - i0).astype(np.float32)
    for o in range(n_out):
        m[o, i0[o]] += 1.0 - frac[o]
        m[o, i1[o]] += frac[o]
    return m


def bilinear_resize(x_nhwc, h_out, w_out):
    """Pure-JAX reference resize (used only by the reference path)."""
    _, h_in, w_in, _ = x_nhwc.shape
    mh = jnp.asarray(_interp_matrix(h_out, h_in))
    mw = jnp.asarray(_interp_matrix(w_out, w_in))
    return jnp.einsum("oh,bhwc,pw->bopc", mh, x_nhwc, mw)


# ---------------------------------------------------------------------------
# Pallas kernel: fused (optional skip-resize-add [+ReLU]) + conv3x3 + BN + ReLU
# ---------------------------------------------------------------------------
def _make_conv_kernel(*, skip_mode, prologue_relu):
    """skip_mode: None | "pre" (add before conv) | "post" (add after conv)."""

    def kernel(*refs):
        idx = 0
        x_ref = refs[idx]; idx += 1
        if skip_mode is not None:
            z_ref, mh_ref, mwk_ref = refs[idx], refs[idx + 1], refs[idx + 2]
            idx += 3

            def resized_skip():
                zr = jnp.dot(mh_ref[...], z_ref[0],
                             preferred_element_type=jnp.float32)
                return jnp.dot(zr, mwk_ref[...],
                               preferred_element_type=jnp.float32)

        a_ref = refs[idx]       # [3, Ho, H]   row-tap selection (strided/padded)
        t_ref = refs[idx + 1]   # [3, W*C, Wo*C]  block-Toeplitz (weights folded)
        b_ref = refs[idx + 2]   # [1, Wo*C]    folded BN bias, lane tiled
        o_ref = refs[idx + 3]   # [1, Ho, Wo*C]

        x = x_ref[0]                                         # [H, W*C]
        if skip_mode == "pre":
            x = x + resized_skip()
            if prologue_relu:
                x = jnp.maximum(x, 0.0)

        rows = jnp.dot(a_ref[0], x, preferred_element_type=jnp.float32)
        acc = jnp.dot(rows, t_ref[0], preferred_element_type=jnp.float32)
        for k in (1, 2):
            rows = jnp.dot(a_ref[k], x, preferred_element_type=jnp.float32)
            acc = acc + jnp.dot(rows, t_ref[k],
                                preferred_element_type=jnp.float32)

        y = jnp.maximum(acc + b_ref[...], 0.0)               # bias + ReLU
        if skip_mode == "post":
            y = y + resized_skip()
        o_ref[0] = y.astype(o_ref.dtype)

    return kernel


def conv_block(x, w, bias, *, stride=1, padding=1, dilation=1,
               skip_src=None, skip_mode=None, prologue_relu=False):
    """Fused conv3x3_bn stage (Pallas).  x, skip_src: NHWC f32.

    w:    [3, 3, Cin, Cout] with BN scale already folded into Cout.
    bias: [Cout]  (= beta - mean * scale).
    """
    B, H, W, C = x.shape
    Ho = (H + 2 * padding - 2 * dilation - 1) // stride + 1
    Wo = (W + 2 * padding - 2 * dilation - 1) // stride + 1
    WC, WoC = W * C, Wo * C

    # Row-selection A and column-indicator Ind (pure constants, built in numpy).
    A = np.zeros((3, Ho, H), np.float32)
    Ind = np.zeros((3, W, Wo), np.float32)
    for k in range(3):
        for i in range(Ho):
            u = stride * i + k * dilation - padding
            if 0 <= u < H:
                A[k, i, u] = 1.0
        for j in range(Wo):
            v = stride * j + k * dilation - padding
            if 0 <= v < W:
                Ind[k, v, j] = 1.0
    A = jnp.asarray(A)
    # T[kh][v*C+ci, j*C+co] = sum_kw Ind[kw,v,j] * w[kh,kw,ci,co]
    T = jnp.einsum("kvj,hkio->hvijo", jnp.asarray(Ind), w).reshape(3, WC, WoC)
    bias_lane = jnp.tile(bias.reshape(1, C), (1, Wo))        # [1, Wo*C]

    has_skip = skip_src is not None
    inputs = [x.reshape(B, H, WC)]
    in_specs = [pl.BlockSpec((1, H, WC), lambda b: (b, 0, 0))]
    if has_skip:
        _, Hz, Wz, _ = skip_src.shape
        Ht, Wt = (H, W) if skip_mode == "pre" else (Ho, Wo)
        mh = jnp.asarray(_interp_matrix(Ht, Hz))             # [Ht, Hz]
        mwk = jnp.einsum("tz,ij->zitj",
                         jnp.asarray(_interp_matrix(Wt, Wz)),
                         jnp.eye(C, dtype=jnp.float32)).reshape(Wz * C, Wt * C)
        inputs += [skip_src.reshape(B, Hz, Wz * C), mh, mwk]
        in_specs += [
            pl.BlockSpec((1, Hz, Wz * C), lambda b: (b, 0, 0)),
            pl.BlockSpec((Ht, Hz), lambda b: (0, 0)),
            pl.BlockSpec((Wz * C, Wt * C), lambda b: (0, 0)),
        ]
    inputs += [A, T, bias_lane]
    in_specs += [
        pl.BlockSpec((3, Ho, H), lambda b: (0, 0, 0)),
        pl.BlockSpec((3, WC, WoC), lambda b: (0, 0, 0)),
        pl.BlockSpec((1, WoC), lambda b: (0, 0)),
    ]

    kernel = _make_conv_kernel(skip_mode=skip_mode if has_skip else None,
                               prologue_relu=prologue_relu)

    out = pl.pallas_call(
        kernel,
        out_shape=jax.ShapeDtypeStruct((B, Ho, WoC), jnp.float32),
        grid=(B,),
        in_specs=in_specs,
        out_specs=pl.BlockSpec((1, Ho, WoC), lambda b: (b, 0, 0)),
        compiler_params=pltpu.CompilerParams(
            dimension_semantics=("parallel",)),
    )(*inputs)
    return out.reshape(B, Ho, Wo, C)


# ---------------------------------------------------------------------------
# Pure-JAX reference for the same fused stage (correctness check only)
# ---------------------------------------------------------------------------
def conv_block_ref(x, w, bias, *, stride=1, padding=1, dilation=1,
                   skip_src=None, skip_mode=None, prologue_relu=False):
    B, H, W, C = x.shape
    xin = x
    if skip_mode == "pre":
        xin = xin + bilinear_resize(skip_src, H, W)
        if prologue_relu:
            xin = jnp.maximum(xin, 0.0)
    y = lax.conv_general_dilated(
        xin, w, window_strides=(stride, stride),
        padding=[(padding, padding), (padding, padding)],
        rhs_dilation=(dilation, dilation),
        dimension_numbers=("NHWC", "HWIO", "NHWC"))
    y = jnp.maximum(y + bias, 0.0)
    if skip_mode == "post":
        y = y + bilinear_resize(skip_src, y.shape[1], y.shape[2])
    return y


# ---------------------------------------------------------------------------
# Parameters (deterministic; BN folded in eval mode, scale folded into weights)
# ---------------------------------------------------------------------------
def _make_conv_params(key, C):
    k1, k2, k3, k4, k5 = jax.random.split(key, 5)
    w = 0.1 * jax.random.normal(k1, (C, C, 3, 3), jnp.float32)  # torch [Cout,Cin,kh,kw]
    gamma = 1.0 + 0.1 * jax.random.normal(k2, (C,), jnp.float32)
    beta = 0.1 * jax.random.normal(k3, (C,), jnp.float32)
    mean = 0.1 * jax.random.normal(k4, (C,), jnp.float32)
    var = jnp.abs(jax.random.normal(k5, (C,), jnp.float32)) + 0.5
    eps = 1e-5
    scale = gamma / jnp.sqrt(var + eps)
    bias = beta - mean * scale
    w_hwio = jnp.transpose(w, (2, 3, 1, 0)) * scale             # scale folded (Cout)
    return w_hwio, bias


def init_params(key, C):
    names = ["conv1", "conv2", "conv3", "conv4", "conv5",
             "conv_rev1", "conv_rev2", "conv_rev3", "conv_rev4", "conv_sum"]
    keys = jax.random.split(key, len(names))
    return {n: _make_conv_params(k, C) for n, k in zip(names, keys)}


# ---------------------------------------------------------------------------
# Full forward (mirrors U_shapeFeatureIntegration.forward)
# ---------------------------------------------------------------------------
def u_shape_forward(x_nchw, high_nchw, gi_nchw, params, conv_fn):
    x = jnp.transpose(x_nchw, (0, 2, 3, 1))      # -> NHWC
    high = jnp.transpose(high_nchw, (0, 2, 3, 1))
    gi = jnp.transpose(gi_nchw, (0, 2, 3, 1))
    p = params

    y1 = conv_fn(x, *p["conv1"], stride=2, padding=1, dilation=1,
                 skip_src=high, skip_mode="post")
    y2 = conv_fn(y1, *p["conv2"], stride=2, padding=1, dilation=1,
                 skip_src=gi, skip_mode="post")
    y3 = conv_fn(y2, *p["conv3"], stride=2, padding=1, dilation=1)
    y4 = conv_fn(y3, *p["conv4"], stride=2, padding=1, dilation=1)
    y5 = conv_fn(y4, *p["conv5"], stride=1, padding=2, dilation=2)

    y4r = conv_fn(y4, *p["conv_rev1"], skip_src=y5, skip_mode="pre")
    y3r = conv_fn(y3, *p["conv_rev2"], skip_src=y4r, skip_mode="pre")
    y2r = conv_fn(y2, *p["conv_rev3"], skip_src=y3r, skip_mode="pre")
    y1r = conv_fn(y1, *p["conv_rev4"], skip_src=y2r, skip_mode="pre")

    out = conv_fn(x, *p["conv_sum"], skip_src=y1r, skip_mode="pre",
                  prologue_relu=True)
    return jnp.transpose(out, (0, 3, 1, 2))      # -> NCHW


# ---------------------------------------------------------------------------
if __name__ == "__main__":
    key = jax.random.PRNGKey(0)
    kx, khigh, kgi, kparam = jax.random.split(key, 4)

    B, C, H, W = 2, 8, 32, 32                         # x is [bs, C, H/2, W/2]
    x = jax.random.normal(kx, (B, C, H, W), jnp.float32)
    high = jax.random.normal(khigh, (B, C, H // 2, W // 2), jnp.float32)
    gi = jax.random.normal(kgi, (B, C, H // 8, W // 8), jnp.float32)
    params = init_params(kparam, C)

    fwd_pallas = jax.jit(functools.partial(u_shape_forward,
                                           params=params, conv_fn=conv_block))
    out = jax.block_until_ready(fwd_pallas(x, high, gi))
    assert out.shape == (B, C, H, W), out.shape

    ref = u_shape_forward(x, high, gi, params, conv_block_ref)
    ref = jax.block_until_ready(ref)
    err = float(jnp.max(jnp.abs(out - ref)))
    assert err < 2e-3, f"max abs error vs reference: {err}"

    print("KERNEL_OK")
</pallas_src>

<mosaic_0001>
module attributes {stable_mosaic.version = 11 : i64} {
  func.func @kernel(%arg0: i32, %arg1: memref<1x32x256xf32, #tpu.memory_space<vmem>>, %arg2: memref<1x16x128xf32, #tpu.memory_space<vmem>>, %arg3: memref<16x16xf32, #tpu.memory_space<vmem>>, %arg4: memref<128x128xf32, #tpu.memory_space<vmem>>, %arg5: memref<3x16x32xf32, #tpu.memory_space<vmem>>, %arg6: memref<3x256x128xf32, #tpu.memory_space<vmem>>, %arg7: memref<1x128xf32, #tpu.memory_space<vmem>>, %arg8: memref<1x16x128xf32, #tpu.memory_space<vmem>>) attributes {dimension_semantics = [#tpu.dimension_semantics<parallel>], iteration_bounds = array<i64: 2>, scalar_prefetch = 0 : i64, scratch_operands = 0 : i64, tpu.core_type = #tpu.core_type<tc>, window_params = [{transform_indices = @transform_0, window_bounds = array<i64: 1, 32, 256>}, {transform_indices = @transform_1, window_bounds = array<i64: 1, 16, 128>}, {pipeline_mode = #tpu.pipeline_mode<synchronous>, transform_indices = @transform_2, window_bounds = array<i64: 16, 16>}, {pipeline_mode = #tpu.pipeline_mode<synchronous>, transform_indices = @transform_3, window_bounds = array<i64: 128, 128>}, {pipeline_mode = #tpu.pipeline_mode<synchronous>, transform_indices = @transform_4, window_bounds = array<i64: 3, 16, 32>}, {pipeline_mode = #tpu.pipeline_mode<synchronous>, transform_indices = @transform_5, window_bounds = array<i64: 3, 256, 128>}, {pipeline_mode = #tpu.pipeline_mode<synchronous>, transform_indices = @transform_6, window_bounds = array<i64: 1, 128>}, {transform_indices = @transform_7, window_bounds = array<i64: 1, 16, 128>}]} {
    %c0 = arith.constant 0 : index
    %c0_0 = arith.constant 0 : index
    %c0_1 = arith.constant 0 : index
    %0 = vector.load %arg1[%c0, %c0_0, %c0_1] : memref<1x32x256xf32, #tpu.memory_space<vmem>>, vector<1x32x256xf32>
    %1 = vector.shape_cast %0 : vector<1x32x256xf32> to vector<32x256xf32>
    %c0_2 = arith.constant 0 : index
    %c0_3 = arith.constant 0 : index
    %c0_4 = arith.constant 0 : index
    %2 = vector.load %arg5[%c0_2, %c0_3, %c0_4] : memref<3x16x32xf32, #tpu.memory_space<vmem>>, vector<1x16x32xf32>
    %3 = vector.shape_cast %2 : vector<1x16x32xf32> to vector<16x32xf32>
    %cst = arith.constant dense<0.000000e+00> : vector<16x256xf32>
    %4 = tpu.matmul %3, %1, %cst {dimension_numbers = #tpu.dot_dimension_numbers<[1], [0], [0], [1], [0, 0, 1, 1], [], []>} : vector<16x32xf32>, vector<32x256xf32>, vector<16x256xf32> -> vector<16x256xf32>
    %c0_5 = arith.constant 0 : index
    %c0_6 = arith.constant 0 : index
    %c0_7 = arith.constant 0 : index
    %5 = vector.load %arg6[%c0_5, %c0_6, %c0_7] : memref<3x256x128xf32, #tpu.memory_space<vmem>>, vector<1x256x128xf32>
    %6 = vector.shape_cast %5 : vector<1x256x128xf32> to vector<256x128xf32>
    %cst_8 = arith.constant dense<0.000000e+00> : vector<16x128xf32>
    %7 = tpu.matmul %4, %6, %cst_8 {dimension_numbers = #tpu.dot_dimension_numbers<[1], [0], [0], [1], [0, 0, 1, 1], [], []>} : vector<16x256xf32>, vector<256x128xf32>, vector<16x128xf32> -> vector<16x128xf32>
    %c1 = arith.constant 1 : index
    %c0_9 = arith.constant 0 : index
    %c0_10 = arith.constant 0 : index
    %8 = vector.load %arg5[%c1, %c0_9, %c0_10] : memref<3x16x32xf32, #tpu.memory_space<vmem>>, vector<1x16x32xf32>
    %9 = vector.shape_cast %8 : vector<1x16x32xf32> to vector<16x32xf32>
    %cst_11 = arith.constant dense<0.000000e+00> : vector<16x256xf32>
    %10 = tpu.matmul %9, %1, %cst_11 {dimension_numbers = #tpu.dot_dimension_numbers<[1], [0], [0], [1], [0, 0, 1, 1], [], []>} : vector<16x32xf32>, vector<32x256xf32>, vector<16x256xf32> -> vector<16x256xf32>
    %c1_12 = arith.constant 1 : index
    %c0_13 = arith.constant 0 : index
    %c0_14 = arith.constant 0 : index
    %11 = vector.load %arg6[%c1_12, %c0_13, %c0_14] : memref<3x256x128xf32, #tpu.memory_space<vmem>>, vector<1x256x128xf32>
    %12 = vector.shape_cast %11 : vector<1x256x128xf32> to vector<256x128xf32>
    %cst_15 = arith.constant dense<0.000000e+00> : vector<16x128xf32>
    %13 = tpu.matmul %10, %12, %cst_15 {dimension_numbers = #tpu.dot_dimension_numbers<[1], [0], [0], [1], [0, 0, 1, 1], [], []>} : vector<16x256xf32>, vector<256x128xf32>, vector<16x128xf32> -> vector<16x128xf32>
    %14 = arith.addf %7, %13 : vector<16x128xf32>
    %c2 = arith.constant 2 : index
    %c0_16 = arith.constant 0 : index
    %c0_17 = arith.constant 0 : index
    %15 = vector.load %arg5[%c2, %c0_16, %c0_17] : memref<3x16x32xf32, #tpu.memory_space<vmem>>, vector<1x16x32xf32>
    %16 = vector.shape_cast %15 : vector<1x16x32xf32> to vector<16x32xf32>
    %cst_18 = arith.constant dense<0.000000e+00> : vector<16x256xf32>
    %17 = tpu.matmul %16, %1, %cst_18 {dimension_numbers = #tpu.dot_dimension_numbers<[1], [0], [0], [1], [0, 0, 1, 1], [], []>} : vector<16x32xf32>, vector<32x256xf32>, vector<16x256xf32> -> vector<16x256xf32>
    %c2_19 = arith.constant 2 : index
    %c0_20 = arith.constant 0 : index
    %c0_21 = arith.constant 0 : index
    %18 = vector.load %arg6[%c2_19, %c0_20, %c0_21] : memref<3x256x128xf32, #tpu.memory_space<vmem>>, vector<1x256x128xf32>
    %19 = vector.shape_cast %18 : vector<1x256x128xf32> to vector<256x128xf32>
    %cst_22 = arith.constant dense<0.000000e+00> : vector<16x128xf32>
    %20 = tpu.matmul %17, %19, %cst_22 {dimension_numbers = #tpu.dot_dimension_numbers<[1], [0], [0], [1], [0, 0, 1, 1], [], []>} : vector<16x256xf32>, vector<256x128xf32>, vector<16x128xf32> -> vector<16x128xf32>
    %21 = arith.addf %14, %20 : vector<16x128xf32>
    %c0_23 = arith.constant 0 : index
    %c0_24 = arith.constant 0 : index
    %22 = vector.load %arg7[%c0_23, %c0_24] : memref<1x128xf32, #tpu.memory_space<vmem>>, vector<1x128xf32>
    %23 = vector.broadcast %22 : vector<1x128xf32> to vector<16x128xf32>
    %24 = arith.addf %21, %23 : vector<16x128xf32>
    %cst_25 = arith.constant 0.000000e+00 : f32
    %25 = vector.broadcast %cst_25 : f32 to vector<16x128xf32>
    %26 = arith.maximumf %24, %25 : vector<16x128xf32>
    %c0_26 = arith.constant 0 : index
    %c0_27 = arith.constant 0 : index
    %27 = vector.load %arg3[%c0_26, %c0_27] : memref<16x16xf32, #tpu.memory_space<vmem>>, vector<16x16xf32>
    %c0_28 = arith.constant 0 : index
    %c0_29 = arith.constant 0 : index
    %c0_30 = arith.constant 0 : index
    %28 = vector.load %arg2[%c0_28, %c0_29, %c0_30] : memref<1x16x128xf32, #tpu.memory_space<vmem>>, vector<1x16x128xf32>
    %29 = vector.shape_cast %28 : vector<1x16x128xf32> to vector<16x128xf32>
    %cst_31 = arith.constant dense<0.000000e+00> : vector<16x128xf32>
    %30 = tpu.matmul %27, %29, %cst_31 {dimension_numbers = #tpu.dot_dimension_numbers<[1], [0], [0], [1], [0, 0, 1, 1], [], []>} : vector<16x16xf32>, vector<16x128xf32>, vector<16x128xf32> -> vector<16x128xf32>
    %c0_32 = arith.constant 0 : index
    %c0_33 = arith.constant 0 : index
    %31 = vector.load %arg4[%c0_32, %c0_33] : memref<128x128xf32, #tpu.memory_space<vmem>>, vector<128x128xf32>
    %cst_34 = arith.constant dense<0.000000e+00> : vector<16x128xf32>
    %32 = tpu.matmul %30, %31, %cst_34 {dimension_numbers = #tpu.dot_dimension_numbers<[1], [0], [0], [1], [0, 0, 1, 1], [], []>} : vector<16x128xf32>, vector<128x128xf32>, vector<16x128xf32> -> vector<16x128xf32>
    %33 = arith.addf %26, %32 : vector<16x128xf32>
    %c0_35 = arith.constant 0 : index
    %c0_36 = arith.constant 0 : index
    %c0_37 = arith.constant 0 : index
    %34 = vector.load %arg8[%c0_35, %c0_36, %c0_37] : memref<1x16x128xf32, #tpu.memory_space<vmem>>, vector<1x16x128xf32>
    %35 = vector.shape_cast %34 : vector<1x16x128xf32> to vector<16x128xf32>
    %36 = vector.shape_cast %33 : vector<16x128xf32> to vector<1x16x128xf32>
    tpu.vector_store %arg8[%c0_35, %c0_36, %c0_37], %36 {strides = array<i32>} : memref<1x16x128xf32, #tpu.memory_space<vmem>>, vector<1x16x128xf32>,
    return
  }
  func.func @transform_0(%arg0: i32) -> (i32, i32, i32) {
    %c0_i32 = arith.constant 0 : i32
    %c0_i32_0 = arith.constant 0 : i32
    %c0_i32_1 = arith.constant 0 : i32
    return %arg0, %c0_i32, %c0_i32_0 : i32, i32, i32
  }
  func.func @transform_1(%arg0: i32) -> (i32, i32, i32) {
    %c0_i32 = arith.constant 0 : i32
    %c0_i32_0 = arith.constant 0 : i32
    %c0_i32_1 = arith.constant 0 : i32
    return %arg0, %c0_i32, %c0_i32_0 : i32, i32, i32
  }
  func.func @transform_2(%arg0: i32) -> (i32, i32) {
    %c0_i32 = arith.constant 0 : i32
    %c0_i32_0 = arith.constant 0 : i32
    %c0_i32_1 = arith.constant 0 : i32
    return %c0_i32, %c0_i32_0 : i32, i32
  }
  func.func @transform_3(%arg0: i32) -> (i32, i32) {
    %c0_i32 = arith.constant 0 : i32
    %c0_i32_0 = arith.constant 0 : i32
    %c0_i32_1 = arith.constant 0 : i32
    return %c0_i32, %c0_i32_0 : i32, i32
  }
  func.func @transform_4(%arg0: i32) -> (i32, i32, i32) {
    %c0_i32 = arith.constant 0 : i32
    %c0_i32_0 = arith.constant 0 : i32
    %c0_i32_1 = arith.constant 0 : i32
    %c0_i32_2 = arith.constant 0 : i32
    return %c0_i32, %c0_i32_0, %c0_i32_1 : i32, i32, i32
  }
  func.func @transform_5(%arg0: i32) -> (i32, i32, i32) {
    %c0_i32 = arith.constant 0 : i32
    %c0_i32_0 = arith.constant 0 : i32
    %c0_i32_1 = arith.constant 0 : i32
    %c0_i32_2 = arith.constant 0 : i32
    return %c0_i32, %c0_i32_0, %c0_i32_1 : i32, i32, i32
  }
  func.func @transform_6(%arg0: i32) -> (i32, i32) {
    %c0_i32 = arith.constant 0 : i32
    %c0_i32_0 = arith.constant 0 : i32
    %c0_i32_1 = arith.constant 0 : i32
    return %c0_i32, %c0_i32_0 : i32, i32
  }
  func.func @transform_7(%arg0: i32) -> (i32, i32, i32) {
    %c0_i32 = arith.constant 0 : i32
    %c0_i32_0 = arith.constant 0 : i32
    %c0_i32_1 = arith.constant 0 : i32
    return %arg0, %c0_i32, %c0_i32_0 : i32, i32, i32
  }
}

module attributes {stable_mosaic.version = 11 : i64} {
  func.func @kernel(%arg0: i32, %arg1: memref<1x16x128xf32, #tpu.memory_space<vmem>>, %arg2: memref<1x4x32xf32, #tpu.memory_space<vmem>>, %arg3: memref<8x4xf32, #tpu.memory_space<vmem>>, %arg4: memref<32x64xf32, #tpu.memory_space<vmem>>, %arg5: memref<3x8x16xf32, #tpu.memory_space<vmem>>, %arg6: memref<3x128x64xf32, #tpu.memory_space<vmem>>, %arg7: memref<1x64xf32, #tpu.memory_space<vmem>>, %arg8: memref<1x8x64xf32, #tpu.memory_space<vmem>>) attributes {dimension_semantics = [#tpu.dimension_semantics<parallel>], iteration_bounds = array<i64: 2>, scalar_prefetch = 0 : i64, scratch_operands = 0 : i64, tpu.core_type = #tpu.core_type<tc>, window_params = [{transform_indices = @transform_0, window_bounds = array<i64: 1, 16, 128>}, {transform_indices = @transform_1, window_bounds = array<i64: 1, 4, 32>}, {pipeline_mode = #tpu.pipeline_mode<synchronous>, transform_indices = @transform_2, window_bounds = array<i64: 8, 4>}, {pipeline_mode = #tpu.pipeline_mode<synchronous>, transform_indices = @transform_3, window_bounds = array<i64: 32, 64>}, {pipeline_mode = #tpu.pipeline_mode<synchronous>, transform_indices = @transform_4, window_bounds = array<i64: 3, 8, 16>}, {pipeline_mode = #tpu.pipeline_mode<synchronous>, transform_indices = @transform_5, window_bounds = array<i64: 3, 128, 64>}, {pipeline_mode = #tpu.pipeline_mode<synchronous>, transform_indices = @transform_6, window_bounds = array<i64: 1, 64>}, {transform_indices = @transform_7, window_bounds = array<i64: 1, 8, 64>}]} {
    %c0 = arith.constant 0 : index
    %c0_0 = arith.constant 0 : index
    %c0_1 = arith.constant 0 : index
    %0 = vector.load %arg1[%c0, %c0_0, %c0_1] : memref<1x16x128xf32, #tpu.memory_space<vmem>>, vector<1x16x128xf32>
    %1 = vector.shape_cast %0 : vector<1x16x128xf32> to vector<16x128xf32>
    %c0_2 = arith.constant 0 : index
    %c0_3 = arith.constant 0 : index
    %c0_4 = arith.constant 0 : index
    %2 = vector.load %arg5[%c0_2, %c0_3, %c0_4] : memref<3x8x16xf32, #tpu.memory_space<vmem>>, vector<1x8x16xf32>
    %3 = vector.shape_cast %2 : vector<1x8x16xf32> to vector<8x16xf32>
    %cst = arith.constant dense<0.000000e+00> : vector<8x128xf32>
    %4 = tpu.matmul %3, %1, %cst {dimension_numbers = #tpu.dot_dimension_numbers<[1], [0], [0], [1], [0, 0, 1, 1], [], []>} : vector<8x16xf32>, vector<16x128xf32>, vector<8x128xf32> -> vector<8x128xf32>
    %c0_5 = arith.constant 0 : index
    %c0_6 = arith.constant 0 : index
    %c0_7 = arith.constant 0 : index
    %5 = vector.load %arg6[%c0_5, %c0_6, %c0_7] : memref<3x128x64xf32, #tpu.memory_space<vmem>>, vector<1x128x64xf32>
    %6 = vector.shape_cast %5 : vector<1x128x64xf32> to vector<128x64xf32>
    %cst_8 = arith.constant dense<0.000000e+00> : vector<8x64xf32>
    %7 = tpu.matmul %4, %6, %cst_8 {dimension_numbers = #tpu.dot_dimension_numbers<[1], [0], [0], [1], [0, 0, 1, 1], [], []>} : vector<8x128xf32>, vector<128x64xf32>, vector<8x64xf32> -> vector<8x64xf32>
    %c1 = arith.constant 1 : index
    %c0_9 = arith.constant 0 : index
    %c0_10 = arith.constant 0 : index
    %8 = vector.load %arg5[%c1, %c0_9, %c0_10] : memref<3x8x16xf32, #tpu.memory_space<vmem>>, vector<1x8x16xf32>
    %9 = vector.shape_cast %8 : vector<1x8x16xf32> to vector<8x16xf32>
    %cst_11 = arith.constant dense<0.000000e+00> : vector<8x128xf32>
    %10 = tpu.matmul %9, %1, %cst_11 {dimension_numbers = #tpu.dot_dimension_numbers<[1], [0], [0], [1], [0, 0, 1, 1], [], []>} : vector<8x16xf32>, vector<16x128xf32>, vector<8x128xf32> -> vector<8x128xf32>
    %c1_12 = arith.constant 1 : index
    %c0_13 = arith.constant 0 : index
    %c0_14 = arith.constant 0 : index
    %11 = vector.load %arg6[%c1_12, %c0_13, %c0_14] : memref<3x128x64xf32, #tpu.memory_space<vmem>>, vector<1x128x64xf32>
    %12 = vector.shape_cast %11 : vector<1x128x64xf32> to vector<128x64xf32>
    %cst_15 = arith.constant dense<0.000000e+00> : vector<8x64xf32>
    %13 = tpu.matmul %10, %12, %cst_15 {dimension_numbers = #tpu.dot_dimension_numbers<[1], [0], [0], [1], [0, 0, 1, 1], [], []>} : vector<8x128xf32>, vector<128x64xf32>, vector<8x64xf32> -> vector<8x64xf32>
    %14 = arith.addf %7, %13 : vector<8x64xf32>
    %c2 = arith.constant 2 : index
    %c0_16 = arith.constant 0 : index
    %c0_17 = arith.constant 0 : index
    %15 = vector.load %arg5[%c2, %c0_16, %c0_17] : memref<3x8x16xf32, #tpu.memory_space<vmem>>, vector<1x8x16xf32>
    %16 = vector.shape_cast %15 : vector<1x8x16xf32> to vector<8x16xf32>
    %cst_18 = arith.constant dense<0.000000e+00> : vector<8x128xf32>
    %17 = tpu.matmul %16, %1, %cst_18 {dimension_numbers = #tpu.dot_dimension_numbers<[1], [0], [0], [1], [0, 0, 1, 1], [], []>} : vector<8x16xf32>, vector<16x128xf32>, vector<8x128xf32> -> vector<8x128xf32>
    %c2_19 = arith.constant 2 : index
    %c0_20 = arith.constant 0 : index
    %c0_21 = arith.constant 0 : index
    %18 = vector.load %arg6[%c2_19, %c0_20, %c0_21] : memref<3x128x64xf32, #tpu.memory_space<vmem>>, vector<1x128x64xf32>
    %19 = vector.shape_cast %18 : vector<1x128x64xf32> to vector<128x64xf32>
    %cst_22 = arith.constant dense<0.000000e+00> : vector<8x64xf32>
    %20 = tpu.matmul %17, %19, %cst_22 {dimension_numbers = #tpu.dot_dimension_numbers<[1], [0], [0], [1], [0, 0, 1, 1], [], []>} : vector<8x128xf32>, vector<128x64xf32>, vector<8x64xf32> -> vector<8x64xf32>
    %21 = arith.addf %14, %20 : vector<8x64xf32>
    %c0_23 = arith.constant 0 : index
    %c0_24 = arith.constant 0 : index
    %22 = vector.load %arg7[%c0_23, %c0_24] : memref<1x64xf32, #tpu.memory_space<vmem>>, vector<1x64xf32>
    %23 = vector.broadcast %22 : vector<1x64xf32> to vector<8x64xf32>
    %24 = arith.addf %21, %23 : vector<8x64xf32>
    %cst_25 = arith.constant 0.000000e+00 : f32
    %25 = vector.broadcast %cst_25 : f32 to vector<8x64xf32>
    %26 = arith.maximumf %24, %25 : vector<8x64xf32>
    %c0_26 = arith.constant 0 : index
    %c0_27 = arith.constant 0 : index
    %27 = vector.load %arg3[%c0_26, %c0_27] : memref<8x4xf32, #tpu.memory_space<vmem>>, vector<8x4xf32>
    %c0_28 = arith.constant 0 : index
    %c0_29 = arith.constant 0 : index
    %c0_30 = arith.constant 0 : index
    %28 = vector.load %arg2[%c0_28, %c0_29, %c0_30] : memref<1x4x32xf32, #tpu.memory_space<vmem>>, vector<1x4x32xf32>
    %29 = vector.shape_cast %28 : vector<1x4x32xf32> to vector<4x32xf32>
    %cst_31 = arith.constant dense<0.000000e+00> : vector<8x32xf32>
    %30 = tpu.matmul %27, %29, %cst_31 {dimension_numbers = #tpu.dot_dimension_numbers<[1], [0], [0], [1], [0, 0, 1, 1], [], []>} : vector<8x4xf32>, vector<4x32xf32>, vector<8x32xf32> -> vector<8x32xf32>
    %c0_32 = arith.constant 0 : index
    %c0_33 = arith.constant 0 : index
    %31 = vector.load %arg4[%c0_32, %c0_33] : memref<32x64xf32, #tpu.memory_space<vmem>>, vector<32x64xf32>
    %cst_34 = arith.constant dense<0.000000e+00> : vector<8x64xf32>
    %32 = tpu.matmul %30, %31, %cst_34 {dimension_numbers = #tpu.dot_dimension_numbers<[1], [0], [0], [1], [0, 0, 1, 1], [], []>} : vector<8x32xf32>, vector<32x64xf32>, vector<8x64xf32> -> vector<8x64xf32>
    %33 = arith.addf %26, %32 : vector<8x64xf32>
    %c0_35 = arith.constant 0 : index
    %c0_36 = arith.constant 0 : index
    %c0_37 = arith.constant 0 : index
    %34 = vector.load %arg8[%c0_35, %c0_36, %c0_37] : memref<1x8x64xf32, #tpu.memory_space<vmem>>, vector<1x8x64xf32>
    %35 = vector.shape_cast %34 : vector<1x8x64xf32> to vector<8x64xf32>
    %36 = vector.shape_cast %33 : vector<8x64xf32> to vector<1x8x64xf32>
    tpu.vector_store %arg8[%c0_35, %c0_36, %c0_37], %36 {strides = array<i32>} : memref<1x8x64xf32, #tpu.memory_space<vmem>>, vector<1x8x64xf32>,
    return
  }
  func.func @transform_0(%arg0: i32) -> (i32, i32, i32) {
    %c0_i32 = arith.constant 0 : i32
    %c0_i32_0 = arith.constant 0 : i32
    %c0_i32_1 = arith.constant 0 : i32
    return %arg0, %c0_i32, %c0_i32_0 : i32, i32, i32
  }
  func.func @transform_1(%arg0: i32) -> (i32, i32, i32) {
    %c0_i32 = arith.constant 0 : i32
    %c0_i32_0 = arith.constant 0 : i32
    %c0_i32_1 = arith.constant 0 : i32
    return %arg0, %c0_i32, %c0_i32_0 : i32, i32, i32
  }
  func.func @transform_2(%arg0: i32) -> (i32, i32) {
    %c0_i32 = arith.constant 0 : i32
    %c0_i32_0 = arith.constant 0 : i32
    %c0_i32_1 = arith.constant 0 : i32
    return %c0_i32, %c0_i32_0 : i32, i32
  }
  func.func @transform_3(%arg0: i32) -> (i32, i32) {
    %c0_i32 = arith.constant 0 : i32
    %c0_i32_0 = arith.constant 0 : i32
    %c0_i32_1 = arith.constant 0 : i32
    return %c0_i32, %c0_i32_0 : i32, i32
  }
  func.func @transform_4(%arg0: i32) -> (i32, i32, i32) {
    %c0_i32 = arith.constant 0 : i32
    %c0_i32_0 = arith.constant 0 : i32
    %c0_i32_1 = arith.constant 0 : i32
    %c0_i32_2 = arith.constant 0 : i32
    return %c0_i32, %c0_i32_0, %c0_i32_1 : i32, i32, i32
  }
  func.func @transform_5(%arg0: i32) -> (i32, i32, i32) {
    %c0_i32 = arith.constant 0 : i32
    %c0_i32_0 = arith.constant 0 : i32
    %c0_i32_1 = arith.constant 0 : i32
    %c0_i32_2 = arith.constant 0 : i32
    return %c0_i32, %c0_i32_0, %c0_i32_1 : i32, i32, i32
  }
  func.func @transform_6(%arg0: i32) -> (i32, i32) {
    %c0_i32 = arith.constant 0 : i32
    %c0_i32_0 = arith.constant 0 : i32
    %c0_i32_1 = arith.constant 0 : i32
    return %c0_i32, %c0_i32_0 : i32, i32
  }
  func.func @transform_7(%arg0: i32) -> (i32, i32, i32) {
    %c0_i32 = arith.constant 0 : i32
    %c0_i32_0 = arith.constant 0 : i32
    %c0_i32_1 = arith.constant 0 : i32
    return %arg0, %c0_i32, %c0_i32_0 : i32, i32, i32
  }
}

module attributes {stable_mosaic.version = 11 : i64} {
  func.func @kernel(%arg0: i32, %arg1: memref<1x8x64xf32, #tpu.memory_space<vmem>>, %arg2: memref<3x4x8xf32, #tpu.memory_space<vmem>>, %arg3: memref<3x64x32xf32, #tpu.memory_space<vmem>>, %arg4: memref<1x32xf32, #tpu.memory_space<vmem>>, %arg5: memref<1x4x32xf32, #tpu.memory_space<vmem>>) attributes {dimension_semantics = [#tpu.dimension_semantics<parallel>], iteration_bounds = array<i64: 2>, scalar_prefetch = 0 : i64, scratch_operands = 0 : i64, tpu.core_type = #tpu.core_type<tc>, window_params = [{transform_indices = @transform_0, window_bounds = array<i64: 1, 8, 64>}, {pipeline_mode = #tpu.pipeline_mode<synchronous>, transform_indices = @transform_1, window_bounds = array<i64: 3, 4, 8>}, {pipeline_mode = #tpu.pipeline_mode<synchronous>, transform_indices = @transform_2, window_bounds = array<i64: 3, 64, 32>}, {pipeline_mode = #tpu.pipeline_mode<synchronous>, transform_indices = @transform_3, window_bounds = array<i64: 1, 32>}, {transform_indices = @transform_4, window_bounds = array<i64: 1, 4, 32>}]} {
    %c0 = arith.constant 0 : index
    %c0_0 = arith.constant 0 : index
    %c0_1 = arith.constant 0 : index
    %0 = vector.load %arg1[%c0, %c0_0, %c0_1] : memref<1x8x64xf32, #tpu.memory_space<vmem>>, vector<1x8x64xf32>
    %1 = vector.shape_cast %0 : vector<1x8x64xf32> to vector<8x64xf32>
    %c0_2 = arith.constant 0 : index
    %c0_3 = arith.constant 0 : index
    %c0_4 = arith.constant 0 : index
    %2 = vector.load %arg2[%c0_2, %c0_3, %c0_4] : memref<3x4x8xf32, #tpu.memory_space<vmem>>, vector<1x4x8xf32>
    %3 = vector.shape_cast %2 : vector<1x4x8xf32> to vector<4x8xf32>
    %cst = arith.constant dense<0.000000e+00> : vector<4x64xf32>
    %4 = tpu.matmul %3, %1, %cst {dimension_numbers = #tpu.dot_dimension_numbers<[1], [0], [0], [1], [0, 0, 1, 1], [], []>} : vector<4x8xf32>, vector<8x64xf32>, vector<4x64xf32> -> vector<4x64xf32>
    %c0_5 = arith.constant 0 : index
    %c0_6 = arith.constant 0 : index
    %c0_7 = arith.constant 0 : index
    %5 = vector.load %arg3[%c0_5, %c0_6, %c0_7] : memref<3x64x32xf32, #tpu.memory_space<vmem>>, vector<1x64x32xf32>
    %6 = vector.shape_cast %5 : vector<1x64x32xf32> to vector<64x32xf32>
    %cst_8 = arith.constant dense<0.000000e+00> : vector<4x32xf32>
    %7 = tpu.matmul %4, %6, %cst_8 {dimension_numbers = #tpu.dot_dimension_numbers<[1], [0], [0], [1], [0, 0, 1, 1], [], []>} : vector<4x64xf32>, vector<64x32xf32>, vector<4x32xf32> -> vector<4x32xf32>
    %c1 = arith.constant 1 : index
    %c0_9 = arith.constant 0 : index
    %c0_10 = arith.constant 0 : index
    %8 = vector.load %arg2[%c1, %c0_9, %c0_10] : memref<3x4x8xf32, #tpu.memory_space<vmem>>, vector<1x4x8xf32>
    %9 = vector.shape_cast %8 : vector<1x4x8xf32> to vector<4x8xf32>
    %cst_11 = arith.constant dense<0.000000e+00> : vector<4x64xf32>
    %10 = tpu.matmul %9, %1, %cst_11 {dimension_numbers = #tpu.dot_dimension_numbers<[1], [0], [0], [1], [0, 0, 1, 1], [], []>} : vector<4x8xf32>, vector<8x64xf32>, vector<4x64xf32> -> vector<4x64xf32>
    %c1_12 = arith.constant 1 : index
    %c0_13 = arith.constant 0 : index
    %c0_14 = arith.constant 0 : index
    %11 = vector.load %arg3[%c1_12, %c0_13, %c0_14] : memref<3x64x32xf32, #tpu.memory_space<vmem>>, vector<1x64x32xf32>
    %12 = vector.shape_cast %11 : vector<1x64x32xf32> to vector<64x32xf32>
    %cst_15 = arith.constant dense<0.000000e+00> : vector<4x32xf32>
    %13 = tpu.matmul %10, %12, %cst_15 {dimension_numbers = #tpu.dot_dimension_numbers<[1], [0], [0], [1], [0, 0, 1, 1], [], []>} : vector<4x64xf32>, vector<64x32xf32>, vector<4x32xf32> -> vector<4x32xf32>
    %14 = arith.addf %7, %13 : vector<4x32xf32>
    %c2 = arith.constant 2 : index
    %c0_16 = arith.constant 0 : index
    %c0_17 = arith.constant 0 : index
    %15 = vector.load %arg2[%c2, %c0_16, %c0_17] : memref<3x4x8xf32, #tpu.memory_space<vmem>>, vector<1x4x8xf32>
    %16 = vector.shape_cast %15 : vector<1x4x8xf32> to vector<4x8xf32>
    %cst_18 = arith.constant dense<0.000000e+00> : vector<4x64xf32>
    %17 = tpu.matmul %16, %1, %cst_18 {dimension_numbers = #tpu.dot_dimension_numbers<[1], [0], [0], [1], [0, 0, 1, 1], [], []>} : vector<4x8xf32>, vector<8x64xf32>, vector<4x64xf32> -> vector<4x64xf32>
    %c2_19 = arith.constant 2 : index
    %c0_20 = arith.constant 0 : index
    %c0_21 = arith.constant 0 : index
    %18 = vector.load %arg3[%c2_19, %c0_20, %c0_21] : memref<3x64x32xf32, #tpu.memory_space<vmem>>, vector<1x64x32xf32>
    %19 = vector.shape_cast %18 : vector<1x64x32xf32> to vector<64x32xf32>
    %cst_22 = arith.constant dense<0.000000e+00> : vector<4x32xf32>
    %20 = tpu.matmul %17, %19, %cst_22 {dimension_numbers = #tpu.dot_dimension_numbers<[1], [0], [0], [1], [0, 0, 1, 1], [], []>} : vector<4x64xf32>, vector<64x32xf32>, vector<4x32xf32> -> vector<4x32xf32>
    %21 = arith.addf %14, %20 : vector<4x32xf32>
    %c0_23 = arith.constant 0 : index
    %c0_24 = arith.constant 0 : index
    %22 = vector.load %arg4[%c0_23, %c0_24] : memref<1x32xf32, #tpu.memory_space<vmem>>, vector<1x32xf32>
    %23 = vector.broadcast %22 : vector<1x32xf32> to vector<4x32xf32>
    %24 = arith.addf %21, %23 : vector<4x32xf32>
    %cst_25 = arith.constant 0.000000e+00 : f32
    %25 = vector.broadcast %cst_25 : f32 to vector<4x32xf32>
    %26 = arith.maximumf %24, %25 : vector<4x32xf32>
    %c0_26 = arith.constant 0 : index
    %c0_27 = arith.constant 0 : index
    %c0_28 = arith.constant 0 : index
    %27 = vector.load %arg5[%c0_26, %c0_27, %c0_28] : memref<1x4x32xf32, #tpu.memory_space<vmem>>, vector<1x4x32xf32>
    %28 = vector.shape_cast %27 : vector<1x4x32xf32> to vector<4x32xf32>
    %29 = vector.shape_cast %26 : vector<4x32xf32> to vector<1x4x32xf32>
    tpu.vector_store %arg5[%c0_26, %c0_27, %c0_28], %29 {strides = array<i32>} : memref<1x4x32xf32, #tpu.memory_space<vmem>>, vector<1x4x32xf32>,
    return
  }
  func.func @transform_0(%arg0: i32) -> (i32, i32, i32) {
    %c0_i32 = arith.constant 0 : i32
    %c0_i32_0 = arith.constant 0 : i32
    %c0_i32_1 = arith.constant 0 : i32
    return %arg0, %c0_i32, %c0_i32_0 : i32, i32, i32
  }
  func.func @transform_1(%arg0: i32) -> (i32, i32, i32) {
    %c0_i32 = arith.constant 0 : i32
    %c0_i32_0 = arith.constant 0 : i32
    %c0_i32_1 = arith.constant 0 : i32
    %c0_i32_2 = arith.constant 0 : i32
    return %c0_i32, %c0_i32_0, %c0_i32_1 : i32, i32, i32
  }
  func.func @transform_2(%arg0: i32) -> (i32, i32, i32) {
    %c0_i32 = arith.constant 0 : i32
    %c0_i32_0 = arith.constant 0 : i32
    %c0_i32_1 = arith.constant 0 : i32
    %c0_i32_2 = arith.constant 0 : i32
    return %c0_i32, %c0_i32_0, %c0_i32_1 : i32, i32, i32
  }
  func.func @transform_3(%arg0: i32) -> (i32, i32) {
    %c0_i32 = arith.constant 0 : i32
    %c0_i32_0 = arith.constant 0 : i32
    %c0_i32_1 = arith.constant 0 : i32
    return %c0_i32, %c0_i32_0 : i32, i32
  }
  func.func @transform_4(%arg0: i32) -> (i32, i32, i32) {
    %c0_i32 = arith.constant 0 : i32
    %c0_i32_0 = arith.constant 0 : i32
    %c0_i32_1 = arith.constant 0 : i32
    return %arg0, %c0_i32, %c0_i32_0 : i32, i32, i32
  }
}

module attributes {stable_mosaic.version = 11 : i64} {
  func.func @kernel(%arg0: i32, %arg1: memref<1x2x16xf32, #tpu.memory_space<vmem>>, %arg2: memref<3x2x2xf32, #tpu.memory_space<vmem>>, %arg3: memref<3x16x16xf32, #tpu.memory_space<vmem>>, %arg4: memref<1x16xf32, #tpu.memory_space<vmem>>, %arg5: memref<1x2x16xf32, #tpu.memory_space<vmem>>) attributes {dimension_semantics = [#tpu.dimension_semantics<parallel>], iteration_bounds = array<i64: 2>, scalar_prefetch = 0 : i64, scratch_operands = 0 : i64, tpu.core_type = #tpu.core_type<tc>, window_params = [{transform_indices = @transform_0, window_bounds = array<i64: 1, 2, 16>}, {pipeline_mode = #tpu.pipeline_mode<synchronous>, transform_indices = @transform_1, window_bounds = array<i64: 3, 2, 2>}, {pipeline_mode = #tpu.pipeline_mode<synchronous>, transform_indices = @transform_2, window_bounds = array<i64: 3, 16, 16>}, {pipeline_mode = #tpu.pipeline_mode<synchronous>, transform_indices = @transform_3, window_bounds = array<i64: 1, 16>}, {transform_indices = @transform_4, window_bounds = array<i64: 1, 2, 16>}]} {
    %c0 = arith.constant 0 : index
    %c0_0 = arith.constant 0 : index
    %c0_1 = arith.constant 0 : index
    %0 = vector.load %arg1[%c0, %c0_0, %c0_1] : memref<1x2x16xf32, #tpu.memory_space<vmem>>, vector<1x2x16xf32>
    %1 = vector.shape_cast %0 : vector<1x2x16xf32> to vector<2x16xf32>
    %c0_2 = arith.constant 0 : index
    %c0_3 = arith.constant 0 : index
    %c0_4 = arith.constant 0 : index
    %2 = vector.load %arg2[%c0_2, %c0_3, %c0_4] : memref<3x2x2xf32, #tpu.memory_space<vmem>>, vector<1x2x2xf32>
    %3 = vector.shape_cast %2 : vector<1x2x2xf32> to vector<2x2xf32>
    %cst = arith.constant dense<0.000000e+00> : vector<2x16xf32>
    %4 = tpu.matmul %3, %1, %cst {dimension_numbers = #tpu.dot_dimension_numbers<[1], [0], [0], [1], [0, 0, 1, 1], [], []>} : vector<2x2xf32>, vector<2x16xf32>, vector<2x16xf32> -> vector<2x16xf32>
    %c0_5 = arith.constant 0 : index
    %c0_6 = arith.constant 0 : index
    %c0_7 = arith.constant 0 : index
    %5 = vector.load %arg3[%c0_5, %c0_6, %c0_7] : memref<3x16x16xf32, #tpu.memory_space<vmem>>, vector<1x16x16xf32>
    %6 = vector.shape_cast %5 : vector<1x16x16xf32> to vector<16x16xf32>
    %cst_8 = arith.constant dense<0.000000e+00> : vector<2x16xf32>
    %7 = tpu.matmul %4, %6, %cst_8 {dimension_numbers = #tpu.dot_dimension_numbers<[1], [0], [0], [1], [0, 0, 1, 1], [], []>} : vector<2x16xf32>, vector<16x16xf32>, vector<2x16xf32> -> vector<2x16xf32>
    %c1 = arith.constant 1 : index
    %c0_9 = arith.constant 0 : index
    %c0_10 = arith.constant 0 : index
    %8 = vector.load %arg2[%c1, %c0_9, %c0_10] : memref<3x2x2xf32, #tpu.memory_space<vmem>>, vector<1x2x2xf32>
    %9 = vector.shape_cast %8 : vector<1x2x2xf32> to vector<2x2xf32>
    %cst_11 = arith.constant dense<0.000000e+00> : vector<2x16xf32>
    %10 = tpu.matmul %9, %1, %cst_11 {dimension_numbers = #tpu.dot_dimension_numbers<[1], [0], [0], [1], [0, 0, 1, 1], [], []>} : vector<2x2xf32>, vector<2x16xf32>, vector<2x16xf32> -> vector<2x16xf32>
    %c1_12 = arith.constant 1 : index
    %c0_13 = arith.constant 0 : index
    %c0_14 = arith.constant 0 : index
    %11 = vector.load %arg3[%c1_12, %c0_13, %c0_14] : memref<3x16x16xf32, #tpu.memory_space<vmem>>, vector<1x16x16xf32>
    %12 = vector.shape_cast %11 : vector<1x16x16xf32> to vector<16x16xf32>
    %cst_15 = arith.constant dense<0.000000e+00> : vector<2x16xf32>
    %13 = tpu.matmul %10, %12, %cst_15 {dimension_numbers = #tpu.dot_dimension_numbers<[1], [0], [0], [1], [0, 0, 1, 1], [], []>} : vector<2x16xf32>, vector<16x16xf32>, vector<2x16xf32> -> vector<2x16xf32>
    %14 = arith.addf %7, %13 : vector<2x16xf32>
    %c2 = arith.constant 2 : index
    %c0_16 = arith.constant 0 : index
    %c0_17 = arith.constant 0 : index
    %15 = vector.load %arg2[%c2, %c0_16, %c0_17] : memref<3x2x2xf32, #tpu.memory_space<vmem>>, vector<1x2x2xf32>
    %16 = vector.shape_cast %15 : vector<1x2x2xf32> to vector<2x2xf32>
    %cst_18 = arith.constant dense<0.000000e+00> : vector<2x16xf32>
    %17 = tpu.matmul %16, %1, %cst_18 {dimension_numbers = #tpu.dot_dimension_numbers<[1], [0], [0], [1], [0, 0, 1, 1], [], []>} : vector<2x2xf32>, vector<2x16xf32>, vector<2x16xf32> -> vector<2x16xf32>
    %c2_19 = arith.constant 2 : index
    %c0_20 = arith.constant 0 : index
    %c0_21 = arith.constant 0 : index
    %18 = vector.load %arg3[%c2_19, %c0_20, %c0_21] : memref<3x16x16xf32, #tpu.memory_space<vmem>>, vector<1x16x16xf32>
    %19 = vector.shape_cast %18 : vector<1x16x16xf32> to vector<16x16xf32>
    %cst_22 = arith.constant dense<0.000000e+00> : vector<2x16xf32>
    %20 = tpu.matmul %17, %19, %cst_22 {dimension_numbers = #tpu.dot_dimension_numbers<[1], [0], [0], [1], [0, 0, 1, 1], [], []>} : vector<2x16xf32>, vector<16x16xf32>, vector<2x16xf32> -> vector<2x16xf32>
    %21 = arith.addf %14, %20 : vector<2x16xf32>
    %c0_23 = arith.constant 0 : index
    %c0_24 = arith.constant 0 : index
    %22 = vector.load %arg4[%c0_23, %c0_24] : memref<1x16xf32, #tpu.memory_space<vmem>>, vector<1x16xf32>
    %23 = vector.broadcast %22 : vector<1x16xf32> to vector<2x16xf32>
    %24 = arith.addf %21, %23 : vector<2x16xf32>
    %cst_25 = arith.constant 0.000000e+00 : f32
    %25 = vector.broadcast %cst_25 : f32 to vector<2x16xf32>
    %26 = arith.maximumf %24, %25 : vector<2x16xf32>
    %c0_26 = arith.constant 0 : index
    %c0_27 = arith.constant 0 : index
    %c0_28 = arith.constant 0 : index
    %27 = vector.load %arg5[%c0_26, %c0_27, %c0_28] : memref<1x2x16xf32, #tpu.memory_space<vmem>>, vector<1x2x16xf32>
    %28 = vector.shape_cast %27 : vector<1x2x16xf32> to vector<2x16xf32>
    %29 = vector.shape_cast %26 : vector<2x16xf32> to vector<1x2x16xf32>
    tpu.vector_store %arg5[%c0_26, %c0_27, %c0_28], %29 {strides = array<i32>} : memref<1x2x16xf32, #tpu.memory_space<vmem>>, vector<1x2x16xf32>,
    return
  }
  func.func @transform_0(%arg0: i32) -> (i32, i32, i32) {
    %c0_i32 = arith.constant 0 : i32
    %c0_i32_0 = arith.constant 0 : i32
    %c0_i32_1 = arith.constant 0 : i32
    return %arg0, %c0_i32, %c0_i32_0 : i32, i32, i32
  }
  func.func @transform_1(%arg0: i32) -> (i32, i32, i32) {
    %c0_i32 = arith.constant 0 : i32
    %c0_i32_0 = arith.constant 0 : i32
    %c0_i32_1 = arith.constant 0 : i32
    %c0_i32_2 = arith.constant 0 : i32
    return %c0_i32, %c0_i32_0, %c0_i32_1 : i32, i32, i32
  }
  func.func @transform_2(%arg0: i32) -> (i32, i32, i32) {
    %c0_i32 = arith.constant 0 : i32
    %c0_i32_0 = arith.constant 0 : i32
    %c0_i32_1 = arith.constant 0 : i32
    %c0_i32_2 = arith.constant 0 : i32
    return %c0_i32, %c0_i32_0, %c0_i32_1 : i32, i32, i32
  }
  func.func @transform_3(%arg0: i32) -> (i32, i32) {
    %c0_i32 = arith.constant 0 : i32
    %c0_i32_0 = arith.constant 0 : i32
    %c0_i32_1 = arith.constant 0 : i32
    return %c0_i32, %c0_i32_0 : i32, i32
  }
  func.func @transform_4(%arg0: i32) -> (i32, i32, i32) {
    %c0_i32 = arith.constant 0 : i32
    %c0_i32_0 = arith.constant 0 : i32
    %c0_i32_1 = arith.constant 0 : i32
    return %arg0, %c0_i32, %c0_i32_0 : i32, i32, i32
  }
}

module attributes {stable_mosaic.version = 11 : i64} {
  func.func @kernel(%arg0: i32, %arg1: memref<1x4x32xf32, #tpu.memory_space<vmem>>, %arg2: memref<3x2x4xf32, #tpu.memory_space<vmem>>, %arg3: memref<3x32x16xf32, #tpu.memory_space<vmem>>, %arg4: memref<1x16xf32, #tpu.memory_space<vmem>>, %arg5: memref<1x2x16xf32, #tpu.memory_space<vmem>>) attributes {dimension_semantics = [#tpu.dimension_semantics<parallel>], iteration_bounds = array<i64: 2>, scalar_prefetch = 0 : i64, scratch_operands = 0 : i64, tpu.core_type = #tpu.core_type<tc>, window_params = [{transform_indices = @transform_0, window_bounds = array<i64: 1, 4, 32>}, {pipeline_mode = #tpu.pipeline_mode<synchronous>, transform_indices = @transform_1, window_bounds = array<i64: 3, 2, 4>}, {pipeline_mode = #tpu.pipeline_mode<synchronous>, transform_indices = @transform_2, window_bounds = array<i64: 3, 32, 16>}, {pipeline_mode = #tpu.pipeline_mode<synchronous>, transform_indices = @transform_3, window_bounds = array<i64: 1, 16>}, {transform_indices = @transform_4, window_bounds = array<i64: 1, 2, 16>}]} {
    %c0 = arith.constant 0 : index
    %c0_0 = arith.constant 0 : index
    %c0_1 = arith.constant 0 : index
    %0 = vector.load %arg1[%c0, %c0_0, %c0_1] : memref<1x4x32xf32, #tpu.memory_space<vmem>>, vector<1x4x32xf32>
    %1 = vector.shape_cast %0 : vector<1x4x32xf32> to vector<4x32xf32>
    %c0_2 = arith.constant 0 : index
    %c0_3 = arith.constant 0 : index
    %c0_4 = arith.constant 0 : index
    %2 = vector.load %arg2[%c0_2, %c0_3, %c0_4] : memref<3x2x4xf32, #tpu.memory_space<vmem>>, vector<1x2x4xf32>
    %3 = vector.shape_cast %2 : vector<1x2x4xf32> to vector<2x4xf32>
    %cst = arith.constant dense<0.000000e+00> : vector<2x32xf32>
    %4 = tpu.matmul %3, %1, %cst {dimension_numbers = #tpu.dot_dimension_numbers<[1], [0], [0], [1], [0, 0, 1, 1], [], []>} : vector<2x4xf32>, vector<4x32xf32>, vector<2x32xf32> -> vector<2x32xf32>
    %c0_5 = arith.constant 0 : index
    %c0_6 = arith.constant 0 : index
    %c0_7 = arith.constant 0 : index
    %5 = vector.load %arg3[%c0_5, %c0_6, %c0_7] : memref<3x32x16xf32, #tpu.memory_space<vmem>>, vector<1x32x16xf32>
    %6 = vector.shape_cast %5 : vector<1x32x16xf32> to vector<32x16xf32>
    %cst_8 = arith.constant dense<0.000000e+00> : vector<2x16xf32>
    %7 = tpu.matmul %4, %6, %cst_8 {dimension_numbers = #tpu.dot_dimension_numbers<[1], [0], [0], [1], [0, 0, 1, 1], [], []>} : vector<2x32xf32>, vector<32x16xf32>, vector<2x16xf32> -> vector<2x16xf32>
    %c1 = arith.constant 1 : index
    %c0_9 = arith.constant 0 : index
    %c0_10 = arith.constant 0 : index
    %8 = vector.load %arg2[%c1, %c0_9, %c0_10] : memref<3x2x4xf32, #tpu.memory_space<vmem>>, vector<1x2x4xf32>
    %9 = vector.shape_cast %8 : vector<1x2x4xf32> to vector<2x4xf32>
    %cst_11 = arith.constant dense<0.000000e+00> : vector<2x32xf32>
    %10 = tpu.matmul %9, %1, %cst_11 {dimension_numbers = #tpu.dot_dimension_numbers<[1], [0], [0], [1], [0, 0, 1, 1], [], []>} : vector<2x4xf32>, vector<4x32xf32>, vector<2x32xf32> -> vector<2x32xf32>
    %c1_12 = arith.constant 1 : index
    %c0_13 = arith.constant 0 : index
    %c0_14 = arith.constant 0 : index
    %11 = vector.load %arg3[%c1_12, %c0_13, %c0_14] : memref<3x32x16xf32, #tpu.memory_space<vmem>>, vector<1x32x16xf32>
    %12 = vector.shape_cast %11 : vector<1x32x16xf32> to vector<32x16xf32>
    %cst_15 = arith.constant dense<0.000000e+00> : vector<2x16xf32>
    %13 = tpu.matmul %10, %12, %cst_15 {dimension_numbers = #tpu.dot_dimension_numbers<[1], [0], [0], [1], [0, 0, 1, 1], [], []>} : vector<2x32xf32>, vector<32x16xf32>, vector<2x16xf32> -> vector<2x16xf32>
    %14 = arith.addf %7, %13 : vector<2x16xf32>
    %c2 = arith.constant 2 : index
    %c0_16 = arith.constant 0 : index
    %c0_17 = arith.constant 0 : index
    %15 = vector.load %arg2[%c2, %c0_16, %c0_17] : memref<3x2x4xf32, #tpu.memory_space<vmem>>, vector<1x2x4xf32>
    %16 = vector.shape_cast %15 : vector<1x2x4xf32> to vector<2x4xf32>
    %cst_18 = arith.constant dense<0.000000e+00> : vector<2x32xf32>
    %17 = tpu.matmul %16, %1, %cst_18 {dimension_numbers = #tpu.dot_dimension_numbers<[1], [0], [0], [1], [0, 0, 1, 1], [], []>} : vector<2x4xf32>, vector<4x32xf32>, vector<2x32xf32> -> vector<2x32xf32>
    %c2_19 = arith.constant 2 : index
    %c0_20 = arith.constant 0 : index
    %c0_21 = arith.constant 0 : index
    %18 = vector.load %arg3[%c2_19, %c0_20, %c0_21] : memref<3x32x16xf32, #tpu.memory_space<vmem>>, vector<1x32x16xf32>
    %19 = vector.shape_cast %18 : vector<1x32x16xf32> to vector<32x16xf32>
    %cst_22 = arith.constant dense<0.000000e+00> : vector<2x16xf32>
    %20 = tpu.matmul %17, %19, %cst_22 {dimension_numbers = #tpu.dot_dimension_numbers<[1], [0], [0], [1], [0, 0, 1, 1], [], []>} : vector<2x32xf32>, vector<32x16xf32>, vector<2x16xf32> -> vector<2x16xf32>
    %21 = arith.addf %14, %20 : vector<2x16xf32>
    %c0_23 = arith.constant 0 : index
    %c0_24 = arith.constant 0 : index
    %22 = vector.load %arg4[%c0_23, %c0_24] : memref<1x16xf32, #tpu.memory_space<vmem>>, vector<1x16xf32>
    %23 = vector.broadcast %22 : vector<1x16xf32> to vector<2x16xf32>
    %24 = arith.addf %21, %23 : vector<2x16xf32>
    %cst_25 = arith.constant 0.000000e+00 : f32
    %25 = vector.broadcast %cst_25 : f32 to vector<2x16xf32>
    %26 = arith.maximumf %24, %25 : vector<2x16xf32>
    %c0_26 = arith.constant 0 : index
    %c0_27 = arith.constant 0 : index
    %c0_28 = arith.constant 0 : index
    %27 = vector.load %arg5[%c0_26, %c0_27, %c0_28] : memref<1x2x16xf32, #tpu.memory_space<vmem>>, vector<1x2x16xf32>
    %28 = vector.shape_cast %27 : vector<1x2x16xf32> to vector<2x16xf32>
    %29 = vector.shape_cast %26 : vector<2x16xf32> to vector<1x2x16xf32>
    tpu.vector_store %arg5[%c0_26, %c0_27, %c0_28], %29 {strides = array<i32>} : memref<1x2x16xf32, #tpu.memory_space<vmem>>, vector<1x2x16xf32>,
    return
  }
  func.func @transform_0(%arg0: i32) -> (i32, i32, i32) {
    %c0_i32 = arith.constant 0 : i32
    %c0_i32_0 = arith.constant 0 : i32
    %c0_i32_1 = arith.constant 0 : i32
    return %arg0, %c0_i32, %c0_i32_0 : i32, i32, i32
  }
  func.func @transform_1(%arg0: i32) -> (i32, i32, i32) {
    %c0_i32 = arith.constant 0 : i32
    %c0_i32_0 = arith.constant 0 : i32
    %c0_i32_1 = arith.constant 0 : i32
    %c0_i32_2 = arith.constant 0 : i32
    return %c0_i32, %c0_i32_0, %c0_i32_1 : i32, i32, i32
  }
  func.func @transform_2(%arg0: i32) -> (i32, i32, i32) {
    %c0_i32 = arith.constant 0 : i32
    %c0_i32_0 = arith.constant 0 : i32
    %c0_i32_1 = arith.constant 0 : i32
    %c0_i32_2 = arith.constant 0 : i32
    return %c0_i32, %c0_i32_0, %c0_i32_1 : i32, i32, i32
  }
  func.func @transform_3(%arg0: i32) -> (i32, i32) {
    %c0_i32 = arith.constant 0 : i32
    %c0_i32_0 = arith.constant 0 : i32
    %c0_i32_1 = arith.constant 0 : i32
    return %c0_i32, %c0_i32_0 : i32, i32
  }
  func.func @transform_4(%arg0: i32) -> (i32, i32, i32) {
    %c0_i32 = arith.constant 0 : i32
    %c0_i32_0 = arith.constant 0 : i32
    %c0_i32_1 = arith.constant 0 : i32
    return %arg0, %c0_i32, %c0_i32_0 : i32, i32, i32
  }
}

module attributes {stable_mosaic.version = 11 : i64} {
  func.func @kernel(%arg0: i32, %arg1: memref<1x4x32xf32, #tpu.memory_space<vmem>>, %arg2: memref<1x2x16xf32, #tpu.memory_space<vmem>>, %arg3: memref<4x2xf32, #tpu.memory_space<vmem>>, %arg4: memref<16x32xf32, #tpu.memory_space<vmem>>, %arg5: memref<3x4x4xf32, #tpu.memory_space<vmem>>, %arg6: memref<3x32x32xf32, #tpu.memory_space<vmem>>, %arg7: memref<1x32xf32, #tpu.memory_space<vmem>>, %arg8: memref<1x4x32xf32, #tpu.memory_space<vmem>>) attributes {dimension_semantics = [#tpu.dimension_semantics<parallel>], iteration_bounds = array<i64: 2>, scalar_prefetch = 0 : i64, scratch_operands = 0 : i64, tpu.core_type = #tpu.core_type<tc>, window_params = [{transform_indices = @transform_0, window_bounds = array<i64: 1, 4, 32>}, {transform_indices = @transform_1, window_bounds = array<i64: 1, 2, 16>}, {pipeline_mode = #tpu.pipeline_mode<synchronous>, transform_indices = @transform_2, window_bounds = array<i64: 4, 2>}, {pipeline_mode = #tpu.pipeline_mode<synchronous>, transform_indices = @transform_3, window_bounds = array<i64: 16, 32>}, {pipeline_mode = #tpu.pipeline_mode<synchronous>, transform_indices = @transform_4, window_bounds = array<i64: 3, 4, 4>}, {pipeline_mode = #tpu.pipeline_mode<synchronous>, transform_indices = @transform_5, window_bounds = array<i64: 3, 32, 32>}, {pipeline_mode = #tpu.pipeline_mode<synchronous>, transform_indices = @transform_6, window_bounds = array<i64: 1, 32>}, {transform_indices = @transform_7, window_bounds = array<i64: 1, 4, 32>}]} {
    %c0 = arith.constant 0 : index
    %c0_0 = arith.constant 0 : index
    %c0_1 = arith.constant 0 : index
    %0 = vector.load %arg1[%c0, %c0_0, %c0_1] : memref<1x4x32xf32, #tpu.memory_space<vmem>>, vector<1x4x32xf32>
    %1 = vector.shape_cast %0 : vector<1x4x32xf32> to vector<4x32xf32>
    %c0_2 = arith.constant 0 : index
    %c0_3 = arith.constant 0 : index
    %2 = vector.load %arg3[%c0_2, %c0_3] : memref<4x2xf32, #tpu.memory_space<vmem>>, vector<4x2xf32>
    %c0_4 = arith.constant 0 : index
    %c0_5 = arith.constant 0 : index
    %c0_6 = arith.constant 0 : index
    %3 = vector.load %arg2[%c0_4, %c0_5, %c0_6] : memref<1x2x16xf32, #tpu.memory_space<vmem>>, vector<1x2x16xf32>
    %4 = vector.shape_cast %3 : vector<1x2x16xf32> to vector<2x16xf32>
    %cst = arith.constant dense<0.000000e+00> : vector<4x16xf32>
    %5 = tpu.matmul %2, %4, %cst {dimension_numbers = #tpu.dot_dimension_numbers<[1], [0], [0], [1], [0, 0, 1, 1], [], []>} : vector<4x2xf32>, vector<2x16xf32>, vector<4x16xf32> -> vector<4x16xf32>
    %c0_7 = arith.constant 0 : index
    %c0_8 = arith.constant 0 : index
    %6 = vector.load %arg4[%c0_7, %c0_8] : memref<16x32xf32, #tpu.memory_space<vmem>>, vector<16x32xf32>
    %cst_9 = arith.constant dense<0.000000e+00> : vector<4x32xf32>
    %7 = tpu.matmul %5, %6, %cst_9 {dimension_numbers = #tpu.dot_dimension_numbers<[1], [0], [0], [1], [0, 0, 1, 1], [], []>} : vector<4x16xf32>, vector<16x32xf32>, vector<4x32xf32> -> vector<4x32xf32>
    %8 = arith.addf %1, %7 : vector<4x32xf32>
    %c0_10 = arith.constant 0 : index
    %c0_11 = arith.constant 0 : index
    %c0_12 = arith.constant 0 : index
    %9 = vector.load %arg5[%c0_10, %c0_11, %c0_12] : memref<3x4x4xf32, #tpu.memory_space<vmem>>, vector<1x4x4xf32>
    %10 = vector.shape_cast %9 : vector<1x4x4xf32> to vector<4x4xf32>
    %cst_13 = arith.constant dense<0.000000e+00> : vector<4x32xf32>
    %11 = tpu.matmul %10, %8, %cst_13 {dimension_numbers = #tpu.dot_dimension_numbers<[1], [0], [0], [1], [0, 0, 1, 1], [], []>} : vector<4x4xf32>, vector<4x32xf32>, vector<4x32xf32> -> vector<4x32xf32>
    %c0_14 = arith.constant 0 : index
    %c0_15 = arith.constant 0 : index
    %c0_16 = arith.constant 0 : index
    %12 = vector.load %arg6[%c0_14, %c0_15, %c0_16] : memref<3x32x32xf32, #tpu.memory_space<vmem>>, vector<1x32x32xf32>
    %13 = vector.shape_cast %12 : vector<1x32x32xf32> to vector<32x32xf32>
    %cst_17 = arith.constant dense<0.000000e+00> : vector<4x32xf32>
    %14 = tpu.matmul %11, %13, %cst_17 {dimension_numbers = #tpu.dot_dimension_numbers<[1], [0], [0], [1], [0, 0, 1, 1], [], []>} : vector<4x32xf32>, vector<32x32xf32>, vector<4x32xf32> -> vector<4x32xf32>
    %c1 = arith.constant 1 : index
    %c0_18 = arith.constant 0 : index
    %c0_19 = arith.constant 0 : index
    %15 = vector.load %arg5[%c1, %c0_18, %c0_19] : memref<3x4x4xf32, #tpu.memory_space<vmem>>, vector<1x4x4xf32>
    %16 = vector.shape_cast %15 : vector<1x4x4xf32> to vector<4x4xf32>
    %cst_20 = arith.constant dense<0.000000e+00> : vector<4x32xf32>
    %17 = tpu.matmul %16, %8, %cst_20 {dimension_numbers = #tpu.dot_dimension_numbers<[1], [0], [0], [1], [0, 0, 1, 1], [], []>} : vector<4x4xf32>, vector<4x32xf32>, vector<4x32xf32> -> vector<4x32xf32>
    %c1_21 = arith.constant 1 : index
    %c0_22 = arith.constant 0 : index
    %c0_23 = arith.constant 0 : index
    %18 = vector.load %arg6[%c1_21, %c0_22, %c0_23] : memref<3x32x32xf32, #tpu.memory_space<vmem>>, vector<1x32x32xf32>
    %19 = vector.shape_cast %18 : vector<1x32x32xf32> to vector<32x32xf32>
    %cst_24 = arith.constant dense<0.000000e+00> : vector<4x32xf32>
    %20 = tpu.matmul %17, %19, %cst_24 {dimension_numbers = #tpu.dot_dimension_numbers<[1], [0], [0], [1], [0, 0, 1, 1], [], []>} : vector<4x32xf32>, vector<32x32xf32>, vector<4x32xf32> -> vector<4x32xf32>
    %21 = arith.addf %14, %20 : vector<4x32xf32>
    %c2 = arith.constant 2 : index
    %c0_25 = arith.constant 0 : index
    %c0_26 = arith.constant 0 : index
    %22 = vector.load %arg5[%c2, %c0_25, %c0_26] : memref<3x4x4xf32, #tpu.memory_space<vmem>>, vector<1x4x4xf32>
    %23 = vector.shape_cast %22 : vector<1x4x4xf32> to vector<4x4xf32>
    %cst_27 = arith.constant dense<0.000000e+00> : vector<4x32xf32>
    %24 = tpu.matmul %23, %8, %cst_27 {dimension_numbers = #tpu.dot_dimension_numbers<[1], [0], [0], [1], [0, 0, 1, 1], [], []>} : vector<4x4xf32>, vector<4x32xf32>, vector<4x32xf32> -> vector<4x32xf32>
    %c2_28 = arith.constant 2 : index
    %c0_29 = arith.constant 0 : index
    %c0_30 = arith.constant 0 : index
    %25 = vector.load %arg6[%c2_28, %c0_29, %c0_30] : memref<3x32x32xf32, #tpu.memory_space<vmem>>, vector<1x32x32xf32>
    %26 = vector.shape_cast %25 : vector<1x32x32xf32> to vector<32x32xf32>
    %cst_31 = arith.constant dense<0.000000e+00> : vector<4x32xf32>
    %27 = tpu.matmul %24, %26, %cst_31 {dimension_numbers = #tpu.dot_dimension_numbers<[1], [0], [0], [1], [0, 0, 1, 1], [], []>} : vector<4x32xf32>, vector<32x32xf32>, vector<4x32xf32> -> vector<4x32xf32>
    %28 = arith.addf %21, %27 : vector<4x32xf32>
    %c0_32 = arith.constant 0 : index
    %c0_33 = arith.constant 0 : index
    %29 = vector.load %arg7[%c0_32, %c0_33] : memref<1x32xf32, #tpu.memory_space<vmem>>, vector<1x32xf32>
    %30 = vector.broadcast %29 : vector<1x32xf32> to vector<4x32xf32>
    %31 = arith.addf %28, %30 : vector<4x32xf32>
    %cst_34 = arith.constant 0.000000e+00 : f32
    %32 = vector.broadcast %cst_34 : f32 to vector<4x32xf32>
    %33 = arith.maximumf %31, %32 : vector<4x32xf32>
    %c0_35 = arith.constant 0 : index
    %c0_36 = arith.constant 0 : index
    %c0_37 = arith.constant 0 : index
    %34 = vector.load %arg8[%c0_35, %c0_36, %c0_37] : memref<1x4x32xf32, #tpu.memory_space<vmem>>, vector<1x4x32xf32>
    %35 = vector.shape_cast %34 : vector<1x4x32xf32> to vector<4x32xf32>
    %36 = vector.shape_cast %33 : vector<4x32xf32> to vector<1x4x32xf32>
    tpu.vector_store %arg8[%c0_35, %c0_36, %c0_37], %36 {strides = array<i32>} : memref<1x4x32xf32, #tpu.memory_space<vmem>>, vector<1x4x32xf32>,
    return
  }
  func.func @transform_0(%arg0: i32) -> (i32, i32, i32) {
    %c0_i32 = arith.constant 0 : i32
    %c0_i32_0 = arith.constant 0 : i32
    %c0_i32_1 = arith.constant 0 : i32
    return %arg0, %c0_i32, %c0_i32_0 : i32, i32, i32
  }
  func.func @transform_1(%arg0: i32) -> (i32, i32, i32) {
    %c0_i32 = arith.constant 0 : i32
    %c0_i32_0 = arith.constant 0 : i32
    %c0_i32_1 = arith.constant 0 : i32
    return %arg0, %c0_i32, %c0_i32_0 : i32, i32, i32
  }
  func.func @transform_2(%arg0: i32) -> (i32, i32) {
    %c0_i32 = arith.constant 0 : i32
    %c0_i32_0 = arith.constant 0 : i32
    %c0_i32_1 = arith.constant 0 : i32
    return %c0_i32, %c0_i32_0 : i32, i32
  }
  func.func @transform_3(%arg0: i32) -> (i32, i32) {
    %c0_i32 = arith.constant 0 : i32
    %c0_i32_0 = arith.constant 0 : i32
    %c0_i32_1 = arith.constant 0 : i32
    return %c0_i32, %c0_i32_0 : i32, i32
  }
  func.func @transform_4(%arg0: i32) -> (i32, i32, i32) {
    %c0_i32 = arith.constant 0 : i32
    %c0_i32_0 = arith.constant 0 : i32
    %c0_i32_1 = arith.constant 0 : i32
    %c0_i32_2 = arith.constant 0 : i32
    return %c0_i32, %c0_i32_0, %c0_i32_1 : i32, i32, i32
  }
  func.func @transform_5(%arg0: i32) -> (i32, i32, i32) {
    %c0_i32 = arith.constant 0 : i32
    %c0_i32_0 = arith.constant 0 : i32
    %c0_i32_1 = arith.constant 0 : i32
    %c0_i32_2 = arith.constant 0 : i32
    return %c0_i32, %c0_i32_0, %c0_i32_1 : i32, i32, i32
  }
  func.func @transform_6(%arg0: i32) -> (i32, i32) {
    %c0_i32 = arith.constant 0 : i32
    %c0_i32_0 = arith.constant 0 : i32
    %c0_i32_1 = arith.constant 0 : i32
    return %c0_i32, %c0_i32_0 : i32, i32
  }
  func.func @transform_7(%arg0: i32) -> (i32, i32, i32) {
    %c0_i32 = arith.constant 0 : i32
    %c0_i32_0 = arith.constant 0 : i32
    %c0_i32_1 = arith.constant 0 : i32
    return %arg0, %c0_i32, %c0_i32_0 : i32, i32, i32
  }
}

module attributes {stable_mosaic.version = 11 : i64} {
  func.func @kernel(%arg0: i32, %arg1: memref<1x2x16xf32, #tpu.memory_space<vmem>>, %arg2: memref<1x2x16xf32, #tpu.memory_space<vmem>>, %arg3: memref<2x2xf32, #tpu.memory_space<vmem>>, %arg4: memref<16x16xf32, #tpu.memory_space<vmem>>, %arg5: memref<3x2x2xf32, #tpu.memory_space<vmem>>, %arg6: memref<3x16x16xf32, #tpu.memory_space<vmem>>, %arg7: memref<1x16xf32, #tpu.memory_space<vmem>>, %arg8: memref<1x2x16xf32, #tpu.memory_space<vmem>>) attributes {dimension_semantics = [#tpu.dimension_semantics<parallel>], iteration_bounds = array<i64: 2>, scalar_prefetch = 0 : i64, scratch_operands = 0 : i64, tpu.core_type = #tpu.core_type<tc>, window_params = [{transform_indices = @transform_0, window_bounds = array<i64: 1, 2, 16>}, {transform_indices = @transform_1, window_bounds = array<i64: 1, 2, 16>}, {pipeline_mode = #tpu.pipeline_mode<synchronous>, transform_indices = @transform_2, window_bounds = array<i64: 2, 2>}, {pipeline_mode = #tpu.pipeline_mode<synchronous>, transform_indices = @transform_3, window_bounds = array<i64: 16, 16>}, {pipeline_mode = #tpu.pipeline_mode<synchronous>, transform_indices = @transform_4, window_bounds = array<i64: 3, 2, 2>}, {pipeline_mode = #tpu.pipeline_mode<synchronous>, transform_indices = @transform_5, window_bounds = array<i64: 3, 16, 16>}, {pipeline_mode = #tpu.pipeline_mode<synchronous>, transform_indices = @transform_6, window_bounds = array<i64: 1, 16>}, {transform_indices = @transform_7, window_bounds = array<i64: 1, 2, 16>}]} {
    %c0 = arith.constant 0 : index
    %c0_0 = arith.constant 0 : index
    %c0_1 = arith.constant 0 : index
    %0 = vector.load %arg1[%c0, %c0_0, %c0_1] : memref<1x2x16xf32, #tpu.memory_space<vmem>>, vector<1x2x16xf32>
    %1 = vector.shape_cast %0 : vector<1x2x16xf32> to vector<2x16xf32>
    %c0_2 = arith.constant 0 : index
    %c0_3 = arith.constant 0 : index
    %2 = vector.load %arg3[%c0_2, %c0_3] : memref<2x2xf32, #tpu.memory_space<vmem>>, vector<2x2xf32>
    %c0_4 = arith.constant 0 : index
    %c0_5 = arith.constant 0 : index
    %c0_6 = arith.constant 0 : index
    %3 = vector.load %arg2[%c0_4, %c0_5, %c0_6] : memref<1x2x16xf32, #tpu.memory_space<vmem>>, vector<1x2x16xf32>
    %4 = vector.shape_cast %3 : vector<1x2x16xf32> to vector<2x16xf32>
    %cst = arith.constant dense<0.000000e+00> : vector<2x16xf32>
    %5 = tpu.matmul %2, %4, %cst {dimension_numbers = #tpu.dot_dimension_numbers<[1], [0], [0], [1], [0, 0, 1, 1], [], []>} : vector<2x2xf32>, vector<2x16xf32>, vector<2x16xf32> -> vector<2x16xf32>
    %c0_7 = arith.constant 0 : index
    %c0_8 = arith.constant 0 : index
    %6 = vector.load %arg4[%c0_7, %c0_8] : memref<16x16xf32, #tpu.memory_space<vmem>>, vector<16x16xf32>
    %cst_9 = arith.constant dense<0.000000e+00> : vector<2x16xf32>
    %7 = tpu.matmul %5, %6, %cst_9 {dimension_numbers = #tpu.dot_dimension_numbers<[1], [0], [0], [1], [0, 0, 1, 1], [], []>} : vector<2x16xf32>, vector<16x16xf32>, vector<2x16xf32> -> vector<2x16xf32>
    %8 = arith.addf %1, %7 : vector<2x16xf32>
    %c0_10 = arith.constant 0 : index
    %c0_11 = arith.constant 0 : index
    %c0_12 = arith.constant 0 : index
    %9 = vector.load %arg5[%c0_10, %c0_11, %c0_12] : memref<3x2x2xf32, #tpu.memory_space<vmem>>, vector<1x2x2xf32>
    %10 = vector.shape_cast %9 : vector<1x2x2xf32> to vector<2x2xf32>
    %cst_13 = arith.constant dense<0.000000e+00> : vector<2x16xf32>
    %11 = tpu.matmul %10, %8, %cst_13 {dimension_numbers = #tpu.dot_dimension_numbers<[1], [0], [0], [1], [0, 0, 1, 1], [], []>} : vector<2x2xf32>, vector<2x16xf32>, vector<2x16xf32> -> vector<2x16xf32>
    %c0_14 = arith.constant 0 : index
    %c0_15 = arith.constant 0 : index
    %c0_16 = arith.constant 0 : index
    %12 = vector.load %arg6[%c0_14, %c0_15, %c0_16] : memref<3x16x16xf32, #tpu.memory_space<vmem>>, vector<1x16x16xf32>
    %13 = vector.shape_cast %12 : vector<1x16x16xf32> to vector<16x16xf32>
    %cst_17 = arith.constant dense<0.000000e+00> : vector<2x16xf32>
    %14 = tpu.matmul %11, %13, %cst_17 {dimension_numbers = #tpu.dot_dimension_numbers<[1], [0], [0], [1], [0, 0, 1, 1], [], []>} : vector<2x16xf32>, vector<16x16xf32>, vector<2x16xf32> -> vector<2x16xf32>
    %c1 = arith.constant 1 : index
    %c0_18 = arith.constant 0 : index
    %c0_19 = arith.constant 0 : index
    %15 = vector.load %arg5[%c1, %c0_18, %c0_19] : memref<3x2x2xf32, #tpu.memory_space<vmem>>, vector<1x2x2xf32>
    %16 = vector.shape_cast %15 : vector<1x2x2xf32> to vector<2x2xf32>
    %cst_20 = arith.constant dense<0.000000e+00> : vector<2x16xf32>
    %17 = tpu.matmul %16, %8, %cst_20 {dimension_numbers = #tpu.dot_dimension_numbers<[1], [0], [0], [1], [0, 0, 1, 1], [], []>} : vector<2x2xf32>, vector<2x16xf32>, vector<2x16xf32> -> vector<2x16xf32>
    %c1_21 = arith.constant 1 : index
    %c0_22 = arith.constant 0 : index
    %c0_23 = arith.constant 0 : index
    %18 = vector.load %arg6[%c1_21, %c0_22, %c0_23] : memref<3x16x16xf32, #tpu.memory_space<vmem>>, vector<1x16x16xf32>
    %19 = vector.shape_cast %18 : vector<1x16x16xf32> to vector<16x16xf32>
    %cst_24 = arith.constant dense<0.000000e+00> : vector<2x16xf32>
    %20 = tpu.matmul %17, %19, %cst_24 {dimension_numbers = #tpu.dot_dimension_numbers<[1], [0], [0], [1], [0, 0, 1, 1], [], []>} : vector<2x16xf32>, vector<16x16xf32>, vector<2x16xf32> -> vector<2x16xf32>
    %21 = arith.addf %14, %20 : vector<2x16xf32>
    %c2 = arith.constant 2 : index
    %c0_25 = arith.constant 0 : index
    %c0_26 = arith.constant 0 : index
    %22 = vector.load %arg5[%c2, %c0_25, %c0_26] : memref<3x2x2xf32, #tpu.memory_space<vmem>>, vector<1x2x2xf32>
    %23 = vector.shape_cast %22 : vector<1x2x2xf32> to vector<2x2xf32>
    %cst_27 = arith.constant dense<0.000000e+00> : vector<2x16xf32>
    %24 = tpu.matmul %23, %8, %cst_27 {dimension_numbers = #tpu.dot_dimension_numbers<[1], [0], [0], [1], [0, 0, 1, 1], [], []>} : vector<2x2xf32>, vector<2x16xf32>, vector<2x16xf32> -> vector<2x16xf32>
    %c2_28 = arith.constant 2 : index
    %c0_29 = arith.constant 0 : index
    %c0_30 = arith.constant 0 : index
    %25 = vector.load %arg6[%c2_28, %c0_29, %c0_30] : memref<3x16x16xf32, #tpu.memory_space<vmem>>, vector<1x16x16xf32>
    %26 = vector.shape_cast %25 : vector<1x16x16xf32> to vector<16x16xf32>
    %cst_31 = arith.constant dense<0.000000e+00> : vector<2x16xf32>
    %27 = tpu.matmul %24, %26, %cst_31 {dimension_numbers = #tpu.dot_dimension_numbers<[1], [0], [0], [1], [0, 0, 1, 1], [], []>} : vector<2x16xf32>, vector<16x16xf32>, vector<2x16xf32> -> vector<2x16xf32>
    %28 = arith.addf %21, %27 : vector<2x16xf32>
    %c0_32 = arith.constant 0 : index
    %c0_33 = arith.constant 0 : index
    %29 = vector.load %arg7[%c0_32, %c0_33] : memref<1x16xf32, #tpu.memory_space<vmem>>, vector<1x16xf32>
    %30 = vector.broadcast %29 : vector<1x16xf32> to vector<2x16xf32>
    %31 = arith.addf %28, %30 : vector<2x16xf32>
    %cst_34 = arith.constant 0.000000e+00 : f32
    %32 = vector.broadcast %cst_34 : f32 to vector<2x16xf32>
    %33 = arith.maximumf %31, %32 : vector<2x16xf32>
    %c0_35 = arith.constant 0 : index
    %c0_36 = arith.constant 0 : index
    %c0_37 = arith.constant 0 : index
    %34 = vector.load %arg8[%c0_35, %c0_36, %c0_37] : memref<1x2x16xf32, #tpu.memory_space<vmem>>, vector<1x2x16xf32>
    %35 = vector.shape_cast %34 : vector<1x2x16xf32> to vector<2x16xf32>
    %36 = vector.shape_cast %33 : vector<2x16xf32> to vector<1x2x16xf32>
    tpu.vector_store %arg8[%c0_35, %c0_36, %c0_37], %36 {strides = array<i32>} : memref<1x2x16xf32, #tpu.memory_space<vmem>>, vector<1x2x16xf32>,
    return
  }
  func.func @transform_0(%arg0: i32) -> (i32, i32, i32) {
    %c0_i32 = arith.constant 0 : i32
    %c0_i32_0 = arith.constant 0 : i32
    %c0_i32_1 = arith.constant 0 : i32
    return %arg0, %c0_i32, %c0_i32_0 : i32, i32, i32
  }
  func.func @transform_1(%arg0: i32) -> (i32, i32, i32) {
    %c0_i32 = arith.constant 0 : i32
    %c0_i32_0 = arith.constant 0 : i32
    %c0_i32_1 = arith.constant 0 : i32
    return %arg0, %c0_i32, %c0_i32_0 : i32, i32, i32
  }
  func.func @transform_2(%arg0: i32) -> (i32, i32) {
    %c0_i32 = arith.constant 0 : i32
    %c0_i32_0 = arith.constant 0 : i32
    %c0_i32_1 = arith.constant 0 : i32
    return %c0_i32, %c0_i32_0 : i32, i32
  }
  func.func @transform_3(%arg0: i32) -> (i32, i32) {
    %c0_i32 = arith.constant 0 : i32
    %c0_i32_0 = arith.constant 0 : i32
    %c0_i32_1 = arith.constant 0 : i32
    return %c0_i32, %c0_i32_0 : i32, i32
  }
  func.func @transform_4(%arg0: i32) -> (i32, i32, i32) {
    %c0_i32 = arith.constant 0 : i32
    %c0_i32_0 = arith.constant 0 : i32
    %c0_i32_1 = arith.constant 0 : i32
    %c0_i32_2 = arith.constant 0 : i32
    return %c0_i32, %c0_i32_0, %c0_i32_1 : i32, i32, i32
  }
  func.func @transform_5(%arg0: i32) -> (i32, i32, i32) {
    %c0_i32 = arith.constant 0 : i32
    %c0_i32_0 = arith.constant 0 : i32
    %c0_i32_1 = arith.constant 0 : i32
    %c0_i32_2 = arith.constant 0 : i32
    return %c0_i32, %c0_i32_0, %c0_i32_1 : i32, i32, i32
  }
  func.func @transform_6(%arg0: i32) -> (i32, i32) {
    %c0_i32 = arith.constant 0 : i32
    %c0_i32_0 = arith.constant 0 : i32
    %c0_i32_1 = arith.constant 0 : i32
    return %c0_i32, %c0_i32_0 : i32, i32
  }
  func.func @transform_7(%arg0: i32) -> (i32, i32, i32) {
    %c0_i32 = arith.constant 0 : i32
    %c0_i32_0 = arith.constant 0 : i32
    %c0_i32_1 = arith.constant 0 : i32
    return %arg0, %c0_i32, %c0_i32_0 : i32, i32, i32
  }
}

module attributes {stable_mosaic.version = 11 : i64} {
  func.func @kernel(%arg0: i32, %arg1: memref<1x8x64xf32, #tpu.memory_space<vmem>>, %arg2: memref<1x4x32xf32, #tpu.memory_space<vmem>>, %arg3: memref<8x4xf32, #tpu.memory_space<vmem>>, %arg4: memref<32x64xf32, #tpu.memory_space<vmem>>, %arg5: memref<3x8x8xf32, #tpu.memory_space<vmem>>, %arg6: memref<3x64x64xf32, #tpu.memory_space<vmem>>, %arg7: memref<1x64xf32, #tpu.memory_space<vmem>>, %arg8: memref<1x8x64xf32, #tpu.memory_space<vmem>>) attributes {dimension_semantics = [#tpu.dimension_semantics<parallel>], iteration_bounds = array<i64: 2>, scalar_prefetch = 0 : i64, scratch_operands = 0 : i64, tpu.core_type = #tpu.core_type<tc>, window_params = [{transform_indices = @transform_0, window_bounds = array<i64: 1, 8, 64>}, {transform_indices = @transform_1, window_bounds = array<i64: 1, 4, 32>}, {pipeline_mode = #tpu.pipeline_mode<synchronous>, transform_indices = @transform_2, window_bounds = array<i64: 8, 4>}, {pipeline_mode = #tpu.pipeline_mode<synchronous>, transform_indices = @transform_3, window_bounds = array<i64: 32, 64>}, {pipeline_mode = #tpu.pipeline_mode<synchronous>, transform_indices = @transform_4, window_bounds = array<i64: 3, 8, 8>}, {pipeline_mode = #tpu.pipeline_mode<synchronous>, transform_indices = @transform_5, window_bounds = array<i64: 3, 64, 64>}, {pipeline_mode = #tpu.pipeline_mode<synchronous>, transform_indices = @transform_6, window_bounds = array<i64: 1, 64>}, {transform_indices = @transform_7, window_bounds = array<i64: 1, 8, 64>}]} {
    %c0 = arith.constant 0 : index
    %c0_0 = arith.constant 0 : index
    %c0_1 = arith.constant 0 : index
    %0 = vector.load %arg1[%c0, %c0_0, %c0_1] : memref<1x8x64xf32, #tpu.memory_space<vmem>>, vector<1x8x64xf32>
    %1 = vector.shape_cast %0 : vector<1x8x64xf32> to vector<8x64xf32>
    %c0_2 = arith.constant 0 : index
    %c0_3 = arith.constant 0 : index
    %2 = vector.load %arg3[%c0_2, %c0_3] : memref<8x4xf32, #tpu.memory_space<vmem>>, vector<8x4xf32>
    %c0_4 = arith.constant 0 : index
    %c0_5 = arith.constant 0 : index
    %c0_6 = arith.constant 0 : index
    %3 = vector.load %arg2[%c0_4, %c0_5, %c0_6] : memref<1x4x32xf32, #tpu.memory_space<vmem>>, vector<1x4x32xf32>
    %4 = vector.shape_cast %3 : vector<1x4x32xf32> to vector<4x32xf32>
    %cst = arith.constant dense<0.000000e+00> : vector<8x32xf32>
    %5 = tpu.matmul %2, %4, %cst {dimension_numbers = #tpu.dot_dimension_numbers<[1], [0], [0], [1], [0, 0, 1, 1], [], []>} : vector<8x4xf32>, vector<4x32xf32>, vector<8x32xf32> -> vector<8x32xf32>
    %c0_7 = arith.constant 0 : index
    %c0_8 = arith.constant 0 : index
    %6 = vector.load %arg4[%c0_7, %c0_8] : memref<32x64xf32, #tpu.memory_space<vmem>>, vector<32x64xf32>
    %cst_9 = arith.constant dense<0.000000e+00> : vector<8x64xf32>
    %7 = tpu.matmul %5, %6, %cst_9 {dimension_numbers = #tpu.dot_dimension_numbers<[1], [0], [0], [1], [0, 0, 1, 1], [], []>} : vector<8x32xf32>, vector<32x64xf32>, vector<8x64xf32> -> vector<8x64xf32>
    %8 = arith.addf %1, %7 : vector<8x64xf32>
    %c0_10 = arith.constant 0 : index
    %c0_11 = arith.constant 0 : index
    %c0_12 = arith.constant 0 : index
    %9 = vector.load %arg5[%c0_10, %c0_11, %c0_12] : memref<3x8x8xf32, #tpu.memory_space<vmem>>, vector<1x8x8xf32>
    %10 = vector.shape_cast %9 : vector<1x8x8xf32> to vector<8x8xf32>
    %cst_13 = arith.constant dense<0.000000e+00> : vector<8x64xf32>
    %11 = tpu.matmul %10, %8, %cst_13 {dimension_numbers = #tpu.dot_dimension_numbers<[1], [0], [0], [1], [0, 0, 1, 1], [], []>} : vector<8x8xf32>, vector<8x64xf32>, vector<8x64xf32> -> vector<8x64xf32>
    %c0_14 = arith.constant 0 : index
    %c0_15 = arith.constant 0 : index
    %c0_16 = arith.constant 0 : index
    %12 = vector.load %arg6[%c0_14, %c0_15, %c0_16] : memref<3x64x64xf32, #tpu.memory_space<vmem>>, vector<1x64x64xf32>
    %13 = vector.shape_cast %12 : vector<1x64x64xf32> to vector<64x64xf32>
    %cst_17 = arith.constant dense<0.000000e+00> : vector<8x64xf32>
    %14 = tpu.matmul %11, %13, %cst_17 {dimension_numbers = #tpu.dot_dimension_numbers<[1], [0], [0], [1], [0, 0, 1, 1], [], []>} : vector<8x64xf32>, vector<64x64xf32>, vector<8x64xf32> -> vector<8x64xf32>
    %c1 = arith.constant 1 : index
    %c0_18 = arith.constant 0 : index
    %c0_19 = arith.constant 0 : index
    %15 = vector.load %arg5[%c1, %c0_18, %c0_19] : memref<3x8x8xf32, #tpu.memory_space<vmem>>, vector<1x8x8xf32>
    %16 = vector.shape_cast %15 : vector<1x8x8xf32> to vector<8x8xf32>
    %cst_20 = arith.constant dense<0.000000e+00> : vector<8x64xf32>
    %17 = tpu.matmul %16, %8, %cst_20 {dimension_numbers = #tpu.dot_dimension_numbers<[1], [0], [0], [1], [0, 0, 1, 1], [], []>} : vector<8x8xf32>, vector<8x64xf32>, vector<8x64xf32> -> vector<8x64xf32>
    %c1_21 = arith.constant 1 : index
    %c0_22 = arith.constant 0 : index
    %c0_23 = arith.constant 0 : index
    %18 = vector.load %arg6[%c1_21, %c0_22, %c0_23] : memref<3x64x64xf32, #tpu.memory_space<vmem>>, vector<1x64x64xf32>
    %19 = vector.shape_cast %18 : vector<1x64x64xf32> to vector<64x64xf32>
    %cst_24 = arith.constant dense<0.000000e+00> : vector<8x64xf32>
    %20 = tpu.matmul %17, %19, %cst_24 {dimension_numbers = #tpu.dot_dimension_numbers<[1], [0], [0], [1], [0, 0, 1, 1], [], []>} : vector<8x64xf32>, vector<64x64xf32>, vector<8x64xf32> -> vector<8x64xf32>
    %21 = arith.addf %14, %20 : vector<8x64xf32>
    %c2 = arith.constant 2 : index
    %c0_25 = arith.constant 0 : index
    %c0_26 = arith.constant 0 : index
    %22 = vector.load %arg5[%c2, %c0_25, %c0_26] : memref<3x8x8xf32, #tpu.memory_space<vmem>>, vector<1x8x8xf32>
    %23 = vector.shape_cast %22 : vector<1x8x8xf32> to vector<8x8xf32>
    %cst_27 = arith.constant dense<0.000000e+00> : vector<8x64xf32>
    %24 = tpu.matmul %23, %8, %cst_27 {dimension_numbers = #tpu.dot_dimension_numbers<[1], [0], [0], [1], [0, 0, 1, 1], [], []>} : vector<8x8xf32>, vector<8x64xf32>, vector<8x64xf32> -> vector<8x64xf32>
    %c2_28 = arith.constant 2 : index
    %c0_29 = arith.constant 0 : index
    %c0_30 = arith.constant 0 : index
    %25 = vector.load %arg6[%c2_28, %c0_29, %c0_30] : memref<3x64x64xf32, #tpu.memory_space<vmem>>, vector<1x64x64xf32>
    %26 = vector.shape_cast %25 : vector<1x64x64xf32> to vector<64x64xf32>
    %cst_31 = arith.constant dense<0.000000e+00> : vector<8x64xf32>
    %27 = tpu.matmul %24, %26, %cst_31 {dimension_numbers = #tpu.dot_dimension_numbers<[1], [0], [0], [1], [0, 0, 1, 1], [], []>} : vector<8x64xf32>, vector<64x64xf32>, vector<8x64xf32> -> vector<8x64xf32>
    %28 = arith.addf %21, %27 : vector<8x64xf32>
    %c0_32 = arith.constant 0 : index
    %c0_33 = arith.constant 0 : index
    %29 = vector.load %arg7[%c0_32, %c0_33] : memref<1x64xf32, #tpu.memory_space<vmem>>, vector<1x64xf32>
    %30 = vector.broadcast %29 : vector<1x64xf32> to vector<8x64xf32>
    %31 = arith.addf %28, %30 : vector<8x64xf32>
    %cst_34 = arith.constant 0.000000e+00 : f32
    %32 = vector.broadcast %cst_34 : f32 to vector<8x64xf32>
    %33 = arith.maximumf %31, %32 : vector<8x64xf32>
    %c0_35 = arith.constant 0 : index
    %c0_36 = arith.constant 0 : index
    %c0_37 = arith.constant 0 : index
    %34 = vector.load %arg8[%c0_35, %c0_36, %c0_37] : memref<1x8x64xf32, #tpu.memory_space<vmem>>, vector<1x8x64xf32>
    %35 = vector.shape_cast %34 : vector<1x8x64xf32> to vector<8x64xf32>
    %36 = vector.shape_cast %33 : vector<8x64xf32> to vector<1x8x64xf32>
    tpu.vector_store %arg8[%c0_35, %c0_36, %c0_37], %36 {strides = array<i32>} : memref<1x8x64xf32, #tpu.memory_space<vmem>>, vector<1x8x64xf32>,
    return
  }
  func.func @transform_0(%arg0: i32) -> (i32, i32, i32) {
    %c0_i32 = arith.constant 0 : i32
    %c0_i32_0 = arith.constant 0 : i32
    %c0_i32_1 = arith.constant 0 : i32
    return %arg0, %c0_i32, %c0_i32_0 : i32, i32, i32
  }
  func.func @transform_1(%arg0: i32) -> (i32, i32, i32) {
    %c0_i32 = arith.constant 0 : i32
    %c0_i32_0 = arith.constant 0 : i32
    %c0_i32_1 = arith.constant 0 : i32
    return %arg0, %c0_i32, %c0_i32_0 : i32, i32, i32
  }
  func.func @transform_2(%arg0: i32) -> (i32, i32) {
    %c0_i32 = arith.constant 0 : i32
    %c0_i32_0 = arith.constant 0 : i32
    %c0_i32_1 = arith.constant 0 : i32
    return %c0_i32, %c0_i32_0 : i32, i32
  }
  func.func @transform_3(%arg0: i32) -> (i32, i32) {
    %c0_i32 = arith.constant 0 : i32
    %c0_i32_0 = arith.constant 0 : i32
    %c0_i32_1 = arith.constant 0 : i32
    return %c0_i32, %c0_i32_0 : i32, i32
  }
  func.func @transform_4(%arg0: i32) -> (i32, i32, i32) {
    %c0_i32 = arith.constant 0 : i32
    %c0_i32_0 = arith.constant 0 : i32
    %c0_i32_1 = arith.constant 0 : i32
    %c0_i32_2 = arith.constant 0 : i32
    return %c0_i32, %c0_i32_0, %c0_i32_1 : i32, i32, i32
  }
  func.func @transform_5(%arg0: i32) -> (i32, i32, i32) {
    %c0_i32 = arith.constant 0 : i32
    %c0_i32_0 = arith.constant 0 : i32
    %c0_i32_1 = arith.constant 0 : i32
    %c0_i32_2 = arith.constant 0 : i32
    return %c0_i32, %c0_i32_0, %c0_i32_1 : i32, i32, i32
  }
  func.func @transform_6(%arg0: i32) -> (i32, i32) {
    %c0_i32 = arith.constant 0 : i32
    %c0_i32_0 = arith.constant 0 : i32
    %c0_i32_1 = arith.constant 0 : i32
    return %c0_i32, %c0_i32_0 : i32, i32
  }
  func.func @transform_7(%arg0: i32) -> (i32, i32, i32) {
    %c0_i32 = arith.constant 0 : i32
    %c0_i32_0 = arith.constant 0 : i32
    %c0_i32_1 = arith.constant 0 : i32
    return %arg0, %c0_i32, %c0_i32_0 : i32, i32, i32
  }
}

module attributes {stable_mosaic.version = 11 : i64} {
  func.func @kernel(%arg0: i32, %arg1: memref<1x16x128xf32, #tpu.memory_space<vmem>>, %arg2: memref<1x8x64xf32, #tpu.memory_space<vmem>>, %arg3: memref<16x8xf32, #tpu.memory_space<vmem>>, %arg4: memref<64x128xf32, #tpu.memory_space<vmem>>, %arg5: memref<3x16x16xf32, #tpu.memory_space<vmem>>, %arg6: memref<3x128x128xf32, #tpu.memory_space<vmem>>, %arg7: memref<1x128xf32, #tpu.memory_space<vmem>>, %arg8: memref<1x16x128xf32, #tpu.memory_space<vmem>>) attributes {dimension_semantics = [#tpu.dimension_semantics<parallel>], iteration_bounds = array<i64: 2>, scalar_prefetch = 0 : i64, scratch_operands = 0 : i64, tpu.core_type = #tpu.core_type<tc>, window_params = [{transform_indices = @transform_0, window_bounds = array<i64: 1, 16, 128>}, {transform_indices = @transform_1, window_bounds = array<i64: 1, 8, 64>}, {pipeline_mode = #tpu.pipeline_mode<synchronous>, transform_indices = @transform_2, window_bounds = array<i64: 16, 8>}, {pipeline_mode = #tpu.pipeline_mode<synchronous>, transform_indices = @transform_3, window_bounds = array<i64: 64, 128>}, {pipeline_mode = #tpu.pipeline_mode<synchronous>, transform_indices = @transform_4, window_bounds = array<i64: 3, 16, 16>}, {pipeline_mode = #tpu.pipeline_mode<synchronous>, transform_indices = @transform_5, window_bounds = array<i64: 3, 128, 128>}, {pipeline_mode = #tpu.pipeline_mode<synchronous>, transform_indices = @transform_6, window_bounds = array<i64: 1, 128>}, {transform_indices = @transform_7, window_bounds = array<i64: 1, 16, 128>}]} {
    %c0 = arith.constant 0 : index
    %c0_0 = arith.constant 0 : index
    %c0_1 = arith.constant 0 : index
    %0 = vector.load %arg1[%c0, %c0_0, %c0_1] : memref<1x16x128xf32, #tpu.memory_space<vmem>>, vector<1x16x128xf32>
    %1 = vector.shape_cast %0 : vector<1x16x128xf32> to vector<16x128xf32>
    %c0_2 = arith.constant 0 : index
    %c0_3 = arith.constant 0 : index
    %2 = vector.load %arg3[%c0_2, %c0_3] : memref<16x8xf32, #tpu.memory_space<vmem>>, vector<16x8xf32>
    %c0_4 = arith.constant 0 : index
    %c0_5 = arith.constant 0 : index
    %c0_6 = arith.constant 0 : index
    %3 = vector.load %arg2[%c0_4, %c0_5, %c0_6] : memref<1x8x64xf32, #tpu.memory_space<vmem>>, vector<1x8x64xf32>
    %4 = vector.shape_cast %3 : vector<1x8x64xf32> to vector<8x64xf32>
    %cst = arith.constant dense<0.000000e+00> : vector<16x64xf32>
    %5 = tpu.matmul %2, %4, %cst {dimension_numbers = #tpu.dot_dimension_numbers<[1], [0], [0], [1], [0, 0, 1, 1], [], []>} : vector<16x8xf32>, vector<8x64xf32>, vector<16x64xf32> -> vector<16x64xf32>
    %c0_7 = arith.constant 0 : index
    %c0_8 = arith.constant 0 : index
    %6 = vector.load %arg4[%c0_7, %c0_8] : memref<64x128xf32, #tpu.memory_space<vmem>>, vector<64x128xf32>
    %cst_9 = arith.constant dense<0.000000e+00> : vector<16x128xf32>
    %7 = tpu.matmul %5, %6, %cst_9 {dimension_numbers = #tpu.dot_dimension_numbers<[1], [0], [0], [1], [0, 0, 1, 1], [], []>} : vector<16x64xf32>, vector<64x128xf32>, vector<16x128xf32> -> vector<16x128xf32>
    %8 = arith.addf %1, %7 : vector<16x128xf32>
    %c0_10 = arith.constant 0 : index
    %c0_11 = arith.constant 0 : index
    %c0_12 = arith.constant 0 : index
    %9 = vector.load %arg5[%c0_10, %c0_11, %c0_12] : memref<3x16x16xf32, #tpu.memory_space<vmem>>, vector<1x16x16xf32>
    %10 = vector.shape_cast %9 : vector<1x16x16xf32> to vector<16x16xf32>
    %cst_13 = arith.constant dense<0.000000e+00> : vector<16x128xf32>
    %11 = tpu.matmul %10, %8, %cst_13 {dimension_numbers = #tpu.dot_dimension_numbers<[1], [0], [0], [1], [0, 0, 1, 1], [], []>} : vector<16x16xf32>, vector<16x128xf32>, vector<16x128xf32> -> vector<16x128xf32>
    %c0_14 = arith.constant 0 : index
    %c0_15 = arith.constant 0 : index
    %c0_16 = arith.constant 0 : index
    %12 = vector.load %arg6[%c0_14, %c0_15, %c0_16] : memref<3x128x128xf32, #tpu.memory_space<vmem>>, vector<1x128x128xf32>
    %13 = vector.shape_cast %12 : vector<1x128x128xf32> to vector<128x128xf32>
    %cst_17 = arith.constant dense<0.000000e+00> : vector<16x128xf32>
    %14 = tpu.matmul %11, %13, %cst_17 {dimension_numbers = #tpu.dot_dimension_numbers<[1], [0], [0], [1], [0, 0, 1, 1], [], []>} : vector<16x128xf32>, vector<128x128xf32>, vector<16x128xf32> -> vector<16x128xf32>
    %c1 = arith.constant 1 : index
    %c0_18 = arith.constant 0 : index
    %c0_19 = arith.constant 0 : index
    %15 = vector.load %arg5[%c1, %c0_18, %c0_19] : memref<3x16x16xf32, #tpu.memory_space<vmem>>, vector<1x16x16xf32>
    %16 = vector.shape_cast %15 : vector<1x16x16xf32> to vector<16x16xf32>
    %cst_20 = arith.constant dense<0.000000e+00> : vector<16x128xf32>
    %17 = tpu.matmul %16, %8, %cst_20 {dimension_numbers = #tpu.dot_dimension_numbers<[1], [0], [0], [1], [0, 0, 1, 1], [], []>} : vector<16x16xf32>, vector<16x128xf32>, vector<16x128xf32> -> vector<16x128xf32>
    %c1_21 = arith.constant 1 : index
    %c0_22 = arith.constant 0 : index
    %c0_23 = arith.constant 0 : index
    %18 = vector.load %arg6[%c1_21, %c0_22, %c0_23] : memref<3x128x128xf32, #tpu.memory_space<vmem>>, vector<1x128x128xf32>
    %19 = vector.shape_cast %18 : vector<1x128x128xf32> to vector<128x128xf32>
    %cst_24 = arith.constant dense<0.000000e+00> : vector<16x128xf32>
    %20 = tpu.matmul %17, %19, %cst_24 {dimension_numbers = #tpu.dot_dimension_numbers<[1], [0], [0], [1], [0, 0, 1, 1], [], []>} : vector<16x128xf32>, vector<128x128xf32>, vector<16x128xf32> -> vector<16x128xf32>
    %21 = arith.addf %14, %20 : vector<16x128xf32>
    %c2 = arith.constant 2 : index
    %c0_25 = arith.constant 0 : index
    %c0_26 = arith.constant 0 : index
    %22 = vector.load %arg5[%c2, %c0_25, %c0_26] : memref<3x16x16xf32, #tpu.memory_space<vmem>>, vector<1x16x16xf32>
    %23 = vector.shape_cast %22 : vector<1x16x16xf32> to vector<16x16xf32>
    %cst_27 = arith.constant dense<0.000000e+00> : vector<16x128xf32>
    %24 = tpu.matmul %23, %8, %cst_27 {dimension_numbers = #tpu.dot_dimension_numbers<[1], [0], [0], [1], [0, 0, 1, 1], [], []>} : vector<16x16xf32>, vector<16x128xf32>, vector<16x128xf32> -> vector<16x128xf32>
    %c2_28 = arith.constant 2 : index
    %c0_29 = arith.constant 0 : index
    %c0_30 = arith.constant 0 : index
    %25 = vector.load %arg6[%c2_28, %c0_29, %c0_30] : memref<3x128x128xf32, #tpu.memory_space<vmem>>, vector<1x128x128xf32>
    %26 = vector.shape_cast %25 : vector<1x128x128xf32> to vector<128x128xf32>
    %cst_31 = arith.constant dense<0.000000e+00> : vector<16x128xf32>
    %27 = tpu.matmul %24, %26, %cst_31 {dimension_numbers = #tpu.dot_dimension_numbers<[1], [0], [0], [1], [0, 0, 1, 1], [], []>} : vector<16x128xf32>, vector<128x128xf32>, vector<16x128xf32> -> vector<16x128xf32>
    %28 = arith.addf %21, %27 : vector<16x128xf32>
    %c0_32 = arith.constant 0 : index
    %c0_33 = arith.constant 0 : index
    %29 = vector.load %arg7[%c0_32, %c0_33] : memref<1x128xf32, #tpu.memory_space<vmem>>, vector<1x128xf32>
    %30 = vector.broadcast %29 : vector<1x128xf32> to vector<16x128xf32>
    %31 = arith.addf %28, %30 : vector<16x128xf32>
    %cst_34 = arith.constant 0.000000e+00 : f32
    %32 = vector.broadcast %cst_34 : f32 to vector<16x128xf32>
    %33 = arith.maximumf %31, %32 : vector<16x128xf32>
    %c0_35 = arith.constant 0 : index
    %c0_36 = arith.constant 0 : index
    %c0_37 = arith.constant 0 : index
    %34 = vector.load %arg8[%c0_35, %c0_36, %c0_37] : memref<1x16x128xf32, #tpu.memory_space<vmem>>, vector<1x16x128xf32>
    %35 = vector.shape_cast %34 : vector<1x16x128xf32> to vector<16x128xf32>
    %36 = vector.shape_cast %33 : vector<16x128xf32> to vector<1x16x128xf32>
    tpu.vector_store %arg8[%c0_35, %c0_36, %c0_37], %36 {strides = array<i32>} : memref<1x16x128xf32, #tpu.memory_space<vmem>>, vector<1x16x128xf32>,
    return
  }
  func.func @transform_0(%arg0: i32) -> (i32, i32, i32) {
    %c0_i32 = arith.constant 0 : i32
    %c0_i32_0 = arith.constant 0 : i32
    %c0_i32_1 = arith.constant 0 : i32
    return %arg0, %c0_i32, %c0_i32_0 : i32, i32, i32
  }
  func.func @transform_1(%arg0: i32) -> (i32, i32, i32) {
    %c0_i32 = arith.constant 0 : i32
    %c0_i32_0 = arith.constant 0 : i32
    %c0_i32_1 = arith.constant 0 : i32
    return %arg0, %c0_i32, %c0_i32_0 : i32, i32, i32
  }
  func.func @transform_2(%arg0: i32) -> (i32, i32) {
    %c0_i32 = arith.constant 0 : i32
    %c0_i32_0 = arith.constant 0 : i32
    %c0_i32_1 = arith.constant 0 : i32
    return %c0_i32, %c0_i32_0 : i32, i32
  }
  func.func @transform_3(%arg0: i32) -> (i32, i32) {
    %c0_i32 = arith.constant 0 : i32
    %c0_i32_0 = arith.constant 0 : i32
    %c0_i32_1 = arith.constant 0 : i32
    return %c0_i32, %c0_i32_0 : i32, i32
  }
  func.func @transform_4(%arg0: i32) -> (i32, i32, i32) {
    %c0_i32 = arith.constant 0 : i32
    %c0_i32_0 = arith.constant 0 : i32
    %c0_i32_1 = arith.constant 0 : i32
    %c0_i32_2 = arith.constant 0 : i32
    return %c0_i32, %c0_i32_0, %c0_i32_1 : i32, i32, i32
  }
  func.func @transform_5(%arg0: i32) -> (i32, i32, i32) {
    %c0_i32 = arith.constant 0 : i32
    %c0_i32_0 = arith.constant 0 : i32
    %c0_i32_1 = arith.constant 0 : i32
    %c0_i32_2 = arith.constant 0 : i32
    return %c0_i32, %c0_i32_0, %c0_i32_1 : i32, i32, i32
  }
  func.func @transform_6(%arg0: i32) -> (i32, i32) {
    %c0_i32 = arith.constant 0 : i32
    %c0_i32_0 = arith.constant 0 : i32
    %c0_i32_1 = arith.constant 0 : i32
    return %c0_i32, %c0_i32_0 : i32, i32
  }
  func.func @transform_7(%arg0: i32) -> (i32, i32, i32) {
    %c0_i32 = arith.constant 0 : i32
    %c0_i32_0 = arith.constant 0 : i32
    %c0_i32_1 = arith.constant 0 : i32
    return %arg0, %c0_i32, %c0_i32_0 : i32, i32, i32
  }
}

module attributes {stable_mosaic.version = 11 : i64} {
  func.func @kernel(%arg0: i32, %arg1: memref<1x32x256xf32, #tpu.memory_space<vmem>>, %arg2: memref<1x16x128xf32, #tpu.memory_space<vmem>>, %arg3: memref<32x16xf32, #tpu.memory_space<vmem>>, %arg4: memref<128x256xf32, #tpu.memory_space<vmem>>, %arg5: memref<3x32x32xf32, #tpu.memory_space<vmem>>, %arg6: memref<3x256x256xf32, #tpu.memory_space<vmem>>, %arg7: memref<1x256xf32, #tpu.memory_space<vmem>>, %arg8: memref<1x32x256xf32, #tpu.memory_space<vmem>>) attributes {dimension_semantics = [#tpu.dimension_semantics<parallel>], iteration_bounds = array<i64: 2>, scalar_prefetch = 0 : i64, scratch_operands = 0 : i64, tpu.core_type = #tpu.core_type<tc>, window_params = [{transform_indices = @transform_0, window_bounds = array<i64: 1, 32, 256>}, {transform_indices = @transform_1, window_bounds = array<i64: 1, 16, 128>}, {pipeline_mode = #tpu.pipeline_mode<synchronous>, transform_indices = @transform_2, window_bounds = array<i64: 32, 16>}, {pipeline_mode = #tpu.pipeline_mode<synchronous>, transform_indices = @transform_3, window_bounds = array<i64: 128, 256>}, {pipeline_mode = #tpu.pipeline_mode<synchronous>, transform_indices = @transform_4, window_bounds = array<i64: 3, 32, 32>}, {pipeline_mode = #tpu.pipeline_mode<synchronous>, transform_indices = @transform_5, window_bounds = array<i64: 3, 256, 256>}, {pipeline_mode = #tpu.pipeline_mode<synchronous>, transform_indices = @transform_6, window_bounds = array<i64: 1, 256>}, {transform_indices = @transform_7, window_bounds = array<i64: 1, 32, 256>}]} {
    %c0 = arith.constant 0 : index
    %c0_0 = arith.constant 0 : index
    %c0_1 = arith.constant 0 : index
    %0 = vector.load %arg1[%c0, %c0_0, %c0_1] : memref<1x32x256xf32, #tpu.memory_space<vmem>>, vector<1x32x256xf32>
    %1 = vector.shape_cast %0 : vector<1x32x256xf32> to vector<32x256xf32>
    %c0_2 = arith.constant 0 : index
    %c0_3 = arith.constant 0 : index
    %2 = vector.load %arg3[%c0_2, %c0_3] : memref<32x16xf32, #tpu.memory_space<vmem>>, vector<32x16xf32>
    %c0_4 = arith.constant 0 : index
    %c0_5 = arith.constant 0 : index
    %c0_6 = arith.constant 0 : index
    %3 = vector.load %arg2[%c0_4, %c0_5, %c0_6] : memref<1x16x128xf32, #tpu.memory_space<vmem>>, vector<1x16x128xf32>
    %4 = vector.shape_cast %3 : vector<1x16x128xf32> to vector<16x128xf32>
    %cst = arith.constant dense<0.000000e+00> : vector<32x128xf32>
    %5 = tpu.matmul %2, %4, %cst {dimension_numbers = #tpu.dot_dimension_numbers<[1], [0], [0], [1], [0, 0, 1, 1], [], []>} : vector<32x16xf32>, vector<16x128xf32>, vector<32x128xf32> -> vector<32x128xf32>
    %c0_7 = arith.constant 0 : index
    %c0_8 = arith.constant 0 : index
    %6 = vector.load %arg4[%c0_7, %c0_8] : memref<128x256xf32, #tpu.memory_space<vmem>>, vector<128x256xf32>
    %cst_9 = arith.constant dense<0.000000e+00> : vector<32x256xf32>
    %7 = tpu.matmul %5, %6, %cst_9 {dimension_numbers = #tpu.dot_dimension_numbers<[1], [0], [0], [1], [0, 0, 1, 1], [], []>} : vector<32x128xf32>, vector<128x256xf32>, vector<32x256xf32> -> vector<32x256xf32>
    %8 = arith.addf %1, %7 : vector<32x256xf32>
    %cst_10 = arith.constant 0.000000e+00 : f32
    %9 = vector.broadcast %cst_10 : f32 to vector<32x256xf32>
    %10 = arith.maximumf %8, %9 : vector<32x256xf32>
    %c0_11 = arith.constant 0 : index
    %c0_12 = arith.constant 0 : index
    %c0_13 = arith.constant 0 : index
    %11 = vector.load %arg5[%c0_11, %c0_12, %c0_13] : memref<3x32x32xf32, #tpu.memory_space<vmem>>, vector<1x32x32xf32>
    %12 = vector.shape_cast %11 : vector<1x32x32xf32> to vector<32x32xf32>
    %cst_14 = arith.constant dense<0.000000e+00> : vector<32x256xf32>
    %13 = tpu.matmul %12, %10, %cst_14 {dimension_numbers = #tpu.dot_dimension_numbers<[1], [0], [0], [1], [0, 0, 1, 1], [], []>} : vector<32x32xf32>, vector<32x256xf32>, vector<32x256xf32> -> vector<32x256xf32>
    %c0_15 = arith.constant 0 : index
    %c0_16 = arith.constant 0 : index
    %c0_17 = arith.constant 0 : index
    %14 = vector.load %arg6[%c0_15, %c0_16, %c0_17] : memref<3x256x256xf32, #tpu.memory_space<vmem>>, vector<1x256x256xf32>
    %15 = vector.shape_cast %14 : vector<1x256x256xf32> to vector<256x256xf32>
    %cst_18 = arith.constant dense<0.000000e+00> : vector<32x256xf32>
    %16 = tpu.matmul %13, %15, %cst_18 {dimension_numbers = #tpu.dot_dimension_numbers<[1], [0], [0], [1], [0, 0, 1, 1], [], []>} : vector<32x256xf32>, vector<256x256xf32>, vector<32x256xf32> -> vector<32x256xf32>
    %c1 = arith.constant 1 : index
    %c0_19 = arith.constant 0 : index
    %c0_20 = arith.constant 0 : index
    %17 = vector.load %arg5[%c1, %c0_19, %c0_20] : memref<3x32x32xf32, #tpu.memory_space<vmem>>, vector<1x32x32xf32>
    %18 = vector.shape_cast %17 : vector<1x32x32xf32> to vector<32x32xf32>
    %cst_21 = arith.constant dense<0.000000e+00> : vector<32x256xf32>
    %19 = tpu.matmul %18, %10, %cst_21 {dimension_numbers = #tpu.dot_dimension_numbers<[1], [0], [0], [1], [0, 0, 1, 1], [], []>} : vector<32x32xf32>, vector<32x256xf32>, vector<32x256xf32> -> vector<32x256xf32>
    %c1_22 = arith.constant 1 : index
    %c0_23 = arith.constant 0 : index
    %c0_24 = arith.constant 0 : index
    %20 = vector.load %arg6[%c1_22, %c0_23, %c0_24] : memref<3x256x256xf32, #tpu.memory_space<vmem>>, vector<1x256x256xf32>
    %21 = vector.shape_cast %20 : vector<1x256x256xf32> to vector<256x256xf32>
    %cst_25 = arith.constant dense<0.000000e+00> : vector<32x256xf32>
    %22 = tpu.matmul %19, %21, %cst_25 {dimension_numbers = #tpu.dot_dimension_numbers<[1], [0], [0], [1], [0, 0, 1, 1], [], []>} : vector<32x256xf32>, vector<256x256xf32>, vector<32x256xf32> -> vector<32x256xf32>
    %23 = arith.addf %16, %22 : vector<32x256xf32>
    %c2 = arith.constant 2 : index
    %c0_26 = arith.constant 0 : index
    %c0_27 = arith.constant 0 : index
    %24 = vector.load %arg5[%c2, %c0_26, %c0_27] : memref<3x32x32xf32, #tpu.memory_space<vmem>>, vector<1x32x32xf32>
    %25 = vector.shape_cast %24 : vector<1x32x32xf32> to vector<32x32xf32>
    %cst_28 = arith.constant dense<0.000000e+00> : vector<32x256xf32>
    %26 = tpu.matmul %25, %10, %cst_28 {dimension_numbers = #tpu.dot_dimension_numbers<[1], [0], [0], [1], [0, 0, 1, 1], [], []>} : vector<32x32xf32>, vector<32x256xf32>, vector<32x256xf32> -> vector<32x256xf32>
    %c2_29 = arith.constant 2 : index
    %c0_30 = arith.constant 0 : index
    %c0_31 = arith.constant 0 : index
    %27 = vector.load %arg6[%c2_29, %c0_30, %c0_31] : memref<3x256x256xf32, #tpu.memory_space<vmem>>, vector<1x256x256xf32>
    %28 = vector.shape_cast %27 : vector<1x256x256xf32> to vector<256x256xf32>
    %cst_32 = arith.constant dense<0.000000e+00> : vector<32x256xf32>
    %29 = tpu.matmul %26, %28, %cst_32 {dimension_numbers = #tpu.dot_dimension_numbers<[1], [0], [0], [1], [0, 0, 1, 1], [], []>} : vector<32x256xf32>, vector<256x256xf32>, vector<32x256xf32> -> vector<32x256xf32>
    %30 = arith.addf %23, %29 : vector<32x256xf32>
    %c0_33 = arith.constant 0 : index
    %c0_34 = arith.constant 0 : index
    %31 = vector.load %arg7[%c0_33, %c0_34] : memref<1x256xf32, #tpu.memory_space<vmem>>, vector<1x256xf32>
    %32 = vector.broadcast %31 : vector<1x256xf32> to vector<32x256xf32>
    %33 = arith.addf %30, %32 : vector<32x256xf32>
    %cst_35 = arith.constant 0.000000e+00 : f32
    %34 = vector.broadcast %cst_35 : f32 to vector<32x256xf32>
    %35 = arith.maximumf %33, %34 : vector<32x256xf32>
    %c0_36 = arith.constant 0 : index
    %c0_37 = arith.constant 0 : index
    %c0_38 = arith.constant 0 : index
    %36 = vector.load %arg8[%c0_36, %c0_37, %c0_38] : memref<1x32x256xf32, #tpu.memory_space<vmem>>, vector<1x32x256xf32>
    %37 = vector.shape_cast %36 : vector<1x32x256xf32> to vector<32x256xf32>
    %38 = vector.shape_cast %35 : vector<32x256xf32> to vector<1x32x256xf32>
    tpu.vector_store %arg8[%c0_36, %c0_37, %c0_38], %38 {strides = array<i32>} : memref<1x32x256xf32, #tpu.memory_space<vmem>>, vector<1x32x256xf32>,
    return
  }
  func.func @transform_0(%arg0: i32) -> (i32, i32, i32) {
    %c0_i32 = arith.constant 0 : i32
    %c0_i32_0 = arith.constant 0 : i32
    %c0_i32_1 = arith.constant 0 : i32
    return %arg0, %c0_i32, %c0_i32_0 : i32, i32, i32
  }
  func.func @transform_1(%arg0: i32) -> (i32, i32, i32) {
    %c0_i32 = arith.constant 0 : i32
    %c0_i32_0 = arith.constant 0 : i32
    %c0_i32_1 = arith.constant 0 : i32
    return %arg0, %c0_i32, %c0_i32_0 : i32, i32, i32
  }
  func.func @transform_2(%arg0: i32) -> (i32, i32) {
    %c0_i32 = arith.constant 0 : i32
    %c0_i32_0 = arith.constant 0 : i32
    %c0_i32_1 = arith.constant 0 : i32
    return %c0_i32, %c0_i32_0 : i32, i32
  }
  func.func @transform_3(%arg0: i32) -> (i32, i32) {
    %c0_i32 = arith.constant 0 : i32
    %c0_i32_0 = arith.constant 0 : i32
    %c0_i32_1 = arith.constant 0 : i32
    return %c0_i32, %c0_i32_0 : i32, i32
  }
  func.func @transform_4(%arg0: i32) -> (i32, i32, i32) {
    %c0_i32 = arith.constant 0 : i32
    %c0_i32_0 = arith.constant 0 : i32
    %c0_i32_1 = arith.constant 0 : i32
    %c0_i32_2 = arith.constant 0 : i32
    return %c0_i32, %c0_i32_0, %c0_i32_1 : i32, i32, i32
  }
  func.func @transform_5(%arg0: i32) -> (i32, i32, i32) {
    %c0_i32 = arith.constant 0 : i32
    %c0_i32_0 = arith.constant 0 : i32
    %c0_i32_1 = arith.constant 0 : i32
    %c0_i32_2 = arith.constant 0 : i32
    return %c0_i32, %c0_i32_0, %c0_i32_1 : i32, i32, i32
  }
  func.func @transform_6(%arg0: i32) -> (i32, i32) {
    %c0_i32 = arith.constant 0 : i32
    %c0_i32_0 = arith.constant 0 : i32
    %c0_i32_1 = arith.constant 0 : i32
    return %c0_i32, %c0_i32_0 : i32, i32
  }
  func.func @transform_7(%arg0: i32) -> (i32, i32, i32) {
    %c0_i32 = arith.constant 0 : i32
    %c0_i32_0 = arith.constant 0 : i32
    %c0_i32_1 = arith.constant 0 : i32
    return %arg0, %c0_i32, %c0_i32_0 : i32, i32, i32
  }
}

</mosaic_0001>

<bundles_post_ra>
// kernel: u_shape_forward.10
= control target key start
LH: loop header
LB: loop body
LE: loop exit
PB: predicated region body
PF: predicated region fallthrough
CT: control target
= control target key end

     0   :  { %s1634_s24 = smov 0   ;;  %s2057_s0 = inlined_call_operand.vmem [shape: f32[2,32,256], index: 0, kind: input, shape index: {}]   ;;  %s2058_s1 = inlined_call_operand.vmem [shape: f32[2,16,128], index: 1, kind: input, shape index: {}]   ;;  %s2059_s2 = inlined_call_operand.vmem [shape: f32[16,16], index: 2, kind: input, shape index: {}]   ;;  %s2060_s3 = inlined_call_operand.vmem [shape: f32[128,128], index: 3, kind: input, shape index: {}]   ;;  %s2061_s4 = inlined_call_operand.vmem [shape: f32[3,16,32], index: 4, kind: input, shape index: {}]   ;;  %s2062_s5 = inlined_call_operand.vmem [shape: f32[3,256,128], index: 5, kind: input, shape index: {}]   ;;  %s2063_s6 = inlined_call_operand.vmem [shape: f32[1,128], index: 6, kind: input, shape index: {}]   ;;  %s2064_s7 = inlined_call_operand.vmem [shape: f32[2,16,128], index: 7, kind: output, shape index: {}]  }
   0x1 LB: > { %s1149_s25 = sadd.s32 4294967295, %s1591_s24   ;;  %p1153_p0 = scmp.ge.s32.totalorder %s1591_s24, 1  ;;  %s1591_s24 = sphi %s1634_s24, %s17_s24  }
   0x2   : > { %p247_p1 = scmp.lt.s32.totalorder %s1591_s24, 3 }
   0x4   : > { %p248_p2 = pnand %p1153_p0, %p247_p1 }
   0x5   : > { %p284_p3 = scmp.lt.s32.totalorder (!%p248_p2), %s1149_s25, 1  ;;  %v1593_v0 = vmov (!%p248_p2), 0.0   ;;  %v1182_v4 = vld [vmem:[%s2062_s5 + $0x180] sm:$0xff] (!%p248_p2)  ;;  %v1183_v5 = vld [vmem:[%s2062_s5 + $0x188] sm:$0xff] (!%p248_p2)  ;;  %v1184_v23 = vld [vmem:[%s2062_s5 + $0x190] sm:$0xff] (!%p248_p2)  ;;  %vm309_vm0 = vcmask (!%p248_p2), 261120  }
   0x6   : > { %251 = sbr.rel (%p248_p2) target bundleno = 901 (0x385), region = 48  ;;  %380 = vmatprep.mubr.f32.mxu0 (!%p248_p2), %v1593_v0  ;;  %498 = vmatprep.mubr.f32.mxu1 (!%p248_p2), %v1593_v0  ;;  %v409_v6 = vld [vmem:[%s2062_s5 + $0x80] sm:$0xff] (!%p248_p2)  ;;  %v410_v15 = vld [vmem:[%s2062_s5 + $0x88] sm:$0xff] (!%p248_p2)  ;;  %v1436_v17 = vpack.c.bf16 (!%p248_p2), %v1183_v5, %v1182_v4  ;;  %v1185_v24 = vld [vmem:[%s2062_s5 + $0x198] sm:$0xff] (!%p248_p2)  ;;  %vm905_vm1 = vcmask (!%p248_p2), 130048  }
   0x7   : > { %v1166_v18 = vld [vmem:[%s2062_s5 + $0x100] sm:$0xff] (!%p248_p2)  ;;  %v1167_v19 = vld [vmem:[%s2062_s5 + $0x108] sm:$0xff] (!%p248_p2)  ;;  %v1468_v20 = vpack.c.bf16 (!%p248_p2), %v410_v15, %v409_v6  ;;  %v411_v25 = vld [vmem:[%s2062_s5 + $0x90] sm:$0xff] (!%p248_p2)  ;;  %v1440_v33 = vpack.c.bf16 (!%p248_p2), %v1185_v24, %v1184_v23 }
   0x8   : > { %v393_v21 = vld [vmem:[%s2062_s5] sm:$0xff] (!%p248_p2)  ;;  %v394_v22 = vld [vmem:[%s2062_s5 + $0x8] sm:$0xff] (!%p248_p2)  ;;  %v412_v26 = vld [vmem:[%s2062_s5 + $0x98] sm:$0xff] (!%p248_p2)  ;;  %v1438_v29 = vpack.c.bf16 (!%p248_p2), %v1167_v19, %v1166_v18 }
   0x9   : > { %v307_v27 = vld [vmem:[%s2061_s4] sm:$0xff] (!%p248_p2)  ;;  %v1162_v28 = vld [vmem:[%s2061_s4 + $0x10] sm:$0xff] (!%p248_p2)  ;;  %v1470_v30 = vpack.c.bf16 (!%p248_p2), %v394_v22, %v393_v21  ;;  %v1169_v32 = vld [vmem:[%s2062_s5 + $0x118] sm:$0xff] (!%p248_p2)  ;;  %v1472_v34 = vpack.c.bf16 (!%p248_p2), %v412_v26, %v411_v25 }
   0xa   : > { %v1168_v31 = vld [vmem:[%s2062_s5 + $0x110] sm:$0xff] (!%p248_p2)  ;;  %v396_v36 = vld [vmem:[%s2062_s5 + $0x18] sm:$0xff] (!%p248_p2)  ;;  %v1186_v37 = vld [vmem:[%s2062_s5 + $0x1a0] sm:$0xff] (!%p248_p2) }
   0xb   : > { %v395_v35 = vld [vmem:[%s2062_s5 + $0x10] sm:$0xff] (!%p248_p2)  ;;  %v1187_v38 = vld [vmem:[%s2062_s5 + $0x1a8] sm:$0xff] (!%p248_p2)  ;;  %v413_v39 = vld [vmem:[%s2062_s5 + $0xa0] sm:$0xff] (!%p248_p2)  ;;  %v1442_v43 = vpack.c.bf16 (!%p248_p2), %v1169_v32, %v1168_v31 }
   0xc   : > { %v414_v40 = vld [vmem:[%s2062_s5 + $0xa8] sm:$0xff] (!%p248_p2)  ;;  %v1163_v42 = vld [vmem:[%s2061_s4 + $0x18] sm:$0xff] (!%p248_p2)  ;;  %v1474_v44 = vpack.c.bf16 (!%p248_p2), %v396_v36, %v395_v35  ;;  %v1170_v45 = vld [vmem:[%s2062_s5 + $0x120] sm:$0xff] (!%p248_p2)  ;;  %v1444_v47 = vpack.c.bf16 (!%p248_p2), %v1187_v38, %v1186_v37 }
   0xd   : > { %s2066_s25 = smov (!%p284_p3, %s1149_s25), 1  ;;  %v308_v41 = vld [vmem:[%s2061_s4 + $0x8] sm:$0xff]  ;;  %v1476_v48 = vpack.c.bf16 %v414_v40, %v413_v39  ;;  %v397_v49 = vld [vmem:[%s2062_s5 + $0x20] sm:$0xff]  ;;  %v1188_v51 = vld [vmem:[%s2062_s5 + $0x1b0] sm:$0xff] }
   0xe   : > { %s1239_s26 = sshll.u32 %s2066_s25, 6  ;;  %v1171_v46 = vld [vmem:[%s2062_s5 + $0x128] sm:$0xff]  ;;  %v1189_v52 = vld [vmem:[%s2062_s5 + $0x1b8] sm:$0xff]  ;;  %v415_v53 = vld [vmem:[%s2062_s5 + $0xb0] sm:$0xff]  ;;  %s1240_s22 = sshll.u32 %s2066_s25, 4 }
   0xf   : > { %s288_s29 = scalar_lea.vmem %s2057_s0, %s1239_s26  ;;  %v398_v50 = vld [vmem:[%s2062_s5 + $0x28] sm:$0xff]  ;;  %v416_v54 = vld [vmem:[%s2062_s5 + $0xb8] sm:$0xff]  ;;  %v1446_v55 = vpack.c.bf16 %v1171_v46, %v1170_v45  ;;  %v1172_v57 = vld [vmem:[%s2062_s5 + $0x130] sm:$0xff]  ;;  %v1448_v59 = vpack.c.bf16 %v1189_v52, %v1188_v51  ;;  %s293_s27 = scalar_lea.vmem %s2058_s1, %s1240_s22 }
  0x10   : > { %v300_v1 = vld [vmem:[%s288_s29 + $0x8] sm:$0xff]  ;;  %v302_v2 = vld [vmem:[%s288_s29 + $0x18] sm:$0xff]  ;;  %v299_v3 = vld [vmem:[%s288_s29] sm:$0xff]  ;;  %v1478_v56 = vpack.c.bf16 %v398_v50, %v397_v49  ;;  %v1480_v60 = vpack.c.bf16 %v416_v54, %v415_v53  ;;  %s298_s28 = scalar_lea.vmem %s2064_s7, %s1240_s22 }
  0x11   : > { %v1659_v7 = vpack.c.bf16 %v302_v2, %v300_v1  ;;  %v301_v8 = vld [vmem:[%s288_s29 + $0x10] sm:$0xff]  ;;  %v304_v9 = vld [vmem:[%s288_s29 + $0x28] sm:$0xff]  ;;  %v306_v10 = vld [vmem:[%s288_s29 + $0x38] sm:$0xff] }
  0x12   : > { %v1661_v11 = vpack.c.bf16 %v301_v8, %v299_v3  ;;  %v1663_v12 = vpack.c.bf16 %v306_v10, %v304_v9  ;;  %v303_v13 = vld [vmem:[%s288_s29 + $0x20] sm:$0xff]  ;;  %v305_v14 = vld [vmem:[%s288_s29 + $0x30] sm:$0xff]  ;;  %v1173_v58 = vld [vmem:[%s2062_s5 + $0x138] sm:$0xff] }
  0x13   : > { %1421 = vmatprep.subr.bf16.mxu0 %v1659_v7  ;;  %1429 = vmatprep.subr.bf16.mxu1 %v1659_v7  ;;  %v1672_v16 = vpack.c.bf16 %v305_v14, %v303_v13  ;;  %v399_v61 = vld [vmem:[%s2062_s5 + $0x30] sm:$0xff]  ;;  %v400_v62 = vld [vmem:[%s2062_s5 + $0x38] sm:$0xff]  ;;  %v1190_v63 = vld [vmem:[%s2062_s5 + $0x1c0] sm:$0xff]  ;;  %v1450_v4 = vpack.c.bf16 %v1173_v58, %v1172_v57 }
  0x14   : > { %1423 = vmatpush1.bf16.msra.mxu0 %v1661_v11  ;;  %1431 = vmatpush1.bf16.msra.mxu1 %v1661_v11  ;;  %v1191_v1 = vld [vmem:[%s2062_s5 + $0x1c8] sm:$0xff]  ;;  %v417_v2 = vld [vmem:[%s2062_s5 + $0xc0] sm:$0xff]  ;;  %v1482_v5 = vpack.c.bf16 %v400_v62, %v399_v61  ;;  %v1192_v15 = vld [vmem:[%s2062_s5 + $0x1d0] sm:$0xff] }
  0x15   : > { %1425 = vmatprep.subr.bf16.mxu0 %v1663_v12  ;;  %1433 = vmatprep.subr.bf16.mxu1 %v1663_v12  ;;  %v418_v3 = vld [vmem:[%s2062_s5 + $0xc8] sm:$0xff]  ;;  %v1174_v6 = vld [vmem:[%s2062_s5 + $0x140] sm:$0xff]  ;;  %v1452_v9 = vpack.c.bf16 %v1191_v1, %v1190_v63  ;;  %v419_v18 = vld [vmem:[%s2062_s5 + $0xd0] sm:$0xff] }
  0x16   : > { %v1175_v8 = vld [vmem:[%s2062_s5 + $0x148] sm:$0xff]  ;;  %v1484_v10 = vpack.c.bf16 %v418_v3, %v417_v2  ;;  %v401_v13 = vld [vmem:[%s2062_s5 + $0x40] sm:$0xff]  ;;  %v420_v19 = vld [vmem:[%s2062_s5 + $0xd8] sm:$0xff] }
  0x17   : > { %v402_v14 = vld [vmem:[%s2062_s5 + $0x48] sm:$0xff]  ;;  %v1176_v22 = vld [vmem:[%s2062_s5 + $0x150] sm:$0xff]  ;;  %v1177_v23 = vld [vmem:[%s2062_s5 + $0x158] sm:$0xff]  ;;  %v1488_v25 = vpack.c.bf16 %v420_v19, %v419_v18 }
  0x18   : > { %1427 = vmatpush1.bf16.msra.mxu0 %v1672_v16  ;;  %1435 = vmatpush1.bf16.msra.mxu1 %v1672_v16  ;;  %v1486_v21 = vpack.c.bf16 %v402_v14, %v401_v13  ;;  %v403_v26 = vld [vmem:[%s2062_s5 + $0x50] sm:$0xff]  ;;  %v422_v31 = vld [vmem:[%s2062_s5 + $0xe8] sm:$0xff]  ;;  %v1458_v32 = vpack.c.bf16 %v1177_v23, %v1176_v22  ;;  %v405_v38 = vld [vmem:[%s2062_s5 + $0x60] sm:$0xff] }
  0x19   : > { %1437 = vmatprep.subr.bf16.mxu0 %v1436_v17  ;;  %1469 = vmatprep.subr.bf16.mxu1 %v1468_v20  ;;  %v1193_v17 = vld [vmem:[%s2062_s5 + $0x1d8] sm:$0xff]  ;;  %v1454_v20 = vpack.c.bf16 %v1175_v8, %v1174_v6  ;;  %v1179_v35 = vld [vmem:[%s2062_s5 + $0x168] sm:$0xff]  ;;  %v1196_v40 = vld [vmem:[%s2062_s5 + $0x1f0] sm:$0xff] }
  0x1a   : > { %v1456_v24 = vpack.c.bf16 %v1193_v17, %v1192_v15  ;;  %v406_v39 = vld [vmem:[%s2062_s5 + $0x68] sm:$0xff]  ;;  %v407_v51 = vld [vmem:[%s2062_s5 + $0x70] sm:$0xff]  ;;  %v408_v52 = vld [vmem:[%s2062_s5 + $0x78] sm:$0xff] }
  0x1b   : > { %1160 = vmatmul.mubr.msk.f32.vlgmr.msra.gmra.mrb[0].mxu0 %vm309_vm0, %v307_v27  ;;  %1164 = vmatmul.mubr.msk.f32.vlgmr.msra.gmra.mrb[0].mxu1 %vm309_vm0, %v1162_v28  ;;  %v404_v27 = vld [vmem:[%s2062_s5 + $0x58] sm:$0xff]  ;;  %v1194_v28 = vld [vmem:[%s2062_s5 + $0x1e0] sm:$0xff]  ;;  %v1494_v45 = vpack.c.bf16 %v406_v39, %v405_v38  ;;  %v1498_v53 = vpack.c.bf16 %v408_v52, %v407_v51  ;;  %v1203_v57 = vld [vmem:[%s2062_s5 + $0x208] sm:$0xff] }
  0x1c   : > { %386 = vmatprep.mubr.f32.mxu0 %v1593_v0  ;;  %504 = vmatprep.mubr.f32.mxu1 %v1593_v0  ;;  %v1218_v54 = vld [vmem:[%s2062_s5 + $0x280] sm:$0xff]  ;;  %v1220_v58 = vld [vmem:[%s2062_s5 + $0x290] sm:$0xff]  ;;  %v1223_v6 = vld [vmem:[%s2062_s5 + $0x2a8] sm:$0xff] }
  0x1d   : > { %1439 = vmatpush3.bf16.msra.mxu0 %v1438_v29  ;;  %1471 = vmatpush3.bf16.msra.mxu1 %v1470_v30  ;;  %v1195_v29 = vld [vmem:[%s2062_s5 + $0x1e8] sm:$0xff]  ;;  %v421_v30 = vld [vmem:[%s2062_s5 + $0xe0] sm:$0xff]  ;;  %v1204_v3 = vld [vmem:[%s2062_s5 + $0x210] sm:$0xff] }
  0x1e   : > { %1441 = vmatprep.subr.bf16.mxu0 %v1440_v33  ;;  %1473 = vmatprep.subr.bf16.mxu1 %v1472_v34  ;;  %v1490_v33 = vpack.c.bf16 %v404_v27, %v403_v26  ;;  %v1178_v34 = vld [vmem:[%s2062_s5 + $0x160] sm:$0xff]  ;;  %v1460_v36 = vpack.c.bf16 %v1195_v29, %v1194_v28  ;;  %v1492_v37 = vpack.c.bf16 %v422_v31, %v421_v30  ;;  %v1224_v18 = vld [vmem:[%s2062_s5 + $0x2b0] sm:$0xff]  ;;  %v1209_v23 = vld [vmem:[%s2062_s5 + $0x238] sm:$0xff] }
  0x1f   : > { %1161 = vmatmul.mubr.msk.f32.gmra.mrb[2].mxu0 %vm309_vm0, %v308_v41  ;;  %1165 = vmatmul.mubr.msk.f32.gmra.mrb[2].mxu1 %vm309_vm0, %v1163_v42  ;;  %v1197_v41 = vld [vmem:[%s2062_s5 + $0x1f8] sm:$0xff]  ;;  %v423_v42 = vld [vmem:[%s2062_s5 + $0xf0] sm:$0xff]  ;;  %v1206_v17 = vld [vmem:[%s2062_s5 + $0x220] sm:$0xff] }
  0x20   : > { %v1464_v46 = vpack.c.bf16 %v1197_v41, %v1196_v40  ;;  %v1198_v19 = vld [vmem:[%s2061_s4 + $0x20] sm:$0xff]  ;;  %v1208_v22 = vld [vmem:[%s2062_s5 + $0x230] sm:$0xff]  ;;  %v1211_v29 = vld [vmem:[%s2062_s5 + $0x248] sm:$0xff] }
  0x21   : > { %1443 = vmatpush3.bf16.msra.mxu0 %v1442_v43  ;;  %1475 = vmatpush3.bf16.msra.mxu1 %v1474_v44  ;;  %v424_v43 = vld [vmem:[%s2062_s5 + $0xf8] sm:$0xff]  ;;  %v1462_v44 = vpack.c.bf16 %v1179_v35, %v1178_v34  ;;  %v1522_v26 = vpack.c.bf16 %v1209_v23, %v1208_v22  ;;  %v1210_v28 = vld [vmem:[%s2062_s5 + $0x240] sm:$0xff]  ;;  %v1215_v40 = vld [vmem:[%s2062_s5 + $0x268] sm:$0xff] }
  0x22   : > { %1445 = vmatprep.subr.bf16.mxu0 %v1444_v47  ;;  %1477 = vmatprep.subr.bf16.mxu1 %v1476_v48  ;;  %v1180_v47 = vld [vmem:[%s2062_s5 + $0x170] sm:$0xff]  ;;  %v1181_v48 = vld [vmem:[%s2062_s5 + $0x178] sm:$0xff]  ;;  %v1496_v49 = vpack.c.bf16 %v424_v43, %v423_v42  ;;  %v1526_v31 = vpack.c.bf16 %v1211_v29, %v1210_v28  ;;  %v1214_v39 = vld [vmem:[%s2062_s5 + $0x260] sm:$0xff] }
  0x23   : > { %v1466_v50 = vpack.c.bf16 %v1181_v48, %v1180_v47  ;;  %v1229_v30 = vld [vmem:[%s2062_s5 + $0x2d8] sm:$0xff]  ;;  %v1534_v41 = vpack.c.bf16 %v1215_v40, %v1214_v39  ;;  %v1232_v42 = vld [vmem:[%s2062_s5 + $0x2f0] sm:$0xff]  ;;  %v903_v48 = vld [vmem:[%s293_s27] sm:$0xff] }
  0x24   : > { %v1213_v34 = vld [vmem:[%s2062_s5 + $0x258] sm:$0xff]  ;;  %v987_v51 = vld [vmem:[%s2060_s3] sm:$0xff]  ;;  %v988_v52 = vld [vmem:[%s2060_s3 + $0x8] sm:$0xff] }
  0x25   : > { %1447 = vmatpush3.bf16.msra.mxu0 %v1446_v55  ;;  %1479 = vmatpush3.bf16.msra.mxu1 %v1478_v56  ;;  %v1219_v55 = vld [vmem:[%s2062_s5 + $0x288] sm:$0xff]  ;;  %v1233_v43 = vld [vmem:[%s2062_s5 + $0x2f8] sm:$0xff]  ;;  %v1001_v29 = vld [vmem:[%s2060_s3 + $0x70] sm:$0xff] }
  0x26   : > { %1449 = vmatprep.subr.bf16.mxu0 %v1448_v59  ;;  %1481 = vmatprep.subr.bf16.mxu1 %v1480_v60  ;;  %v1508_v56 = vpack.c.bf16 %v1219_v55, %v1218_v54  ;;  %v1221_v59 = vld [vmem:[%s2062_s5 + $0x298] sm:$0xff]  ;;  %v1544_v54 = vpack.c.bf16 %v988_v52, %v987_v51 }
  0x27   : > { %v1512_v2 = vpack.c.bf16 %v1221_v59, %v1220_v58  ;;  %v990_v55 = vld [vmem:[%s2060_s3 + $0x18] sm:$0xff]  ;;  %v993_v59 = vld [vmem:[%s2060_s3 + $0x30] sm:$0xff] }
  0x29   : > { %1451 = vmatpush3.bf16.msra.mxu0 %v1450_v4  ;;  %1483 = vmatpush3.bf16.msra.mxu1 %v1482_v5  ;;  %v1205_v4 = vld [vmem:[%s2062_s5 + $0x218] sm:$0xff]  ;;  %v1222_v5 = vld [vmem:[%s2062_s5 + $0x2a0] sm:$0xff] }
  0x2a   : > { %1453 = vmatprep.subr.bf16.mxu0 %v1452_v9  ;;  %1485 = vmatprep.subr.bf16.mxu1 %v1484_v10  ;;  %v1514_v14 = vpack.c.bf16 %v1205_v4, %v1204_v3  ;;  %v1516_v15 = vpack.c.bf16 %v1223_v6, %v1222_v5  ;;  %v998_v3 = vld [vmem:[%s2060_s3 + $0x58] sm:$0xff] }
  0x2d   : > { %1455 = vmatpush3.bf16.msra.mxu0 %v1454_v20  ;;  %1487 = vmatpush3.bf16.msra.mxu1 %v1486_v21 }
  0x2e   : > { %1457 = vmatprep.subr.bf16.mxu0 %v1456_v24  ;;  %1489 = vmatprep.subr.bf16.mxu1 %v1488_v25  ;;  %v1227_v24 = vld [vmem:[%s2062_s5 + $0x2c8] sm:$0xff] }
  0x2f   : > { %v1199_v25 = vld [vmem:[%s2061_s4 + $0x28] sm:$0xff] }
  0x31   : > { %1459 = vmatpush3.bf16.msra.mxu0 %v1458_v32  ;;  %1491 = vmatpush3.bf16.msra.mxu1 %v1490_v33  ;;  %v1212_v33 = vld [vmem:[%s2062_s5 + $0x250] sm:$0xff] }
  0x32   : > { %1461 = vmatprep.subr.bf16.mxu0 %v1460_v36  ;;  %1493 = vmatprep.subr.bf16.mxu1 %v1492_v37  ;;  %v1530_v35 = vpack.c.bf16 %v1213_v34, %v1212_v33  ;;  %v1230_v36 = vld [vmem:[%s2062_s5 + $0x2e0] sm:$0xff]  ;;  %v1231_v37 = vld [vmem:[%s2062_s5 + $0x2e8] sm:$0xff] }
  0x33   : > { %v1532_v38 = vpack.c.bf16 %v1231_v37, %v1230_v36 }
  0x35   : > { %1463 = vmatpush3.bf16.msra.mxu0 %v1462_v44  ;;  %1495 = vmatpush3.bf16.msra.mxu1 %v1494_v45  ;;  %v1536_v44 = vpack.c.bf16 %v1233_v43, %v1232_v42  ;;  %v1216_v45 = vld [vmem:[%s2062_s5 + $0x270] sm:$0xff] }
  0x36   : > { %1465 = vmatprep.subr.bf16.mxu0 %v1464_v46  ;;  %1497 = vmatprep.subr.bf16.mxu1 %v1496_v49  ;;  %v1217_v46 = vld [vmem:[%s2062_s5 + $0x278] sm:$0xff]  ;;  %v904_v49 = vld [vmem:[%s293_s27 + $0x8] sm:$0xff] }
  0x37   : > { %v1538_v47 = vpack.c.bf16 %v1217_v46, %v1216_v45 }
  0x39   : > { %1467 = vmatpush3.bf16.msra.mxu0 %v1466_v50  ;;  %1499 = vmatpush3.bf16.msra.mxu1 %v1498_v53  ;;  %v1540_v50 = vpack.c.bf16 %v904_v49, %v903_v48  ;;  %v989_v53 = vld [vmem:[%s2060_s3 + $0x10] sm:$0xff] }
  0x3a   : > { %1501 = vmatprep.subr.bf16.mxu0 %v1659_v7  ;;  %1509 = vmatprep.subr.bf16.mxu1 %v1508_v56  ;;  %v1202_v7 = vld [vmem:[%s2062_s5 + $0x200] sm:$0xff]  ;;  %v1548_v56 = vpack.c.bf16 %v990_v55, %v989_v53 }
  0x3b   : > { %v1510_v62 = vpack.c.bf16 %v1203_v57, %v1202_v7  ;;  %v991_v7 = vld [vmem:[%s2060_s3 + $0x20] sm:$0xff]  ;;  %v992_v57 = vld [vmem:[%s2060_s3 + $0x28] sm:$0xff] }
  0x3c   : > { %v1552_v58 = vpack.c.bf16 %v992_v57, %v991_v7 }
  0xee   : > { %v382_v60 = vpop.f32.mrb[0].mxu0  ;;  %v500_v61 = vpop.f32.mrb[0].mxu1 }
  0xef   : > { %v384_v63 = vpop.f32.mrb[1].mxu0  ;;  %v502_v1 = vpop.f32.mrb[1].mxu1 }
  0xf0   : > { %608 = vmatprep.mubr.f32.mxu0 %v502_v1  ;;  %683 = vmatprep.mubr.f32.mxu1 %v384_v63  ;;  %v996_v63 = vld [vmem:[%s2060_s3 + $0x48] sm:$0xff] }
  0xf1   : > { %609 = vmatmul.mubr.f32.vlgmr.msra.gmra.mrb[4].mxu0 %v500_v61  ;;  %684 = vmatmul.mubr.f32.vlgmr.msra.gmra.mrb[4].mxu1 %v382_v60  ;;  %v994_v60 = vld [vmem:[%s2060_s3 + $0x38] sm:$0xff] }
  0xf2   : > { %1503 = vmatpush1.bf16.msra.mxu0 %v1661_v11  ;;  %v388_v8 = vpop.f32.mrb[2].mxu0  ;;  %v506_v9 = vpop.f32.mrb[2].mxu1  ;;  %1511 = vmatpush3.bf16.msra.mxu1 %v1510_v62  ;;  %v1207_v11 = vld [vmem:[%s2062_s5 + $0x228] sm:$0xff]  ;;  %v1556_v61 = vpack.c.bf16 %v994_v60, %v993_v59  ;;  %v995_v62 = vld [vmem:[%s2060_s3 + $0x40] sm:$0xff] }
  0xf3   : > { %v390_v10 = vpop.f32.mrb[3].mxu0  ;;  %v508_v13 = vpop.f32.mrb[3].mxu1  ;;  %1505 = vmatprep.subr.bf16.mxu0 %v1663_v12  ;;  %1513 = vmatprep.subr.bf16.mxu1 %v1512_v2  ;;  %v1225_v12 = vld [vmem:[%s2062_s5 + $0x2b8] sm:$0xff]  ;;  %v1518_v20 = vpack.c.bf16 %v1207_v11, %v1206_v17  ;;  %v1560_v1 = vpack.c.bf16 %v996_v63, %v995_v62  ;;  %v997_v2 = vld [vmem:[%s2060_s3 + $0x50] sm:$0xff] }
  0xf4   : > { %613 = vmatprep.mubr.f32.mxu0 %v508_v13  ;;  %688 = vmatprep.mubr.f32.mxu1 %v390_v10  ;;  %v1520_v21 = vpack.c.bf16 %v1225_v12, %v1224_v18  ;;  %v1564_v4 = vpack.c.bf16 %v998_v3, %v997_v2 }
  0xf5   : > { %614 = vmatmul.mubr.f32.gmra.mrb[6].mxu0 %v506_v9  ;;  %689 = vmatmul.mubr.f32.gmra.mrb[6].mxu1 %v388_v8 }
  0xf6   : > { %1507 = vmatpush1.bf16.msra.mxu0 %v1672_v16  ;;  %767 = vmatprep.mubr.f32.mxu0 %v1593_v0  ;;  %v1226_v16 = vld [vmem:[%s2062_s5 + $0x2c0] sm:$0xff] }
  0xf7   : > { %1515 = vmatpush3.bf16.msra.mxu1 %v1514_v14  ;;  %v1524_v27 = vpack.c.bf16 %v1227_v24, %v1226_v16  ;;  %1545 = vmatprep.subr.bf16.mxu0 %v1544_v54  ;;  %v901_v24 = vld [vmem:[%s2059_s2] sm:$0xff] }
  0xf8   : > { %1517 = vmatprep.subr.bf16.mxu1 %v1516_v15 }
  0xf9   : > { %1200 = vmatmul.mubr.msk.f32.vlgmr.msra.gmra.mrb[8].mxu0 %vm309_vm0, %v1198_v19 }
  0xfa   : > { %773 = vmatprep.mubr.f32.mxu0 %v1593_v0  ;;  %v1228_v0 = vld [vmem:[%s2062_s5 + $0x2d0] sm:$0xff]  ;;  %1547 = vmatpush3.bf16.msra.mxu0 %v1544_v54 }
  0xfb   : > { %1519 = vmatpush3.bf16.msra.mxu1 %v1518_v20  ;;  %v1528_v32 = vpack.c.bf16 %v1229_v30, %v1228_v0  ;;  %1549 = vmatprep.subr.bf16.mxu0 %v1548_v56  ;;  %v1002_v0 = vld [vmem:[%s2060_s3 + $0x78] sm:$0xff] }
  0xfc   : > { %1521 = vmatprep.subr.bf16.mxu1 %v1520_v21  ;;  %v1572_v30 = vpack.c.bf16 %v1002_v0, %v1001_v29 }
  0xfd   : > { %1201 = vmatmul.mubr.msk.f32.gmra.mrb[10].mxu0 %vm309_vm0, %v1199_v25  ;;  %v902_v25 = vld [vmem:[%s2059_s2 + $0x8] sm:$0xff] }
  0xfe   : > { %1551 = vmatpush3.bf16.msra.mxu0 %v1548_v56 }
  0xff   : > { %1523 = vmatpush3.bf16.msra.mxu1 %v1522_v26  ;;  %1553 = vmatprep.subr.bf16.mxu0 %v1552_v58  ;;  %v999_v26 = vld [vmem:[%s2060_s3 + $0x60] sm:$0xff] }
 0x100   : > { %1525 = vmatprep.subr.bf16.mxu1 %v1524_v27  ;;  %v1000_v27 = vld [vmem:[%s2060_s3 + $0x68] sm:$0xff] }
 0x101   : > { %v1568_v28 = vpack.c.bf16 %v1000_v27, %v999_v26 }
 0x102   : > { %1555 = vmatpush3.bf16.msra.mxu0 %v1552_v58 }
 0x103   : > { %1527 = vmatpush3.bf16.msra.mxu1 %v1526_v31  ;;  %1557 = vmatprep.subr.bf16.mxu0 %v1556_v61 }
 0x104   : > { %1529 = vmatprep.subr.bf16.mxu1 %v1528_v32 }
 0x106   : > { %1559 = vmatpush3.bf16.msra.mxu0 %v1556_v61 }
 0x107   : > { %1531 = vmatpush3.bf16.msra.mxu1 %v1530_v35  ;;  %1561 = vmatprep.subr.bf16.mxu0 %v1560_v1 }
 0x108   : > { %1533 = vmatprep.subr.bf16.mxu1 %v1532_v38 }
 0x10a   : > { %1563 = vmatpush3.bf16.msra.mxu0 %v1560_v1 }
 0x10b   : > { %1535 = vmatpush3.bf16.msra.mxu1 %v1534_v41  ;;  %1565 = vmatprep.subr.bf16.mxu0 %v1564_v4  ;;  %v1234_v41 = vld [vmem:[%s2063_s6] ss:$0 sm:$0xff] }
 0x10c   : > { %1537 = vmatprep.subr.bf16.mxu1 %v1536_v44 }
 0x10e   : > { %1567 = vmatpush3.bf16.msra.mxu0 %v1564_v4 }
 0x10f   : > { %1539 = vmatpush3.bf16.msra.mxu1 %v1538_v47  ;;  %1569 = vmatprep.subr.bf16.mxu0 %v1568_v28 }
 0x110   : > { %1541 = vmatprep.subr.bf16.mxu1 %v1540_v50 }
 0x112   : > { %1571 = vmatpush3.bf16.msra.mxu0 %v1568_v28 }
 0x113   : > { %1573 = vmatprep.subr.bf16.mxu0 %v1572_v30 }
 0x116   : > { %1575 = vmatpush3.bf16.msra.mxu0 %v1572_v30 }
 0x1c4   : > { %v1274_v5 = vpop.f32.mrb[4].mxu0  ;;  %v1312_v6 = vpop.f32.mrb[4].mxu1 }
 0x1c5   : > { %v1275_v8 = vpop.f32.mrb[5].mxu0  ;;  %v1313_v9 = vpop.f32.mrb[5].mxu1 }
 0x1c6   : > { %v1276_v10 = vadd.f32 %v1275_v8, %v1274_v5  ;;  %v1314_v13 = vadd.f32 %v1313_v9, %v1312_v6 }
 0x1c8   : > { %v686_v14 = vadd.f32 %v1314_v13, %v1276_v10  ;;  %v1277_v15 = vpop.f32.mrb[6].mxu0  ;;  %v1315_v17 = vpop.f32.mrb[6].mxu1 }
 0x1c9   : > { %v1278_v11 = vpop.f32.mrb[7].mxu0  ;;  %v1316_v18 = vpop.f32.mrb[7].mxu1 }
 0x1ca   : > { %v1279_v12 = vadd.f32 %v1278_v11, %v1277_v15  ;;  %v1317_v19 = vadd.f32 %v1316_v18, %v1315_v17 }
 0x1cc   : > { %v691_v20 = vadd.f32 %v1317_v19, %v1279_v12  ;;  %v769_v21 = vpop.f32.mrb[8].mxu0 }
 0x1cd   : > { %v771_v22 = vpop.f32.mrb[9].mxu0 }
 0x1ce   : > { %877 = vmatprep.mubr.f32.mxu1 %v771_v22 }
 0x1cf   : > { %878 = vmatmul.mubr.f32.vlgmr.msra.gmra.mrb[8].mxu1 %v769_v21 }
 0x1d0   : > { %1543 = vmatpush3.bf16.msra.mxu1 %v1540_v50  ;;  %v775_v23 = vpop.f32.mrb[10].mxu0 }
 0x1d1   : > { %v777_v16 = vpop.f32.mrb[11].mxu0 }
 0x1d2   : > { %882 = vmatprep.mubr.f32.mxu1 %v777_v16 }
 0x1d3   : > { %883 = vmatmul.mubr.f32.gmra.mrb[10].mxu1 %v775_v23 }
 0x1d4   : > { %1382 = vmatprep.mubr.msk.f32.mxu1 %vm905_vm1, %v901_v24 }
 0x1d7   : > { %1383 = vmatmul.mubr.msk.f32.vlgmr.msra.gmra.mrb[12].mxu1 %vm905_vm1, %v902_v25 }
 0x2a2   : > { %v1350_v31 = vpop.f32.mrb[8].mxu1 }
 0x2a3   : > { %v1351_v32 = vpop.f32.mrb[9].mxu1 }
 0x2a4   : > { %v1352_v33 = vadd.f32 %v1351_v32, %v1350_v31 }
 0x2a6   : > { %v888_v34 = vadd.f32 %v1352_v33, %v686_v14  ;;  %v1353_v35 = vpop.f32.mrb[10].mxu1 }
 0x2a7   : > { %v1354_v36 = vpop.f32.mrb[11].mxu1 }
 0x2a8   : > { %v1355_v37 = vadd.f32 %v1354_v36, %v1353_v35  ;;  %v897_v43 = vadd.f32 %v1234_v41, %v888_v34 }
 0x2aa   : > { %v889_v38 = vadd.f32 %v1355_v37, %v691_v20  ;;  %v1384_v39 = vpop.f32.mrb[12].mxu1  ;;  %v899_v46 = vmax.f32 %v897_v43, 0.0 }
 0x2ab   : > { %v978_v40 = vpop.f32.mrb[13].mxu1 }
 0x2ac   : > { %1417 = vmatprep.mubr.f32.mxu0 %v978_v40  ;;  %v898_v42 = vadd.f32 %v1234_v41, %v889_v38 }
 0x2ad   : > { %1418 = vmatmul.mubr.f32.vlgmr.msra.gmra.mrb[12].mxu0 %v1384_v39 }
 0x2ae   : > { %v900_v44 = vmax.f32 %v898_v42, 0.0 }
 0x380   : > { %v1419_v45 = vpop.f32.mrb[12].mxu0 }
 0x381   : > { %v1079_v47 = vadd.f32 %v1419_v45, %v900_v44  ;;  %v1069_v48 = vpop.f32.mrb[13].mxu0 }
 0x382   : > { %v1078_v49 = vadd.f32 %v1069_v48, %v899_v46 }
 0x383   : > { %1081 = vst [vmem:[%s298_s28 + $0x8] sm:$0xff] %v1079_v47 }
 0x384   : > { %1080 = vst [vmem:[%s298_s28] sm:$0xff] %v1078_v49 }
 0x385 PF: > { %s17_s24 = sadd.s32 1, %s1591_s24  }
 0x386   : > { %p14_p4 = scmp.ge.s32.totalorder %s17_s24, 4  }
 0x388   :  { %16 = sbr.rel (!%p14_p4) target bundleno = 1 (0x1), region = 85 }

// kernel: u_shape_forward.11
= control target key start
LH: loop header
LB: loop body
LE: loop exit
PB: predicated region body
PF: predicated region fallthrough
CT: control target
= control target key end

     0   :  { %s1428_s24 = smov 0   ;;  %s1678_s0 = inlined_call_operand.vmem [shape: f32[2,16,128], index: 0, kind: input, shape index: {}]   ;;  %s1679_s1 = inlined_call_operand.vmem [shape: f32[2,4,32], index: 1, kind: input, shape index: {}]   ;;  %s1680_s2 = inlined_call_operand.vmem [shape: f32[8,4], index: 2, kind: input, shape index: {}]   ;;  %s1681_s3 = inlined_call_operand.vmem [shape: f32[32,64], index: 3, kind: input, shape index: {}]   ;;  %s1682_s4 = inlined_call_operand.vmem [shape: f32[3,8,16], index: 4, kind: input, shape index: {}]   ;;  %s1683_s5 = inlined_call_operand.vmem [shape: f32[3,128,64], index: 5, kind: input, shape index: {}]   ;;  %s1684_s6 = inlined_call_operand.vmem [shape: f32[1,64], index: 6, kind: input, shape index: {}]   ;;  %s1685_s7 = inlined_call_operand.vmem [shape: f32[2,8,64], index: 7, kind: output, shape index: {}]  }
   0x1 LB: > { %s1017_s25 = sadd.s32 4294967295, %s1383_s24   ;;  %p1021_p0 = scmp.ge.s32.totalorder %s1383_s24, 1  ;;  %s1383_s24 = sphi %s1428_s24, %s17_s24  }
   0x2   : > { %p246_p1 = scmp.lt.s32.totalorder %s1383_s24, 3 }
   0x4   : > { %p247_p2 = pnand %p1021_p0, %p246_p1 }
   0x5   : > { %p281_p3 = scmp.lt.s32.totalorder (!%p247_p2), %s1017_s25, 1  ;;  %v1385_v0 = vmov (!%p247_p2), 0.0|0.0   ;;  %vm1386_vm0 = vmmov (!%p247_p2), 0   ;;  %v1387_v1 = vmov (!%p247_p2), 0.0   ;;  %v371_v2 = vld [vmem:[%s1683_s5] sm:$0xff] (!%p247_p2)  ;;  %v372_v3 = vld [vmem:[%s1683_s5 + $0x8] sm:$0xff] (!%p247_p2) }
   0x6   : > { %250 = sbr.rel (%p247_p2) target bundleno = 675 (0x2a3), region = 48  ;;  %1279 = vmatprep.subr.bf16.mxu0 (!%p247_p2), %v1385_v0  ;;  %1141 = vmatprep.mubr.msk.f32.mxu0 (!%p247_p2), %vm1386_vm0, %v1387_v1  ;;  %v1310_v4 = vpack.c.bf16 (!%p247_p2), %v372_v3, %v371_v2  ;;  %v373_v5 = vld [vmem:[%s1683_s5 + $0x10] sm:$0xff] (!%p247_p2)  ;;  %v374_v6 = vld [vmem:[%s1683_s5 + $0x18] sm:$0xff] (!%p247_p2)  ;;  %v375_v8 = vld [vmem:[%s1683_s5 + $0x20] sm:$0xff] (!%p247_p2)  ;;  %vm297_vm1 = vcmask (!%p247_p2), 130048   ;;  %vm797_vm2 = vcmask (!%p247_p2), 1043456  }
   0x7   : > { %1309 = vmatprep.subr.bf16.mxu1 (!%p247_p2), %v1385_v0  ;;  %1218 = vmatprep.mubr.msk.f32.mxu1 (!%p247_p2), %vm1386_vm0, %v1387_v1  ;;  %v1313_v7 = vpack.c.bf16 (!%p247_p2), %v374_v6, %v373_v5  ;;  %v376_v9 = vld [vmem:[%s1683_s5 + $0x28] sm:$0xff] (!%p247_p2)  ;;  %v296_v14 = vld [vmem:[%s1682_s4] sm:$0xff] (!%p247_p2)  ;;  %v377_v15 = vld [vmem:[%s1683_s5 + $0x30] sm:$0xff] (!%p247_p2)  ;;  %vm793_vm3 = vcmask (!%p247_p2), 31744   ;;  %vm875_vm4 = vcmask (!%p247_p2), 261120   ;;  %vm950_vm5 = vcmask (!%p247_p2), 523264  }
   0x8   : > { %1311 = vmatpush3.bf16.msra.mxu1 (!%p247_p2), %v1310_v4  ;;  %v1316_v13 = vpack.c.bf16 (!%p247_p2), %v376_v9, %v375_v8  ;;  %v378_v16 = vld [vmem:[%s1683_s5 + $0x38] sm:$0xff] (!%p247_p2)  ;;  %v1029_v17 = vld [vmem:[%s1683_s5 + $0x80] sm:$0xff] (!%p247_p2)  ;;  %v1030_v18 = vld [vmem:[%s1683_s5 + $0x88] sm:$0xff] (!%p247_p2) }
   0x9   : > { %1312 = vmatprep.subr.bf16.mxu1 (!%p247_p2), %v1385_v0  ;;  %v1319_v19 = vpack.c.bf16 (!%p247_p2), %v378_v16, %v377_v15  ;;  %v1027_v20 = vld [vmem:[%s1682_s4 + $0x8] sm:$0xff] (!%p247_p2)  ;;  %v1286_v21 = vpack.c.bf16 (!%p247_p2), %v1030_v18, %v1029_v17  ;;  %v379_v22 = vld [vmem:[%s1683_s5 + $0x40] sm:$0xff] (!%p247_p2)  ;;  %v1031_v24 = vld [vmem:[%s1683_s5 + $0x90] sm:$0xff] (!%p247_p2) }
   0xa   : > { %v380_v23 = vld [vmem:[%s1683_s5 + $0x48] sm:$0xff] (!%p247_p2)  ;;  %v1032_v25 = vld [vmem:[%s1683_s5 + $0x98] sm:$0xff] (!%p247_p2)  ;;  %v381_v28 = vld [vmem:[%s1683_s5 + $0x50] sm:$0xff] (!%p247_p2) }
   0xb   : > { %v1322_v26 = vpack.c.bf16 (!%p247_p2), %v380_v23, %v379_v22  ;;  %v1289_v27 = vpack.c.bf16 (!%p247_p2), %v1032_v25, %v1031_v24  ;;  %v382_v29 = vld [vmem:[%s1683_s5 + $0x58] sm:$0xff] (!%p247_p2)  ;;  %v1033_v30 = vld [vmem:[%s1683_s5 + $0xa0] sm:$0xff] (!%p247_p2)  ;;  %v1034_v31 = vld [vmem:[%s1683_s5 + $0xa8] sm:$0xff] (!%p247_p2) }
   0xc   : > { %1314 = vmatpush3.bf16.msra.mxu1 (!%p247_p2), %v1313_v7  ;;  %v1325_v32 = vpack.c.bf16 (!%p247_p2), %v382_v29, %v381_v28  ;;  %v1292_v33 = vpack.c.bf16 (!%p247_p2), %v1034_v31, %v1033_v30  ;;  %v383_v34 = vld [vmem:[%s1683_s5 + $0x60] sm:$0xff] (!%p247_p2)  ;;  %v384_v35 = vld [vmem:[%s1683_s5 + $0x68] sm:$0xff] (!%p247_p2)  ;;  %v1035_v36 = vld [vmem:[%s1683_s5 + $0xb0] sm:$0xff] (!%p247_p2) }
   0xd   : > { %s1687_s25 = smov (!%p281_p3, %s1017_s25), 1  ;;  %1315 = vmatprep.subr.bf16.mxu1 %v1385_v0  ;;  %v1036_v37 = vld [vmem:[%s1683_s5 + $0xb8] sm:$0xff]  ;;  %v1328_v38 = vpack.c.bf16 %v384_v35, %v383_v34  ;;  %v385_v40 = vld [vmem:[%s1683_s5 + $0x70] sm:$0xff]  ;;  %v1037_v42 = vld [vmem:[%s1683_s5 + $0xc0] sm:$0xff] }
   0xe   : > { %s1069_s11 = sshll.u32 %s1687_s25, 4  ;;  %v1295_v39 = vpack.c.bf16 %v1036_v37, %v1035_v36  ;;  %v386_v41 = vld [vmem:[%s1683_s5 + $0x78] sm:$0xff]  ;;  %v1038_v43 = vld [vmem:[%s1683_s5 + $0xc8] sm:$0xff]  ;;  %v1039_v46 = vld [vmem:[%s1683_s5 + $0xd0] sm:$0xff]  ;;  %s1024_s20 = sshll.u32 %s1687_s25, 2 }
   0xf   : > { %s285_s14 = scalar_lea.vmem %s1678_s0, %s1069_s11  ;;  %v1331_v44 = vpack.c.bf16 %v386_v41, %v385_v40  ;;  %v1298_v45 = vpack.c.bf16 %v1038_v43, %v1037_v42  ;;  %v1040_v47 = vld [vmem:[%s1683_s5 + $0xd8] sm:$0xff]  ;;  %v1041_v49 = vld [vmem:[%s1683_s5 + $0xe0] sm:$0xff]  ;;  %v1042_v50 = vld [vmem:[%s1683_s5 + $0xe8] sm:$0xff]  ;;  %s289_s23 = scalar_lea.vmem %s1679_s1, %s1024_s20 }
  0x10   : > { %v294_v10 = vld [vmem:[%s285_s14] sm:$0xff]  ;;  %v295_v11 = vld [vmem:[%s285_s14 + $0x8] sm:$0xff]  ;;  %1317 = vmatpush3.bf16.msra.mxu1 %v1316_v13  ;;  %v1301_v48 = vpack.c.bf16 %v1040_v47, %v1039_v46  ;;  %v1304_v51 = vpack.c.bf16 %v1042_v50, %v1041_v49  ;;  %v1043_v52 = vld [vmem:[%s1683_s5 + $0xf0] sm:$0xff]  ;;  %s1025_s20 = sshll.u32 %s1687_s25, 3 }
  0x11   : > { %v1467_v12 = vpack.c.bf16 %v295_v11, %v294_v10  ;;  %1318 = vmatprep.subr.bf16.mxu1 %v1385_v0  ;;  %v1044_v53 = vld [vmem:[%s1683_s5 + $0xf8] sm:$0xff]  ;;  %v1047_v55 = vld [vmem:[%s1683_s5 + $0x100] sm:$0xff]  ;;  %v1048_v56 = vld [vmem:[%s1683_s5 + $0x108] sm:$0xff] }
  0x12   : > { %v1307_v54 = vpack.c.bf16 %v1044_v53, %v1043_v52  ;;  %v1337_v57 = vpack.c.bf16 %v1048_v56, %v1047_v55  ;;  %v1049_v59 = vld [vmem:[%s1683_s5 + $0x110] sm:$0xff]  ;;  %v1050_v60 = vld [vmem:[%s1683_s5 + $0x118] sm:$0xff]  ;;  %v1051_v2 = vld [vmem:[%s1683_s5 + $0x120] sm:$0xff] }
  0x13   : > { %1281 = vmatpush3.bf16.msra.mxu0 %v1467_v12  ;;  %v1340_v62 = vpack.c.bf16 %v1050_v60, %v1049_v59  ;;  %v1052_v3 = vld [vmem:[%s1683_s5 + $0x128] sm:$0xff]  ;;  %v1045_v5 = vld [vmem:[%s1682_s4 + $0x10] sm:$0xff]  ;;  %v792_v6 = vld [vmem:[%s289_s23] sm:$0xf]  ;;  %s293_s23 = scalar_lea.vmem %s1685_s7, %s1025_s20 }
  0x14   : > { %1282 = vmatprep.subr.bf16.mxu0 %v1385_v0  ;;  %1320 = vmatpush3.bf16.msra.mxu1 %v1319_v19  ;;  %v1343_v7 = vpack.c.bf16 %v1052_v3, %v1051_v2  ;;  %v1053_v8 = vld [vmem:[%s1683_s5 + $0x130] sm:$0xff]  ;;  %v1054_v9 = vld [vmem:[%s1683_s5 + $0x138] sm:$0xff]  ;;  %v791_v10 = vld [vmem:[%s1680_s2] sm:$0xff] }
  0x15   : > { %1321 = vmatprep.subr.bf16.mxu1 %v1385_v0  ;;  %v1346_v11 = vpack.c.bf16 %v1054_v9, %v1053_v8  ;;  %v1056_v13 = vld [vmem:[%s1683_s5 + $0x148] sm:$0xff]  ;;  %v1057_v15 = vld [vmem:[%s1683_s5 + $0x150] sm:$0xff]  ;;  %v1058_v16 = vld [vmem:[%s1683_s5 + $0x158] sm:$0xff] }
  0x16   : > { %1142 = vmatmul.mubr.msk.f32.vlgmr.msra.gmra.mrb[0].mxu0 %vm297_vm1, %v296_v14  ;;  %v1352_v17 = vpack.c.bf16 %v1058_v16, %v1057_v15  ;;  %v1060_v18 = vld [vmem:[%s1683_s5 + $0x168] sm:$0xff]  ;;  %v871_v23 = vld [vmem:[%s1681_s3] sm:$0xff] }
  0x17   : > { %1284 = vmatpush3.bf16.msra.mxu0 %v1467_v12  ;;  %1148 = vmatprep.mubr.msk.f32.mxu0 %vm1386_vm0, %v1387_v1  ;;  %v872_v24 = vld [vmem:[%s1681_s3 + $0x8] sm:$0xff] }
  0x18   : > { %1285 = vmatprep.subr.bf16.mxu0 %v1385_v0  ;;  %1323 = vmatpush3.bf16.msra.mxu1 %v1322_v26  ;;  %v1361_v25 = vpack.c.bf16 %v872_v24, %v871_v23  ;;  %v873_v26 = vld [vmem:[%s1681_s3 + $0x10] sm:$0xff] }
  0x19   : > { %1324 = vmatprep.subr.bf16.mxu1 %v1385_v0 }
  0x1a   : > { %1149 = vmatmul.mubr.msk.f32.vlgmr.msra.gmra.mrb[2].mxu0 %vm297_vm1, %v1027_v20  ;;  %v1061_v20 = vld [vmem:[%s1683_s5 + $0x170] sm:$0xff] }
  0x1b   : > { %1287 = vmatpush3.bf16.msra.mxu0 %v1286_v21  ;;  %1183 = vmatprep.mubr.msk.f32.mxu0 %vm1386_vm0, %v1387_v1  ;;  %v1062_v21 = vld [vmem:[%s1683_s5 + $0x178] sm:$0xff] }
  0x1c   : > { %1288 = vmatprep.subr.bf16.mxu0 %v1385_v0  ;;  %1326 = vmatpush3.bf16.msra.mxu1 %v1325_v32  ;;  %v1358_v22 = vpack.c.bf16 %v1062_v21, %v1061_v20 }
  0x1d   : > { %1327 = vmatprep.subr.bf16.mxu1 %v1385_v0 }
  0x1f   : > { %1290 = vmatpush3.bf16.msra.mxu0 %v1289_v27  ;;  %v874_v27 = vld [vmem:[%s1681_s3 + $0x18] sm:$0xff] }
  0x20   : > { %1291 = vmatprep.subr.bf16.mxu0 %v1385_v0  ;;  %1329 = vmatpush3.bf16.msra.mxu1 %v1328_v38  ;;  %v1364_v28 = vpack.c.bf16 %v874_v27, %v873_v26  ;;  %v1063_v38 = vld [vmem:[%s1684_s6] ss:$0 sm:$0xff] }
  0x21   : > { %1330 = vmatprep.subr.bf16.mxu1 %v1385_v0 }
  0x23   : > { %1293 = vmatpush3.bf16.msra.mxu0 %v1292_v33 }
  0x24   : > { %1294 = vmatprep.subr.bf16.mxu0 %v1385_v0  ;;  %1332 = vmatpush3.bf16.msra.mxu1 %v1331_v44 }
  0x25   : > { %1336 = vmatprep.subr.bf16.mxu1 %v1385_v0 }
  0x27   : > { %1296 = vmatpush3.bf16.msra.mxu0 %v1295_v39 }
  0x28   : > { %1297 = vmatprep.subr.bf16.mxu0 %v1385_v0 }
  0x2b   : > { %1299 = vmatpush3.bf16.msra.mxu0 %v1298_v45 }
  0x2c   : > { %1300 = vmatprep.subr.bf16.mxu0 %v1385_v0 }
  0x2f   : > { %1302 = vmatpush3.bf16.msra.mxu0 %v1301_v48 }
  0x30   : > { %1303 = vmatprep.subr.bf16.mxu0 %v1385_v0 }
  0x33   : > { %1305 = vmatpush3.bf16.msra.mxu0 %v1304_v51 }
  0x34   : > { %1306 = vmatprep.subr.bf16.mxu0 %v1385_v0 }
  0x37   : > { %1308 = vmatpush3.bf16.msra.mxu0 %v1307_v54 }
  0x38   : > { %1333 = vmatprep.subr.bf16.mxu0 %v1385_v0 }
  0xe9   : > { %v367_v58 = vpop.f32.mrb[0].mxu0 }
  0xea   : > { %v1143_v61 = vpop.f32.mrb[1].mxu0  ;;  %1219 = vmatmul.mubr.f32.vlgmr.msra.gmra.mrb[0].mxu1 %v367_v58 }
  0xeb   : > { %1338 = vmatpush3.bf16.msra.mxu1 %v1337_v57  ;;  %1260 = vmatprep.mubr.msk.f32.mxu1 %vm1386_vm0, %v1387_v1 }
  0xec   : > { %1339 = vmatprep.subr.bf16.mxu1 %v1385_v0 }
  0xed   : > { %v458_v63 = vpop.f32.mrb[2].mxu0 }
  0xee   : > { %v1150_v4 = vpop.f32.mrb[3].mxu0  ;;  %1184 = vmatmul.mubr.f32.vlgmr.msra.gmra.mrb[4].mxu0 %v458_v63 }
  0xef   : > { %1335 = vmatpush3.bf16.msra.mxu0 %v1467_v12  ;;  %1225 = vmatprep.mubr.msk.f32.mxu0 %vm1386_vm0, %v1387_v1  ;;  %v1055_v12 = vld [vmem:[%s1683_s5 + $0x140] sm:$0xff] }
  0xf0   : > { %1263 = vmatprep.subr.mxu0 %v1387_v1  ;;  %1341 = vmatpush3.bf16.msra.mxu1 %v1340_v62  ;;  %v1349_v14 = vpack.c.bf16 %v1056_v13, %v1055_v12 }
  0xf1   : > { %1342 = vmatprep.subr.bf16.mxu1 %v1385_v0 }
  0xf2   : > { %1226 = vmatmul.mubr.msk.f32.vlgmr.msra.gmra.mrb[6].mxu0 %vm297_vm1, %v1045_v5 }
  0xf3   : > { %1264 = vmatpush3.msk.msra.mxu0 %vm797_vm2, %v792_v6  ;;  %1265 = vmatprep.mubr.msk.f32.mxu0 %vm1386_vm0, %v1387_v1 }
  0xf4   : > { %1344 = vmatpush3.bf16.msra.mxu1 %v1343_v7  ;;  %1360 = vmatprep.subr.bf16.mxu0 %v1385_v0 }
  0xf5   : > { %1345 = vmatprep.subr.bf16.mxu1 %v1385_v0 }
  0xf6   : > { %1266 = vmatmul.mubr.msk.f32.vlgmr.msra.gmra.mrb[8].mxu0 %vm793_vm3, %v791_v10 }
  0xf7   : > { %1276 = vmatprep.mubr.msk.f32.mxu0 %vm1386_vm0, %v1387_v1  ;;  %v1059_v1 = vld [vmem:[%s1683_s5 + $0x160] sm:$0xff]  ;;  %1362 = vmatpush3.bf16.msra.mxu0 %v1361_v25 }
  0xf8   : > { %1347 = vmatpush3.bf16.msra.mxu1 %v1346_v11  ;;  %v1355_v19 = vpack.c.bf16 %v1060_v18, %v1059_v1  ;;  %1363 = vmatprep.subr.bf16.mxu0 %v1385_v0 }
  0xf9   : > { %1348 = vmatprep.subr.bf16.mxu1 %v1385_v0 }
  0xfb   : > { %1365 = vmatpush3.bf16.msra.mxu0 %v1364_v28 }
  0xfc   : > { %1350 = vmatpush3.bf16.msra.mxu1 %v1349_v14 }
  0xfd   : > { %1351 = vmatprep.subr.bf16.mxu1 %v1385_v0 }
 0x100   : > { %1353 = vmatpush3.bf16.msra.mxu1 %v1352_v17 }
 0x101   : > { %1354 = vmatprep.subr.bf16.mxu1 %v1385_v0 }
 0x104   : > { %1356 = vmatpush3.bf16.msra.mxu1 %v1355_v19 }
 0x105   : > { %1357 = vmatprep.subr.bf16.mxu1 %v1385_v0 }
 0x108   : > { %1359 = vmatpush3.bf16.msra.mxu1 %v1358_v22 }
 0x1bd   : > { %v615_v29 = vpop.f32.mrb[0].mxu1 }
 0x1be   : > { %v1220_v30 = vpop.f32.mrb[1].mxu1 }
 0x1c1   : > { %v545_v31 = vpop.f32.mrb[4].mxu0 }
 0x1c2   : > { %v616_v32 = vadd.f32 %v615_v29, %v545_v31  ;;  %v1185_v33 = vpop.f32.mrb[5].mxu0 }
 0x1c5   : > { %v690_v34 = vpop.f32.mrb[6].mxu0 }
 0x1c6   : > { %v1227_v35 = vpop.f32.mrb[7].mxu0  ;;  %1261 = vmatmul.mubr.f32.vlgmr.msra.gmra.mrb[2].mxu1 %v690_v34 }
 0x1c9   : > { %v867_v0 = vpop.f32.mrb[8].mxu0 }
 0x1ca   : > { %v1267_v36 = vpop.f32.mrb[9].mxu0  ;;  %1277 = vmatmul.mubr.msk.f32.vlgmr.msra.gmra.mrb[10].mxu0 %vm875_vm4, %v867_v0 }
 0x299   : > { %v777_v37 = vpop.f32.mrb[2].mxu1 }
 0x29a   : > { %v781_v39 = vadd.f32 %v777_v37, %v616_v32  ;;  %v1262_v40 = vpop.f32.mrb[3].mxu1 }
 0x29c   : > { %v789_v41 = vadd.f32 %v1063_v38, %v781_v39 }
 0x29d   : > { %v945_v42 = vpop.f32.mrb[10].mxu0 }
 0x29e   : > { %v790_v43 = vmax.f32 %v789_v41, 0.0  ;;  %v1278_v44 = vpop.f32.mrb[11].mxu0 }
 0x2a0   : > { %v949_v45 = vadd.f32 %v945_v42, %v790_v43 }
 0x2a2   : > { %951 = vst.msk [vmem:[%s293_s23] sm:$0xff] %vm950_vm5, %v949_v45 }
 0x2a3 PF: > { %s17_s24 = sadd.s32 1, %s1383_s24  }
 0x2a4   : > { %p14_p4 = scmp.ge.s32.totalorder %s17_s24, 4  }
 0x2a6   :  { %16 = sbr.rel (!%p14_p4) target bundleno = 1 (0x1), region = 85 }

// kernel: u_shape_forward.12
= control target key start
LH: loop header
LB: loop body
LE: loop exit
PB: predicated region body
PF: predicated region fallthrough
CT: control target
= control target key end

     0   :  { %s952_s15 = smov 0   ;;  %s1090_s0 = inlined_call_operand.vmem [shape: f32[2,8,64], index: 0, kind: input, shape index: {}]   ;;  %s1091_s1 = inlined_call_operand.vmem [shape: f32[3,4,8], index: 1, kind: input, shape index: {}]   ;;  %s1092_s2 = inlined_call_operand.vmem [shape: f32[3,64,32], index: 2, kind: input, shape index: {}]   ;;  %s1093_s3 = inlined_call_operand.vmem [shape: f32[1,32], index: 3, kind: input, shape index: {}]   ;;  %s1094_s4 = inlined_call_operand.vmem [shape: f32[2,4,32], index: 4, kind: output, shape index: {}]  }
   0x1 LB: > { %s730_s16 = sadd.s32 4294967295, %s922_s15   ;;  %p734_p0 = scmp.ge.s32.totalorder %s922_s15, 1  ;;  %s922_s15 = sphi %s952_s15, %s14_s15  }
   0x2   : > { %p161_p1 = scmp.lt.s32.totalorder %s922_s15, 3 }
   0x4   : > { %p162_p2 = pnand %p734_p0, %p161_p1 }
   0x5   : > { %p185_p3 = scmp.lt.s32.totalorder (!%p162_p2), %s730_s16, 1  ;;  %v924_v0 = vmov (!%p162_p2), 0.0   ;;  %vm925_vm0 = vmmov (!%p162_p2), 0   ;;  %v269_v1 = vld [vmem:[%s1092_s2] sm:$0xff] (!%p162_p2)  ;;  %v270_v2 = vld [vmem:[%s1092_s2 + $0x8] sm:$0xff] (!%p162_p2)  ;;  %v926_v3 = vmov (!%p162_p2), 0.0|0.0  }
   0x6   : > { %165 = sbr.rel (%p162_p2) target bundleno = 669 (0x29d), region = 36  ;;  %797 = vmatprep.subr.mxu0 (!%p162_p2), %v924_v0  ;;  %799 = vmatprep.mubr.msk.f32.mxu0 (!%p162_p2), %vm925_vm0, %v924_v0  ;;  %v882_v4 = vpack.c.bf16 (!%p162_p2), %v270_v2, %v269_v1  ;;  %v271_v5 = vld [vmem:[%s1092_s2 + $0x10] sm:$0xff] (!%p162_p2)  ;;  %v272_v6 = vld [vmem:[%s1092_s2 + $0x18] sm:$0xff] (!%p162_p2)  ;;  %v194_v7 = vld [vmem:[%s1091_s1] sm:$0xf] (!%p162_p2)  ;;  %vm195_vm1 = vcmask (!%p162_p2), 64512  }
   0x7   : > { %881 = vmatprep.subr.bf16.mxu1 (!%p162_p2), %v926_v3  ;;  %842 = vmatprep.mubr.msk.f32.mxu1 (!%p162_p2), %vm925_vm0, %v924_v0  ;;  %v740_v9 = vld [vmem:[%s1092_s2 + $0x40] sm:$0xff] (!%p162_p2)  ;;  %v741_v10 = vld [vmem:[%s1092_s2 + $0x48] sm:$0xff] (!%p162_p2)  ;;  %v885_v11 = vpack.c.bf16 (!%p162_p2), %v272_v6, %v271_v5  ;;  %v742_v16 = vld [vmem:[%s1092_s2 + $0x50] sm:$0xff] (!%p162_p2)  ;;  %vm361_vm2 = vcmask (!%p162_p2), 523264   ;;  %vm675_vm3 = vcmask (!%p162_p2), 257024  }
   0x8   : > { %883 = vmatpush3.bf16.msra.mxu1 (!%p162_p2), %v882_v4  ;;  %v273_v12 = vld [vmem:[%s1092_s2 + $0x20] sm:$0xff] (!%p162_p2)  ;;  %v274_v13 = vld [vmem:[%s1092_s2 + $0x28] sm:$0xff] (!%p162_p2)  ;;  %v870_v15 = vpack.c.bf16 (!%p162_p2), %v741_v10, %v740_v9  ;;  %v743_v17 = vld [vmem:[%s1092_s2 + $0x58] sm:$0xff] (!%p162_p2) }
   0x9   : > { %884 = vmatprep.subr.bf16.mxu1 (!%p162_p2), %v926_v3  ;;  %v738_v14 = vld [vmem:[%s1091_s1 + $0x4] sm:$0xf] (!%p162_p2)  ;;  %v888_v18 = vpack.c.bf16 (!%p162_p2), %v274_v13, %v273_v12  ;;  %v275_v19 = vld [vmem:[%s1092_s2 + $0x30] sm:$0xff] (!%p162_p2)  ;;  %v276_v20 = vld [vmem:[%s1092_s2 + $0x38] sm:$0xff] (!%p162_p2)  ;;  %v873_v21 = vpack.c.bf16 (!%p162_p2), %v743_v17, %v742_v16 }
   0xa   : > { %v744_v22 = vld [vmem:[%s1092_s2 + $0x60] sm:$0xff] (!%p162_p2)  ;;  %v745_v23 = vld [vmem:[%s1092_s2 + $0x68] sm:$0xff] (!%p162_p2)  ;;  %v891_v24 = vpack.c.bf16 (!%p162_p2), %v276_v20, %v275_v19  ;;  %v746_v26 = vld [vmem:[%s1092_s2 + $0x70] sm:$0xff] (!%p162_p2) }
   0xb   : > { %v876_v25 = vpack.c.bf16 (!%p162_p2), %v745_v23, %v744_v22  ;;  %v747_v27 = vld [vmem:[%s1092_s2 + $0x78] sm:$0xff] (!%p162_p2)  ;;  %v752_v29 = vld [vmem:[%s1092_s2 + $0x80] sm:$0xff] (!%p162_p2)  ;;  %v753_v30 = vld [vmem:[%s1092_s2 + $0x88] sm:$0xff] (!%p162_p2) }
   0xc   : > { %886 = vmatpush3.bf16.msra.mxu1 (!%p162_p2), %v885_v11  ;;  %v879_v28 = vpack.c.bf16 (!%p162_p2), %v747_v27, %v746_v26  ;;  %v894_v31 = vpack.c.bf16 (!%p162_p2), %v753_v30, %v752_v29  ;;  %v754_v33 = vld [vmem:[%s1092_s2 + $0x90] sm:$0xff] (!%p162_p2)  ;;  %v755_v34 = vld [vmem:[%s1092_s2 + $0x98] sm:$0xff] (!%p162_p2)  ;;  %v750_v39 = vld [vmem:[%s1091_s1 + $0x8] sm:$0xf] (!%p162_p2) }
   0xd   : > { %s1096_s16 = smov (!%p185_p3, %s730_s16), 1  ;;  %887 = vmatprep.subr.bf16.mxu1 %v926_v3  ;;  %v897_v36 = vpack.c.bf16 %v755_v34, %v754_v33  ;;  %v756_v40 = vld [vmem:[%s1092_s2 + $0xa0] sm:$0xff]  ;;  %v757_v41 = vld [vmem:[%s1092_s2 + $0xa8] sm:$0xff]  ;;  %v758_v43 = vld [vmem:[%s1092_s2 + $0xb0] sm:$0xff] }
   0xe   : > { %s735_s25 = sshll.u32 %s1096_s16, 3  ;;  %v900_v42 = vpack.c.bf16 %v757_v41, %v756_v40  ;;  %v759_v44 = vld [vmem:[%s1092_s2 + $0xb8] sm:$0xff]  ;;  %v761_v54 = vld [vmem:[%s1093_s3] ss:$0 sm:$0xff]  ;;  %s736_s29 = sshll.u32 %s1096_s16, 2 }
   0xf   : > { %s188_s28 = scalar_lea.vmem %s1090_s0, %s735_s25  ;;  %v903_v45 = vpack.c.bf16 %v759_v44, %v758_v43  ;;  %s192_s6 = scalar_lea.vmem %s1094_s4, %s736_s29 }
  0x10   : > { %v193_v8 = vld [vmem:[%s188_s28] sm:$0xff]  ;;  %889 = vmatpush3.bf16.msra.mxu1 %v888_v18 }
  0x11   : > { %798 = vmatpush3.msra.mxu0 %v193_v8  ;;  %890 = vmatprep.subr.bf16.mxu1 %v926_v3 }
  0x12   : > { %800 = vmatmul.mubr.msk.f32.vlgmr.msra.gmra.mrb[0].mxu0 %vm195_vm1, %v194_v7  ;;  %802 = vmatprep.subr.mxu0 %v924_v0 }
  0x13   : > { %803 = vmatpush3.msra.mxu0 %v193_v8  ;;  %804 = vmatprep.mubr.msk.f32.mxu0 %vm925_vm0, %v924_v0 }
  0x14   : > { %869 = vmatprep.subr.bf16.mxu0 %v926_v3  ;;  %892 = vmatpush3.bf16.msra.mxu1 %v891_v24 }
  0x15   : > { %893 = vmatprep.subr.bf16.mxu1 %v926_v3 }
  0x16   : > { %805 = vmatmul.mubr.msk.f32.vlgmr.msra.gmra.mrb[2].mxu0 %vm195_vm1, %v738_v14 }
  0x17   : > { %871 = vmatpush3.bf16.msra.mxu0 %v870_v15  ;;  %823 = vmatprep.mubr.msk.f32.mxu0 %vm925_vm0, %v924_v0 }
  0x18   : > { %872 = vmatprep.subr.bf16.mxu0 %v926_v3 }
  0x1b   : > { %874 = vmatpush3.bf16.msra.mxu0 %v873_v21 }
  0x1c   : > { %875 = vmatprep.subr.bf16.mxu0 %v926_v3 }
  0x1f   : > { %877 = vmatpush3.bf16.msra.mxu0 %v876_v25 }
  0x20   : > { %878 = vmatprep.subr.bf16.mxu0 %v926_v3 }
  0x23   : > { %880 = vmatpush3.bf16.msra.mxu0 %v879_v28 }
  0x24   : > { %845 = vmatprep.subr.mxu0 %v924_v0 }
  0xe5   : > { %v265_v32 = vpop.f32.mrb[0].mxu0 }
  0xe6   : > { %v801_v35 = vpop.f32.mrb[1].mxu0  ;;  %843 = vmatmul.mubr.msk.f32.vlgmr.msra.gmra.mrb[0].mxu1 %vm361_vm2, %v265_v32 }
  0xe7   : > { %895 = vmatpush3.bf16.msra.mxu1 %v894_v31  ;;  %866 = vmatprep.mubr.msk.f32.mxu1 %vm925_vm0, %v924_v0 }
  0xe8   : > { %896 = vmatprep.subr.bf16.mxu1 %v926_v3 }
  0xe9   : > { %v348_v37 = vpop.f32.mrb[2].mxu0 }
  0xea   : > { %v806_v38 = vpop.f32.mrb[3].mxu0  ;;  %824 = vmatmul.mubr.msk.f32.vlgmr.msra.gmra.mrb[4].mxu0 %vm361_vm2, %v348_v37 }
  0xeb   : > { %846 = vmatpush3.msra.mxu0 %v193_v8  ;;  %847 = vmatprep.mubr.msk.f32.mxu0 %vm925_vm0, %v924_v0 }
  0xec   : > { %898 = vmatpush3.bf16.msra.mxu1 %v897_v36 }
  0xed   : > { %899 = vmatprep.subr.bf16.mxu1 %v926_v3 }
  0xee   : > { %848 = vmatmul.mubr.msk.f32.vlgmr.msra.gmra.mrb[6].mxu0 %vm195_vm1, %v750_v39 }
  0xf0   : > { %901 = vmatpush3.bf16.msra.mxu1 %v900_v42 }
  0xf1   : > { %902 = vmatprep.subr.bf16.mxu1 %v926_v3 }
  0xf4   : > { %904 = vmatpush3.bf16.msra.mxu1 %v903_v45 }
 0x1b9   : > { %v504_v46 = vpop.f32.mrb[0].mxu1 }
 0x1ba   : > { %v844_v47 = vpop.f32.mrb[1].mxu1 }
 0x1bd   : > { %v431_v48 = vpop.f32.mrb[4].mxu0 }
 0x1be   : > { %v505_v49 = vadd.f32 %v504_v46, %v431_v48  ;;  %v825_v50 = vpop.f32.mrb[5].mxu0 }
 0x1c1   : > { %v579_v51 = vpop.f32.mrb[6].mxu0 }
 0x1c2   : > { %v849_v52 = vpop.f32.mrb[7].mxu0  ;;  %867 = vmatmul.mubr.msk.f32.vlgmr.msra.gmra.mrb[2].mxu1 %vm361_vm2, %v579_v51 }
 0x295   : > { %v661_v53 = vpop.f32.mrb[2].mxu1 }
 0x296   : > { %v665_v55 = vadd.f32 %v661_v53, %v505_v49  ;;  %v868_v56 = vpop.f32.mrb[3].mxu1 }
 0x298   : > { %v673_v57 = vadd.f32 %v761_v54, %v665_v55 }
 0x29a   : > { %v674_v58 = vmax.f32 %v673_v57, 0.0 }
 0x29c   : > { %676 = vst.msk [vmem:[%s192_s6] sm:$0xf] %vm675_vm3, %v674_v58 }
 0x29d PF: > { %s14_s15 = sadd.s32 1, %s922_s15  }
 0x29e   : > { %p11_p4 = scmp.ge.s32.totalorder %s14_s15, 4  }
 0x2a0   :  { %13 = sbr.rel (!%p11_p4) target bundleno = 1 (0x1), region = 70 }

// kernel: u_shape_forward.14
= control target key start
LH: loop header
LB: loop body
LE: loop exit
PB: predicated region body
PF: predicated region fallthrough
CT: control target
= control target key end

     0   :  { %s848_s15 = smov 0   ;;  %s917_s0 = inlined_call_operand.vmem [shape: f32[2,2,16], index: 0, kind: input, shape index: {}]   ;;  %s918_s1 = inlined_call_operand.vmem [shape: f32[3,2,2], index: 1, kind: input, shape index: {}]   ;;  %s919_s2 = inlined_call_operand.vmem [shape: f32[3,16,16], index: 2, kind: input, shape index: {}]   ;;  %s920_s3 = inlined_call_operand.vmem [shape: f32[1,16], index: 3, kind: input, shape index: {}]   ;;  %s921_s4 = inlined_call_operand.vmem [shape: f32[2,2,16], index: 4, kind: output, shape index: {}]  }
   0x1 LB: > { %s716_s16 = sadd.s32 4294967295, %s818_s15   ;;  %p720_p0 = scmp.ge.s32.totalorder %s818_s15, 1  ;;  %s818_s15 = sphi %s848_s15, %s14_s15  }
   0x2   : > { %p161_p1 = scmp.lt.s32.totalorder %s818_s15, 3 }
   0x4   : > { %p162_p2 = pnand %p720_p0, %p161_p1 }
   0x5   : > { %p185_p3 = scmp.lt.s32.totalorder (!%p162_p2), %s716_s16, 1  ;;  %v820_v0 = vmov (!%p162_p2), 0.0   ;;  %vm821_vm0 = vmmov (!%p162_p2), 0   ;;  %v728_v1 = vld [vmem:[%s919_s2 + $0x10] sm:$0xff] (!%p162_p2)  ;;  %v729_v2 = vld [vmem:[%s919_s2 + $0x18] sm:$0xff] (!%p162_p2)  ;;  %v273_v3 = vld [vmem:[%s919_s2] sm:$0xff] (!%p162_p2) }
   0x6   : > { %165 = sbr.rel (%p162_p2) target bundleno = 665 (0x299), region = 36  ;;  %756 = vmatprep.subr.mxu0 (!%p162_p2), %v820_v0  ;;  %761 = vmatprep.subr.mxu1 (!%p162_p2), %v820_v0  ;;  %v274_v4 = vld [vmem:[%s919_s2 + $0x8] sm:$0xff] (!%p162_p2)  ;;  %vm199_vm1 = vcmask (!%p162_p2), 1041408   ;;  %v194_v5 = vld [vmem:[%s918_s1] sm:$0x3] (!%p162_p2)  ;;  %vm195_vm2 = vcmask (!%p162_p2), 15360   ;;  %v793_v8 = vpack.c.bf16 (!%p162_p2), %v729_v2, %v728_v1 }
   0x7   : > { %758 = vmatprep.mubr.msk.f32.mxu0 (!%p162_p2), %vm821_vm0, %v820_v0  ;;  %763 = vmatprep.mubr.msk.f32.mxu1 (!%p162_p2), %vm821_vm0, %v820_v0  ;;  %v725_v6 = vld [vmem:[%s918_s1 + $0x2] sm:$0x3] (!%p162_p2)  ;;  %v796_v9 = vpack.c.bf16 (!%p162_p2), %v274_v4, %v273_v3  ;;  %v822_v10 = vmov (!%p162_p2), 0.0|0.0   ;;  %vm353_vm3 = vcmask (!%p162_p2), 130048   ;;  %v732_v15 = vld [vmem:[%s918_s1 + $0x4] sm:$0x3] (!%p162_p2) }
   0x8   : > { %v735_v16 = vld [vmem:[%s919_s2 + $0x20] sm:$0xff] (!%p162_p2)  ;;  %v736_v17 = vld [vmem:[%s919_s2 + $0x28] sm:$0xff] (!%p162_p2)  ;;  %vm661_vm4 = vcmask (!%p162_p2), 123904  }
   0x9   : > { %v799_v18 = vpack.c.bf16 (!%p162_p2), %v736_v17, %v735_v16  ;;  %v738_v27 = vld [vmem:[%s920_s3] ss:$0 sm:$0xff] (!%p162_p2) }
   0xd   : > { %s923_s16 = smov (!%p185_p3, %s716_s16), 1 }
   0xe   : > { %s721_s25 = sshll.u32 %s923_s16, 1 }
   0xf   : > { %s188_s28 = scalar_lea.vmem %s917_s0, %s721_s25  ;;  %s192_s19 = scalar_lea.vmem %s921_s4, %s721_s25 }
  0x10   : > { %v193_v7 = vld [vmem:[%s188_s28] sm:$0x3] }
  0x11   : > { %757 = vmatpush3.msk.msra.mxu0 %vm199_vm1, %v193_v7  ;;  %762 = vmatpush3.msk.msra.mxu1 %vm199_vm1, %v193_v7 }
  0x12   : > { %759 = vmatmul.mubr.msk.f32.vlgmr.msra.gmra.mrb[0].mxu0 %vm195_vm2, %v194_v5  ;;  %764 = vmatmul.mubr.msk.f32.vlgmr.msra.gmra.mrb[0].mxu1 %vm195_vm2, %v725_v6 }
  0x13   : > { %792 = vmatprep.subr.bf16.mxu0 %v822_v10  ;;  %795 = vmatprep.subr.bf16.mxu1 %v822_v10 }
  0x14   : > { %794 = vmatpush3.bf16.msra.mxu0 %v793_v8  ;;  %797 = vmatpush3.bf16.msra.mxu1 %v796_v9 }
  0x15   : > { %770 = vmatprep.mubr.msk.f32.mxu0 %vm821_vm0, %v820_v0  ;;  %777 = vmatprep.mubr.msk.f32.mxu1 %vm821_vm0, %v820_v0 }
  0x16   : > { %780 = vmatprep.subr.mxu0 %v820_v0  ;;  %798 = vmatprep.subr.bf16.mxu1 %v822_v10 }
  0xe5   : > { %v269_v11 = vpop.f32.mrb[0].mxu0  ;;  %v346_v12 = vpop.f32.mrb[0].mxu1 }
  0xe6   : > { %v765_v13 = vpop.f32.mrb[1].mxu1  ;;  %771 = vmatmul.mubr.msk.f32.vlgmr.msra.gmra.mrb[2].mxu0 %vm353_vm3, %v346_v12  ;;  %778 = vmatmul.mubr.msk.f32.vlgmr.msra.gmra.mrb[2].mxu1 %vm353_vm3, %v269_v11  ;;  %v760_v14 = vpop.f32.mrb[1].mxu0 }
  0xe7   : > { %781 = vmatpush3.msk.msra.mxu0 %vm199_vm1, %v193_v7  ;;  %782 = vmatprep.mubr.msk.f32.mxu0 %vm821_vm0, %v820_v0 }
  0xe8   : > { %789 = vmatprep.mubr.msk.f32.mxu1 %vm821_vm0, %v820_v0  ;;  %800 = vmatpush3.bf16.msra.mxu1 %v799_v18 }
  0xea   : > { %783 = vmatmul.mubr.msk.f32.vlgmr.msra.gmra.mrb[4].mxu0 %vm195_vm2, %v732_v15 }
 0x1b9   : > { %v423_v19 = vpop.f32.mrb[2].mxu0  ;;  %v496_v20 = vpop.f32.mrb[2].mxu1 }
 0x1ba   : > { %v497_v21 = vadd.f32 %v496_v20, %v423_v19  ;;  %v772_v22 = vpop.f32.mrb[3].mxu0  ;;  %v779_v23 = vpop.f32.mrb[3].mxu1 }
 0x1bd   : > { %v571_v24 = vpop.f32.mrb[4].mxu0 }
 0x1be   : > { %v784_v25 = vpop.f32.mrb[5].mxu0  ;;  %790 = vmatmul.mubr.msk.f32.vlgmr.msra.gmra.mrb[4].mxu1 %vm353_vm3, %v571_v24 }
 0x291   : > { %v647_v26 = vpop.f32.mrb[4].mxu1 }
 0x292   : > { %v651_v28 = vadd.f32 %v647_v26, %v497_v21  ;;  %v791_v29 = vpop.f32.mrb[5].mxu1 }
 0x294   : > { %v659_v30 = vadd.f32 %v738_v27, %v651_v28 }
 0x296   : > { %v660_v31 = vmax.f32 %v659_v30, 0.0 }
 0x298   : > { %662 = vst.msk [vmem:[%s192_s19] sm:$0x3] %vm661_vm4, %v660_v31 }
 0x299 PF: > { %s14_s15 = sadd.s32 1, %s818_s15  }
 0x29a   : > { %p11_p4 = scmp.ge.s32.totalorder %s14_s15, 4  }
 0x29c   :  { %13 = sbr.rel (!%p11_p4) target bundleno = 1 (0x1), region = 70 }

// kernel: u_shape_forward.13
= control target key start
LH: loop header
LB: loop body
LE: loop exit
PB: predicated region body
PF: predicated region fallthrough
CT: control target
= control target key end

     0   :  { %s885_s15 = smov 0   ;;  %s969_s0 = inlined_call_operand.vmem [shape: f32[2,4,32], index: 0, kind: input, shape index: {}]   ;;  %s970_s1 = inlined_call_operand.vmem [shape: f32[3,2,4], index: 1, kind: input, shape index: {}]   ;;  %s971_s2 = inlined_call_operand.vmem [shape: f32[3,32,16], index: 2, kind: input, shape index: {}]   ;;  %s972_s3 = inlined_call_operand.vmem [shape: f32[1,16], index: 3, kind: input, shape index: {}]   ;;  %s973_s4 = inlined_call_operand.vmem [shape: f32[2,2,16], index: 4, kind: output, shape index: {}]  }
   0x1 LB: > { %s722_s16 = sadd.s32 4294967295, %s855_s15   ;;  %p726_p0 = scmp.ge.s32.totalorder %s855_s15, 1  ;;  %s855_s15 = sphi %s885_s15, %s14_s15  }
   0x2   : > { %p161_p1 = scmp.lt.s32.totalorder %s855_s15, 3 }
   0x4   : > { %p162_p2 = pnand %p726_p0, %p161_p1 }
   0x5   : > { %p185_p3 = scmp.lt.s32.totalorder (!%p162_p2), %s722_s16, 1  ;;  %v857_v0 = vmov (!%p162_p2), 0.0   ;;  %vm858_vm0 = vmmov (!%p162_p2), 0   ;;  %v734_v1 = vld [vmem:[%s971_s2 + $0x20] sm:$0xff] (!%p162_p2)  ;;  %v735_v2 = vld [vmem:[%s971_s2 + $0x28] sm:$0xff] (!%p162_p2)  ;;  %vm199_vm1 = vcmask (!%p162_p2), 1043456  }
   0x6   : > { %165 = sbr.rel (%p162_p2) target bundleno = 665 (0x299), region = 36  ;;  %772 = vmatprep.subr.mxu0 (!%p162_p2), %v857_v0  ;;  %777 = vmatprep.subr.mxu1 (!%p162_p2), %v857_v0  ;;  %v273_v3 = vld [vmem:[%s971_s2] sm:$0xff] (!%p162_p2)  ;;  %v274_v4 = vld [vmem:[%s971_s2 + $0x8] sm:$0xff] (!%p162_p2)  ;;  %vm195_vm2 = vcmask (!%p162_p2), 31744   ;;  %v821_v8 = vpack.c.bf16 (!%p162_p2), %v735_v2, %v734_v1  ;;  %v736_v10 = vld [vmem:[%s971_s2 + $0x30] sm:$0xff] (!%p162_p2)  ;;  %v859_v14 = vmov (!%p162_p2), 0.0|0.0  }
   0x7   : > { %774 = vmatprep.mubr.msk.f32.mxu0 (!%p162_p2), %vm858_vm0, %v857_v0  ;;  %779 = vmatprep.mubr.msk.f32.mxu1 (!%p162_p2), %vm858_vm0, %v857_v0  ;;  %v194_v5 = vld [vmem:[%s970_s1] sm:$0x3] (!%p162_p2)  ;;  %v731_v6 = vld [vmem:[%s970_s1 + $0x2] sm:$0x3] (!%p162_p2)  ;;  %v827_v9 = vpack.c.bf16 (!%p162_p2), %v274_v4, %v273_v3  ;;  %v737_v11 = vld [vmem:[%s971_s2 + $0x38] sm:$0xff] (!%p162_p2)  ;;  %vm357_vm3 = vcmask (!%p162_p2), 261120  }
   0x8   : > { %v275_v12 = vld [vmem:[%s971_s2 + $0x10] sm:$0xff] (!%p162_p2)  ;;  %v276_v13 = vld [vmem:[%s971_s2 + $0x18] sm:$0xff] (!%p162_p2)  ;;  %v824_v15 = vpack.c.bf16 (!%p162_p2), %v737_v11, %v736_v10  ;;  %v743_v17 = vld [vmem:[%s971_s2 + $0x40] sm:$0xff] (!%p162_p2)  ;;  %vm667_vm4 = vcmask (!%p162_p2), 123904  }
   0x9   : > { %v830_v16 = vpack.c.bf16 (!%p162_p2), %v276_v13, %v275_v12  ;;  %v744_v18 = vld [vmem:[%s971_s2 + $0x48] sm:$0xff] (!%p162_p2)  ;;  %v740_v24 = vld [vmem:[%s970_s1 + $0x4] sm:$0x3] (!%p162_p2)  ;;  %v745_v25 = vld [vmem:[%s971_s2 + $0x50] sm:$0xff] (!%p162_p2) }
   0xa   : > { %v833_v19 = vpack.c.bf16 (!%p162_p2), %v744_v18, %v743_v17  ;;  %v746_v26 = vld [vmem:[%s971_s2 + $0x58] sm:$0xff] (!%p162_p2)  ;;  %v748_v36 = vld [vmem:[%s972_s3] ss:$0 sm:$0xff] (!%p162_p2) }
   0xb   : > { %v836_v27 = vpack.c.bf16 (!%p162_p2), %v746_v26, %v745_v25 }
   0xd   : > { %s975_s16 = smov (!%p185_p3, %s722_s16), 1 }
   0xe   : > { %s727_s25 = sshll.u32 %s975_s16, 2  ;;  %s728_s29 = sshll.u32 %s975_s16, 1 }
   0xf   : > { %s188_s28 = scalar_lea.vmem %s969_s0, %s727_s25  ;;  %s192_s6 = scalar_lea.vmem %s973_s4, %s728_s29 }
  0x10   : > { %v193_v7 = vld [vmem:[%s188_s28] sm:$0xf] }
  0x11   : > { %773 = vmatpush3.msk.msra.mxu0 %vm199_vm1, %v193_v7  ;;  %778 = vmatpush3.msk.msra.mxu1 %vm199_vm1, %v193_v7 }
  0x12   : > { %775 = vmatmul.mubr.msk.f32.vlgmr.msra.gmra.mrb[0].mxu0 %vm195_vm2, %v194_v5  ;;  %780 = vmatmul.mubr.msk.f32.vlgmr.msra.gmra.mrb[0].mxu1 %vm195_vm2, %v731_v6 }
  0x13   : > { %820 = vmatprep.subr.bf16.mxu0 %v859_v14  ;;  %826 = vmatprep.subr.bf16.mxu1 %v859_v14 }
  0x14   : > { %822 = vmatpush3.bf16.msra.mxu0 %v821_v8  ;;  %828 = vmatpush3.bf16.msra.mxu1 %v827_v9 }
  0x15   : > { %823 = vmatprep.subr.bf16.mxu0 %v859_v14  ;;  %829 = vmatprep.subr.bf16.mxu1 %v859_v14 }
  0x16   : > { %790 = vmatprep.mubr.msk.f32.mxu0 %vm858_vm0, %v857_v0  ;;  %801 = vmatprep.mubr.msk.f32.mxu1 %vm858_vm0, %v857_v0 }
  0x18   : > { %825 = vmatpush3.bf16.msra.mxu0 %v824_v15  ;;  %831 = vmatpush3.bf16.msra.mxu1 %v830_v16 }
  0x19   : > { %804 = vmatprep.subr.mxu0 %v857_v0  ;;  %832 = vmatprep.subr.bf16.mxu1 %v859_v14 }
  0xe5   : > { %v269_v20 = vpop.f32.mrb[0].mxu0  ;;  %v348_v21 = vpop.f32.mrb[0].mxu1 }
  0xe6   : > { %v781_v22 = vpop.f32.mrb[1].mxu1  ;;  %791 = vmatmul.mubr.msk.f32.vlgmr.msra.gmra.mrb[2].mxu0 %vm357_vm3, %v348_v21  ;;  %802 = vmatmul.mubr.msk.f32.vlgmr.msra.gmra.mrb[2].mxu1 %vm357_vm3, %v269_v20  ;;  %v776_v23 = vpop.f32.mrb[1].mxu0 }
  0xe7   : > { %805 = vmatpush3.msk.msra.mxu0 %vm199_vm1, %v193_v7  ;;  %806 = vmatprep.mubr.msk.f32.mxu0 %vm858_vm0, %v857_v0 }
  0xe8   : > { %834 = vmatpush3.bf16.msra.mxu1 %v833_v19  ;;  %817 = vmatprep.mubr.msk.f32.mxu1 %vm858_vm0, %v857_v0 }
  0xe9   : > { %835 = vmatprep.subr.bf16.mxu1 %v859_v14 }
  0xea   : > { %807 = vmatmul.mubr.msk.f32.vlgmr.msra.gmra.mrb[4].mxu0 %vm195_vm2, %v740_v24 }
  0xec   : > { %837 = vmatpush3.bf16.msra.mxu1 %v836_v27 }
 0x1b9   : > { %v427_v28 = vpop.f32.mrb[2].mxu0  ;;  %v500_v29 = vpop.f32.mrb[2].mxu1 }
 0x1ba   : > { %v501_v30 = vadd.f32 %v500_v29, %v427_v28  ;;  %v792_v31 = vpop.f32.mrb[3].mxu0  ;;  %v803_v32 = vpop.f32.mrb[3].mxu1 }
 0x1bd   : > { %v575_v33 = vpop.f32.mrb[4].mxu0 }
 0x1be   : > { %v808_v34 = vpop.f32.mrb[5].mxu0  ;;  %818 = vmatmul.mubr.msk.f32.vlgmr.msra.gmra.mrb[4].mxu1 %vm357_vm3, %v575_v33 }
 0x291   : > { %v653_v35 = vpop.f32.mrb[4].mxu1 }
 0x292   : > { %v657_v37 = vadd.f32 %v653_v35, %v501_v30  ;;  %v819_v38 = vpop.f32.mrb[5].mxu1 }
 0x294   : > { %v665_v39 = vadd.f32 %v748_v36, %v657_v37 }
 0x296   : > { %v666_v40 = vmax.f32 %v665_v39, 0.0 }
 0x298   : > { %668 = vst.msk [vmem:[%s192_s6] sm:$0x3] %vm667_vm4, %v666_v40 }
 0x299 PF: > { %s14_s15 = sadd.s32 1, %s855_s15  }
 0x29a   : > { %p11_p4 = scmp.ge.s32.totalorder %s14_s15, 4  }
 0x29c   :  { %13 = sbr.rel (!%p11_p4) target bundleno = 1 (0x1), region = 70 }

// kernel: u_shape_forward.15
= control target key start
LH: loop header
LB: loop body
LE: loop exit
PB: predicated region body
PF: predicated region fallthrough
CT: control target
= control target key end

     0   :  { %s1151_s24 = smov 0   ;;  %s1235_s0 = inlined_call_operand.vmem [shape: f32[2,2,16], index: 0, kind: input, shape index: {}]   ;;  %s1236_s1 = inlined_call_operand.vmem [shape: f32[2,2,16], index: 1, kind: input, shape index: {}]   ;;  %s1237_s2 = inlined_call_operand.vmem [shape: f32[2,2], index: 2, kind: input, shape index: {}]   ;;  %s1238_s3 = inlined_call_operand.vmem [shape: f32[16,16], index: 3, kind: input, shape index: {}]   ;;  %s1239_s4 = inlined_call_operand.vmem [shape: f32[3,2,2], index: 4, kind: input, shape index: {}]   ;;  %s1240_s5 = inlined_call_operand.vmem [shape: f32[3,16,16], index: 5, kind: input, shape index: {}]   ;;  %s1241_s6 = inlined_call_operand.vmem [shape: f32[1,16], index: 6, kind: input, shape index: {}]   ;;  %s1242_s7 = inlined_call_operand.vmem [shape: f32[2,2,16], index: 7, kind: output, shape index: {}]  }
   0x1 LB: > { %s980_s25 = sadd.s32 4294967295, %s1106_s24   ;;  %p984_p0 = scmp.ge.s32.totalorder %s1106_s24, 1  ;;  %s1106_s24 = sphi %s1151_s24, %s17_s24  }
   0x2   : > { %p245_p1 = scmp.lt.s32.totalorder %s1106_s24, 3 }
   0x4   : > { %p246_p2 = pnand %p984_p0, %p245_p1 }
   0x5   : > { %p279_p3 = scmp.lt.s32.totalorder (!%p246_p2), %s980_s25, 1  ;;  %v1108_v0 = vmov (!%p246_p2), 0.0   ;;  %vm1109_vm0 = vmmov (!%p246_p2), 0   ;;  %v372_v1 = vld [vmem:[%s1238_s3] sm:$0xff] (!%p246_p2)  ;;  %v373_v2 = vld [vmem:[%s1238_s3 + $0x8] sm:$0xff] (!%p246_p2)  ;;  %v1110_v3 = vmov (!%p246_p2), 0.0|0.0  }
   0x6   : > { %249 = sbr.rel (%p246_p2) target bundleno = 1092 (0x444), region = 48  ;;  %1029 = vmatprep.subr.mxu0 (!%p246_p2), %v1108_v0  ;;  %1031 = vmatprep.mubr.msk.f32.mxu0 (!%p246_p2), %vm1109_vm0, %v1108_v0  ;;  %v1078_v4 = vpack.c.bf16 (!%p246_p2), %v373_v2, %v372_v1  ;;  %vm298_vm1 = vcmask (!%p246_p2), 1041408   ;;  %v292_v5 = vld [vmem:[%s1237_s2] sm:$0x3] (!%p246_p2)  ;;  %vm294_vm2 = vcmask (!%p246_p2), 15360   ;;  %vm374_vm3 = vcmask (!%p246_p2), 130048  }
   0x7   : > { %1077 = vmatprep.subr.bf16.mxu1 (!%p246_p2), %v1110_v3  ;;  %1038 = vmatprep.mubr.msk.f32.mxu1 (!%p246_p2), %vm1109_vm0, %v1108_v0  ;;  %v996_v10 = vld [vmem:[%s1240_s5 + $0x10] sm:$0xff] (!%p246_p2)  ;;  %v997_v11 = vld [vmem:[%s1240_s5 + $0x18] sm:$0xff] (!%p246_p2)  ;;  %v993_v15 = vld [vmem:[%s1239_s4 + $0x2] sm:$0x3] (!%p246_p2)  ;;  %vm913_vm4 = vcmask (!%p246_p2), 123904  }
   0x8   : > { %1079 = vmatpush3.bf16.msra.mxu1 (!%p246_p2), %v1078_v4  ;;  %v449_v16 = vld [vmem:[%s1239_s4] sm:$0x3] (!%p246_p2)  ;;  %v1081_v17 = vpack.c.bf16 (!%p246_p2), %v997_v11, %v996_v10  ;;  %v527_v19 = vld [vmem:[%s1240_s5 + $0x8] sm:$0xff] (!%p246_p2)  ;;  %v1000_v25 = vld [vmem:[%s1239_s4 + $0x4] sm:$0x3] (!%p246_p2) }
   0x9   : > { %1046 = vmatprep.subr.mxu1 (!%p246_p2), %v1108_v0  ;;  %v526_v18 = vld [vmem:[%s1240_s5] sm:$0xff] (!%p246_p2)  ;;  %v1004_v27 = vld [vmem:[%s1240_s5 + $0x28] sm:$0xff] (!%p246_p2) }
   0xa   : > { %v1084_v20 = vpack.c.bf16 (!%p246_p2), %v527_v19, %v526_v18  ;;  %v1003_v26 = vld [vmem:[%s1240_s5 + $0x20] sm:$0xff] (!%p246_p2) }
   0xb   : > { %v1087_v28 = vpack.c.bf16 (!%p246_p2), %v1004_v27, %v1003_v26  ;;  %v1006_v37 = vld [vmem:[%s1241_s6] ss:$0 sm:$0xff] (!%p246_p2) }
   0xd   : > { %s1244_s25 = smov (!%p279_p3, %s980_s25), 1 }
   0xe   : > { %s1167_s30 = sshll.u32 %s1244_s25, 1 }
   0xf   : > { %s286_s10 = scalar_lea.vmem %s1236_s1, %s1167_s30  ;;  %s282_s15 = scalar_lea.vmem %s1235_s0, %s1167_s30 }
  0x10   : > { %v293_v6 = vld [vmem:[%s286_s10] sm:$0x3]  ;;  %s290_s17 = scalar_lea.vmem %s1242_s7, %s1167_s30 }
  0x11   : > { %1030 = vmatpush3.msk.msra.mxu0 %vm298_vm1, %v293_v6  ;;  %v291_v9 = vld [vmem:[%s282_s15] sm:$0x3] }
  0x12   : > { %1032 = vmatmul.mubr.msk.f32.vlgmr.msra.gmra.mrb[0].mxu0 %vm294_vm2, %v292_v5  ;;  %1041 = vmatprep.subr.mxu0 %v1108_v0 }
  0x13   : > { %1043 = vmatprep.mubr.msk.f32.mxu0 %vm1109_vm0, %v1108_v0 }
  0xe5   : > { %v368_v7 = vpop.f32.mrb[0].mxu0 }
  0xe6   : > { %v1033_v8 = vpop.f32.mrb[1].mxu0  ;;  %1039 = vmatmul.mubr.msk.f32.vlgmr.msra.gmra.mrb[0].mxu1 %vm374_vm3, %v368_v7 }
  0xe7   : > { %1048 = vmatprep.mubr.msk.f32.mxu1 %vm1109_vm0, %v1108_v0 }
 0x1b9   : > { %v444_v12 = vpop.f32.mrb[0].mxu1 }
 0x1ba   : > { %v448_v13 = vadd.f32 %v444_v12, %v291_v9  ;;  %v1040_v14 = vpop.f32.mrb[1].mxu1 }
 0x1bc   : > { %1042 = vmatpush3.msk.msra.mxu0 %vm298_vm1, %v448_v13  ;;  %1047 = vmatpush3.msk.msra.mxu1 %vm298_vm1, %v448_v13 }
 0x1bd   : > { %1049 = vmatmul.mubr.msk.f32.vlgmr.msra.gmra.mrb[2].mxu1 %vm294_vm2, %v993_v15  ;;  %1044 = vmatmul.mubr.msk.f32.vlgmr.msra.gmra.mrb[2].mxu0 %vm294_vm2, %v449_v16 }
 0x1be   : > { %1080 = vmatprep.subr.bf16.mxu0 %v1110_v3  ;;  %1055 = vmatprep.mubr.msk.f32.mxu0 %vm1109_vm0, %v1108_v0 }
 0x1bf   : > { %1082 = vmatpush3.bf16.msra.mxu0 %v1081_v17  ;;  %1083 = vmatprep.subr.bf16.mxu1 %v1110_v3 }
 0x1c0   : > { %1065 = vmatprep.subr.mxu0 %v1108_v0  ;;  %1062 = vmatprep.mubr.msk.f32.mxu1 %vm1109_vm0, %v1108_v0 }
 0x1c1   : > { %1085 = vmatpush3.bf16.msra.mxu1 %v1084_v20 }
 0x1c2   : > { %1086 = vmatprep.subr.bf16.mxu1 %v1110_v3 }
 0x290   : > { %v599_v21 = vpop.f32.mrb[2].mxu1  ;;  %v522_v22 = vpop.f32.mrb[2].mxu0 }
 0x291   : > { %1056 = vmatmul.mubr.msk.f32.vlgmr.msra.gmra.mrb[4].mxu0 %vm374_vm3, %v599_v21  ;;  %v1050_v23 = vpop.f32.mrb[3].mxu1  ;;  %1063 = vmatmul.mubr.msk.f32.vlgmr.msra.gmra.mrb[4].mxu1 %vm374_vm3, %v522_v22  ;;  %v1045_v24 = vpop.f32.mrb[3].mxu0 }
 0x292   : > { %1066 = vmatpush3.msk.msra.mxu0 %vm298_vm1, %v448_v13  ;;  %1067 = vmatprep.mubr.msk.f32.mxu0 %vm1109_vm0, %v1108_v0 }
 0x293   : > { %1074 = vmatprep.mubr.msk.f32.mxu1 %vm1109_vm0, %v1108_v0  ;;  %1088 = vmatpush3.bf16.msra.mxu1 %v1087_v28 }
 0x295   : > { %1068 = vmatmul.mubr.msk.f32.vlgmr.msra.gmra.mrb[6].mxu0 %vm294_vm2, %v1000_v25 }
 0x364   : > { %v675_v29 = vpop.f32.mrb[4].mxu0  ;;  %v748_v30 = vpop.f32.mrb[4].mxu1 }
 0x365   : > { %v1057_v31 = vpop.f32.mrb[5].mxu0  ;;  %v749_v32 = vadd.f32 %v748_v30, %v675_v29  ;;  %v1064_v33 = vpop.f32.mrb[5].mxu1 }
 0x368   : > { %v823_v34 = vpop.f32.mrb[6].mxu0 }
 0x369   : > { %1075 = vmatmul.mubr.msk.f32.vlgmr.msra.gmra.mrb[6].mxu1 %vm374_vm3, %v823_v34  ;;  %v1069_v35 = vpop.f32.mrb[7].mxu0 }
 0x43c   : > { %v899_v36 = vpop.f32.mrb[6].mxu1 }
 0x43d   : > { %v903_v38 = vadd.f32 %v899_v36, %v749_v32  ;;  %v1076_v39 = vpop.f32.mrb[7].mxu1 }
 0x43f   : > { %v911_v40 = vadd.f32 %v1006_v37, %v903_v38 }
 0x441   : > { %v912_v41 = vmax.f32 %v911_v40, 0.0 }
 0x443   : > { %914 = vst.msk [vmem:[%s290_s17] sm:$0x3] %vm913_vm4, %v912_v41 }
 0x444 PF: > { %s17_s24 = sadd.s32 1, %s1106_s24  }
 0x445   : > { %p14_p4 = scmp.ge.s32.totalorder %s17_s24, 4  }
 0x447   :  { %16 = sbr.rel (!%p14_p4) target bundleno = 1 (0x1), region = 85 }

// kernel: u_shape_forward.16
= control target key start
LH: loop header
LB: loop body
LE: loop exit
PB: predicated region body
PF: predicated region fallthrough
CT: control target
= control target key end

     0   :  { %s1191_s24 = smov 0   ;;  %s1312_s0 = inlined_call_operand.vmem [shape: f32[2,4,32], index: 0, kind: input, shape index: {}]   ;;  %s1313_s1 = inlined_call_operand.vmem [shape: f32[2,2,16], index: 1, kind: input, shape index: {}]   ;;  %s1314_s2 = inlined_call_operand.vmem [shape: f32[4,2], index: 2, kind: input, shape index: {}]   ;;  %s1315_s3 = inlined_call_operand.vmem [shape: f32[16,32], index: 3, kind: input, shape index: {}]   ;;  %s1316_s4 = inlined_call_operand.vmem [shape: f32[3,4,4], index: 4, kind: input, shape index: {}]   ;;  %s1317_s5 = inlined_call_operand.vmem [shape: f32[3,32,32], index: 5, kind: input, shape index: {}]   ;;  %s1318_s6 = inlined_call_operand.vmem [shape: f32[1,32], index: 6, kind: input, shape index: {}]   ;;  %s1319_s7 = inlined_call_operand.vmem [shape: f32[2,4,32], index: 7, kind: output, shape index: {}]  }
   0x1 LB: > { %s989_s25 = sadd.s32 4294967295, %s1146_s24   ;;  %p993_p0 = scmp.ge.s32.totalorder %s1146_s24, 1  ;;  %s1146_s24 = sphi %s1191_s24, %s17_s24  }
   0x2   : > { %p245_p1 = scmp.lt.s32.totalorder %s1146_s24, 3 }
   0x4   : > { %p246_p2 = pnand %p993_p0, %p245_p1 }
   0x5   : > { %p279_p3 = scmp.lt.s32.totalorder (!%p246_p2), %s989_s25, 1  ;;  %v1148_v0 = vmov (!%p246_p2), 0.0   ;;  %vm1149_vm0 = vmmov (!%p246_p2), 0   ;;  %v372_v1 = vld [vmem:[%s1315_s3] sm:$0xff] (!%p246_p2)  ;;  %v373_v2 = vld [vmem:[%s1315_s3 + $0x8] sm:$0xff] (!%p246_p2)  ;;  %vm298_vm1 = vcmask (!%p246_p2), 1041408  }
   0x6   : > { %249 = sbr.rel (%p246_p2) target bundleno = 1092 (0x444), region = 48  ;;  %1048 = vmatprep.subr.mxu0 (!%p246_p2), %v1148_v0  ;;  %1050 = vmatprep.mubr.msk.f32.mxu0 (!%p246_p2), %vm1149_vm0, %v1148_v0  ;;  %v292_v3 = vld [vmem:[%s1314_s2] sm:$0xf] (!%p246_p2)  ;;  %vm294_vm2 = vcmask (!%p246_p2), 15360   ;;  %v1109_v4 = vpack.c.bf16 (!%p246_p2), %v373_v2, %v372_v1  ;;  %v1150_v6 = vmov (!%p246_p2), 0.0|0.0   ;;  %vm374_vm3 = vcmask (!%p246_p2), 130048  }
   0x7   : > { %1065 = vmatprep.subr.mxu1 (!%p246_p2), %v1148_v0  ;;  %1067 = vmatprep.mubr.msk.f32.mxu1 (!%p246_p2), %vm1149_vm0, %v1148_v0  ;;  %v1005_v10 = vld [vmem:[%s1317_s5 + $0x20] sm:$0xff] (!%p246_p2)  ;;  %v1006_v11 = vld [vmem:[%s1317_s5 + $0x28] sm:$0xff] (!%p246_p2)  ;;  %vm454_vm4 = vcmask (!%p246_p2), 1043456   ;;  %vm450_vm5 = vcmask (!%p246_p2), 31744   ;;  %v1007_v21 = vld [vmem:[%s1317_s5 + $0x30] sm:$0xff] (!%p246_p2)  ;;  %vm612_vm6 = vcmask (!%p246_p2), 261120  }
   0x8   : > { %v528_v12 = vld [vmem:[%s1317_s5] sm:$0xff] (!%p246_p2)  ;;  %v529_v13 = vld [vmem:[%s1317_s5 + $0x8] sm:$0xff] (!%p246_p2)  ;;  %v1112_v19 = vpack.c.bf16 (!%p246_p2), %v1006_v11, %v1005_v10  ;;  %v1008_v22 = vld [vmem:[%s1317_s5 + $0x38] sm:$0xff] (!%p246_p2)  ;;  %vm922_vm7 = vcmask (!%p246_p2), 257024  }
   0x9   : > { %v449_v17 = vld [vmem:[%s1316_s4] sm:$0xf] (!%p246_p2)  ;;  %v1002_v18 = vld [vmem:[%s1316_s4 + $0x4] sm:$0xf] (!%p246_p2)  ;;  %v1118_v20 = vpack.c.bf16 (!%p246_p2), %v529_v13, %v528_v12  ;;  %v530_v23 = vld [vmem:[%s1317_s5 + $0x10] sm:$0xff] (!%p246_p2)  ;;  %v1115_v25 = vpack.c.bf16 (!%p246_p2), %v1008_v22, %v1007_v21 }
   0xa   : > { %v531_v24 = vld [vmem:[%s1317_s5 + $0x18] sm:$0xff] (!%p246_p2)  ;;  %v1014_v27 = vld [vmem:[%s1317_s5 + $0x40] sm:$0xff] (!%p246_p2)  ;;  %v1015_v28 = vld [vmem:[%s1317_s5 + $0x48] sm:$0xff] (!%p246_p2) }
   0xb   : > { %v1121_v26 = vpack.c.bf16 (!%p246_p2), %v531_v24, %v530_v23  ;;  %v1124_v29 = vpack.c.bf16 (!%p246_p2), %v1015_v28, %v1014_v27  ;;  %v1011_v34 = vld [vmem:[%s1316_s4 + $0x8] sm:$0xf] (!%p246_p2)  ;;  %v1016_v35 = vld [vmem:[%s1317_s5 + $0x50] sm:$0xff] (!%p246_p2)  ;;  %v1017_v36 = vld [vmem:[%s1317_s5 + $0x58] sm:$0xff] (!%p246_p2) }
   0xc   : > { %v1127_v37 = vpack.c.bf16 (!%p246_p2), %v1017_v36, %v1016_v35  ;;  %v1019_v46 = vld [vmem:[%s1318_s6] ss:$0 sm:$0xff] (!%p246_p2) }
   0xd   : > { %s1321_s25 = smov (!%p279_p3, %s989_s25), 1 }
   0xe   : > { %s995_s30 = sshll.u32 %s1321_s25, 1  ;;  %s994_s13 = sshll.u32 %s1321_s25, 2 }
   0xf   : > { %s286_s10 = scalar_lea.vmem %s1313_s1, %s995_s30  ;;  %s282_s16 = scalar_lea.vmem %s1312_s0, %s994_s13 }
  0x10   : > { %v293_v5 = vld [vmem:[%s286_s10] sm:$0x3]  ;;  %s290_s10 = scalar_lea.vmem %s1319_s7, %s994_s13 }
  0x11   : > { %1049 = vmatpush3.msk.msra.mxu0 %vm298_vm1, %v293_v5  ;;  %v291_v9 = vld [vmem:[%s282_s16] sm:$0xf] }
  0x12   : > { %1051 = vmatmul.mubr.msk.f32.vlgmr.msra.gmra.mrb[0].mxu0 %vm294_vm2, %v292_v3  ;;  %1108 = vmatprep.subr.bf16.mxu0 %v1150_v6 }
  0x13   : > { %1110 = vmatpush3.bf16.msra.mxu0 %v1109_v4  ;;  %1057 = vmatprep.mubr.msk.f32.mxu0 %vm1149_vm0, %v1148_v0 }
  0x14   : > { %1060 = vmatprep.subr.mxu0 %v1148_v0 }
  0xe5   : > { %v368_v7 = vpop.f32.mrb[0].mxu0 }
  0xe6   : > { %v1052_v8 = vpop.f32.mrb[1].mxu0  ;;  %1058 = vmatmul.mubr.msk.f32.vlgmr.msra.gmra.mrb[2].mxu0 %vm374_vm3, %v368_v7 }
  0xe7   : > { %1062 = vmatprep.mubr.msk.f32.mxu0 %vm1149_vm0, %v1148_v0 }
 0x1b9   : > { %v444_v14 = vpop.f32.mrb[2].mxu0 }
 0x1ba   : > { %v448_v15 = vadd.f32 %v444_v14, %v291_v9  ;;  %v1059_v16 = vpop.f32.mrb[3].mxu0 }
 0x1bc   : > { %1061 = vmatpush3.msk.msra.mxu0 %vm454_vm4, %v448_v15  ;;  %1066 = vmatpush3.msk.msra.mxu1 %vm454_vm4, %v448_v15 }
 0x1bd   : > { %1063 = vmatmul.mubr.msk.f32.vlgmr.msra.gmra.mrb[4].mxu0 %vm450_vm5, %v449_v17  ;;  %1068 = vmatmul.mubr.msk.f32.vlgmr.msra.gmra.mrb[0].mxu1 %vm450_vm5, %v1002_v18 }
 0x1be   : > { %1111 = vmatprep.subr.bf16.mxu0 %v1150_v6  ;;  %1117 = vmatprep.subr.bf16.mxu1 %v1150_v6 }
 0x1bf   : > { %1113 = vmatpush3.bf16.msra.mxu0 %v1112_v19  ;;  %1119 = vmatpush3.bf16.msra.mxu1 %v1118_v20 }
 0x1c0   : > { %1114 = vmatprep.subr.bf16.mxu0 %v1150_v6  ;;  %1120 = vmatprep.subr.bf16.mxu1 %v1150_v6 }
 0x1c1   : > { %1078 = vmatprep.mubr.msk.f32.mxu0 %vm1149_vm0, %v1148_v0  ;;  %1089 = vmatprep.mubr.msk.f32.mxu1 %vm1149_vm0, %v1148_v0 }
 0x1c3   : > { %1116 = vmatpush3.bf16.msra.mxu0 %v1115_v25  ;;  %1122 = vmatpush3.bf16.msra.mxu1 %v1121_v26 }
 0x1c4   : > { %1092 = vmatprep.subr.mxu0 %v1148_v0  ;;  %1123 = vmatprep.subr.bf16.mxu1 %v1150_v6 }
 0x290   : > { %v524_v30 = vpop.f32.mrb[4].mxu0  ;;  %v603_v31 = vpop.f32.mrb[0].mxu1 }
 0x291   : > { %v1069_v32 = vpop.f32.mrb[1].mxu1  ;;  %1079 = vmatmul.mubr.msk.f32.vlgmr.msra.gmra.mrb[6].mxu0 %vm612_vm6, %v603_v31  ;;  %1090 = vmatmul.mubr.msk.f32.vlgmr.msra.gmra.mrb[2].mxu1 %vm612_vm6, %v524_v30  ;;  %v1064_v33 = vpop.f32.mrb[5].mxu0 }
 0x292   : > { %1093 = vmatpush3.msk.msra.mxu0 %vm454_vm4, %v448_v15  ;;  %1094 = vmatprep.mubr.msk.f32.mxu0 %vm1149_vm0, %v1148_v0 }
 0x293   : > { %1125 = vmatpush3.bf16.msra.mxu1 %v1124_v29  ;;  %1105 = vmatprep.mubr.msk.f32.mxu1 %vm1149_vm0, %v1148_v0 }
 0x294   : > { %1126 = vmatprep.subr.bf16.mxu1 %v1150_v6 }
 0x295   : > { %1095 = vmatmul.mubr.msk.f32.vlgmr.msra.gmra.mrb[8].mxu0 %vm450_vm5, %v1011_v34 }
 0x297   : > { %1128 = vmatpush3.bf16.msra.mxu1 %v1127_v37 }
 0x364   : > { %v682_v38 = vpop.f32.mrb[6].mxu0  ;;  %v755_v39 = vpop.f32.mrb[2].mxu1 }
 0x365   : > { %v756_v40 = vadd.f32 %v755_v39, %v682_v38  ;;  %v1080_v41 = vpop.f32.mrb[7].mxu0  ;;  %v1091_v42 = vpop.f32.mrb[3].mxu1 }
 0x368   : > { %v830_v43 = vpop.f32.mrb[8].mxu0 }
 0x369   : > { %v1096_v44 = vpop.f32.mrb[9].mxu0  ;;  %1106 = vmatmul.mubr.msk.f32.vlgmr.msra.gmra.mrb[4].mxu1 %vm612_vm6, %v830_v43 }
 0x43c   : > { %v908_v45 = vpop.f32.mrb[4].mxu1 }
 0x43d   : > { %v912_v47 = vadd.f32 %v908_v45, %v756_v40  ;;  %v1107_v48 = vpop.f32.mrb[5].mxu1 }
 0x43f   : > { %v920_v49 = vadd.f32 %v1019_v46, %v912_v47 }
 0x441   : > { %v921_v50 = vmax.f32 %v920_v49, 0.0 }
 0x443   : > { %923 = vst.msk [vmem:[%s290_s10] sm:$0xf] %vm922_vm7, %v921_v50 }
 0x444 PF: > { %s17_s24 = sadd.s32 1, %s1146_s24  }
 0x445   : > { %p14_p4 = scmp.ge.s32.totalorder %s17_s24, 4  }
 0x447   :  { %16 = sbr.rel (!%p14_p4) target bundleno = 1 (0x1), region = 85 }

// kernel: u_shape_forward.17
= control target key start
LH: loop header
LB: loop body
LE: loop exit
PB: predicated region body
PF: predicated region fallthrough
CT: control target
= control target key end

     0   :  { %s1268_s24 = smov 0   ;;  %s1436_s0 = inlined_call_operand.vmem [shape: f32[2,8,64], index: 0, kind: input, shape index: {}]   ;;  %s1437_s1 = inlined_call_operand.vmem [shape: f32[2,4,32], index: 1, kind: input, shape index: {}]   ;;  %s1438_s2 = inlined_call_operand.vmem [shape: f32[8,4], index: 2, kind: input, shape index: {}]   ;;  %s1439_s3 = inlined_call_operand.vmem [shape: f32[32,64], index: 3, kind: input, shape index: {}]   ;;  %s1440_s4 = inlined_call_operand.vmem [shape: f32[3,8,8], index: 4, kind: input, shape index: {}]   ;;  %s1441_s5 = inlined_call_operand.vmem [shape: f32[3,64,64], index: 5, kind: input, shape index: {}]   ;;  %s1442_s6 = inlined_call_operand.vmem [shape: f32[1,64], index: 6, kind: input, shape index: {}]   ;;  %s1443_s7 = inlined_call_operand.vmem [shape: f32[2,8,64], index: 7, kind: output, shape index: {}]  }
   0x1 LB: > { %s998_s25 = sadd.s32 4294967295, %s1223_s24   ;;  %p1002_p0 = scmp.ge.s32.totalorder %s1223_s24, 1  ;;  %s1223_s24 = sphi %s1268_s24, %s17_s24  }
   0x2   : > { %p245_p1 = scmp.lt.s32.totalorder %s1223_s24, 3 }
   0x4   : > { %p246_p2 = pnand %p1002_p0, %p245_p1 }
   0x5   : > { %p279_p3 = scmp.lt.s32.totalorder (!%p246_p2), %s998_s25, 1  ;;  %v1225_v0 = vmov (!%p246_p2), 0.0   ;;  %vm1226_vm0 = vmmov (!%p246_p2), 0   ;;  %v372_v1 = vld [vmem:[%s1439_s3] sm:$0xff] (!%p246_p2)  ;;  %v373_v2 = vld [vmem:[%s1439_s3 + $0x8] sm:$0xff] (!%p246_p2)  ;;  %vm298_vm1 = vcmask (!%p246_p2), 1043456  }
   0x6   : > { %249 = sbr.rel (%p246_p2) target bundleno = 1092 (0x444), region = 48  ;;  %1076 = vmatprep.subr.mxu1 (!%p246_p2), %v1225_v0  ;;  %1078 = vmatprep.mubr.msk.f32.mxu1 (!%p246_p2), %vm1226_vm0, %v1225_v0  ;;  %v292_v3 = vld [vmem:[%s1438_s2] sm:$0xff] (!%p246_p2)  ;;  %vm294_vm2 = vcmask (!%p246_p2), 31744   ;;  %v1165_v4 = vpack.c.bf16 (!%p246_p2), %v373_v2, %v372_v1  ;;  %v374_v6 = vld [vmem:[%s1439_s3 + $0x10] sm:$0xff] (!%p246_p2)  ;;  %v375_v7 = vld [vmem:[%s1439_s3 + $0x18] sm:$0xff] (!%p246_p2)  ;;  %v1227_v8 = vmov (!%p246_p2), 0.0|0.0  }
   0x7   : > { %1097 = vmatprep.subr.mxu0 (!%p246_p2), %v1225_v0  ;;  %1099 = vmatprep.mubr.msk.f32.mxu0 (!%p246_p2), %vm1226_vm0, %v1225_v0  ;;  %v1168_v9 = vpack.c.bf16 (!%p246_p2), %v375_v7, %v374_v6  ;;  %vm376_vm3 = vcmask (!%p246_p2), 261120   ;;  %v1012_v13 = vld [vmem:[%s1441_s5 + $0x40] sm:$0xff] (!%p246_p2)  ;;  %v1013_v14 = vld [vmem:[%s1441_s5 + $0x48] sm:$0xff] (!%p246_p2)  ;;  %vm452_vm4 = vcmask (!%p246_p2), 64512   ;;  %v1014_v24 = vld [vmem:[%s1441_s5 + $0x50] sm:$0xff] (!%p246_p2)  ;;  %vm618_vm5 = vcmask (!%p246_p2), 523264  }
   0x8   : > { %v526_v15 = vld [vmem:[%s1441_s5] sm:$0xff] (!%p246_p2)  ;;  %v527_v16 = vld [vmem:[%s1441_s5 + $0x8] sm:$0xff] (!%p246_p2)  ;;  %v1171_v22 = vpack.c.bf16 (!%p246_p2), %v1013_v14, %v1012_v13  ;;  %v1015_v25 = vld [vmem:[%s1441_s5 + $0x58] sm:$0xff] (!%p246_p2) }
   0x9   : > { %v451_v20 = vld [vmem:[%s1440_s4] sm:$0xff] (!%p246_p2)  ;;  %v1010_v21 = vld [vmem:[%s1440_s4 + $0x8] sm:$0xff] (!%p246_p2)  ;;  %v1183_v23 = vpack.c.bf16 (!%p246_p2), %v527_v16, %v526_v15  ;;  %v528_v26 = vld [vmem:[%s1441_s5 + $0x10] sm:$0xff] (!%p246_p2)  ;;  %v1174_v28 = vpack.c.bf16 (!%p246_p2), %v1015_v25, %v1014_v24 }
   0xa   : > { %v529_v27 = vld [vmem:[%s1441_s5 + $0x18] sm:$0xff] (!%p246_p2)  ;;  %v1016_v30 = vld [vmem:[%s1441_s5 + $0x60] sm:$0xff] (!%p246_p2)  ;;  %v1017_v31 = vld [vmem:[%s1441_s5 + $0x68] sm:$0xff] (!%p246_p2) }
   0xb   : > { %v1186_v29 = vpack.c.bf16 (!%p246_p2), %v529_v27, %v528_v26  ;;  %v530_v32 = vld [vmem:[%s1441_s5 + $0x20] sm:$0xff] (!%p246_p2)  ;;  %v531_v33 = vld [vmem:[%s1441_s5 + $0x28] sm:$0xff] (!%p246_p2)  ;;  %v1177_v34 = vpack.c.bf16 (!%p246_p2), %v1017_v31, %v1016_v30  ;;  %v1018_v36 = vld [vmem:[%s1441_s5 + $0x70] sm:$0xff] (!%p246_p2) }
   0xc   : > { %v1189_v35 = vpack.c.bf16 (!%p246_p2), %v531_v33, %v530_v32  ;;  %v1019_v37 = vld [vmem:[%s1441_s5 + $0x78] sm:$0xff] (!%p246_p2)  ;;  %v532_v38 = vld [vmem:[%s1441_s5 + $0x30] sm:$0xff] (!%p246_p2)  ;;  %v1024_v42 = vld [vmem:[%s1441_s5 + $0x80] sm:$0xff] (!%p246_p2) }
   0xd   : > { %s1445_s25 = smov (!%p279_p3, %s998_s25), 1  ;;  %v533_v39 = vld [vmem:[%s1441_s5 + $0x38] sm:$0xff]  ;;  %v1180_v40 = vpack.c.bf16 %v1019_v37, %v1018_v36  ;;  %v1025_v43 = vld [vmem:[%s1441_s5 + $0x88] sm:$0xff]  ;;  %v1026_v47 = vld [vmem:[%s1441_s5 + $0x90] sm:$0xff] }
   0xe   : > { %s1004_s30 = sshll.u32 %s1445_s25, 2  ;;  %s1003_s17 = sshll.u32 %s1445_s25, 3  ;;  %v1192_v41 = vpack.c.bf16 %v533_v39, %v532_v38  ;;  %v1195_v44 = vpack.c.bf16 %v1025_v43, %v1024_v42  ;;  %v1027_v48 = vld [vmem:[%s1441_s5 + $0x98] sm:$0xff]  ;;  %v1022_v51 = vld [vmem:[%s1440_s4 + $0x10] sm:$0xff]  ;;  %v1028_v53 = vld [vmem:[%s1441_s5 + $0xa0] sm:$0xff] }
   0xf   : > { %s286_s10 = scalar_lea.vmem %s1437_s1, %s1004_s30  ;;  %s282_s20 = scalar_lea.vmem %s1436_s0, %s1003_s17  ;;  %v1198_v52 = vpack.c.bf16 %v1027_v48, %v1026_v47  ;;  %v1029_v54 = vld [vmem:[%s1441_s5 + $0xa8] sm:$0xff]  ;;  %v1030_v56 = vld [vmem:[%s1441_s5 + $0xb0] sm:$0xff]  ;;  %v1031_v57 = vld [vmem:[%s1441_s5 + $0xb8] sm:$0xff] }
  0x10   : > { %v293_v5 = vld [vmem:[%s286_s10] sm:$0xf]  ;;  %v1201_v55 = vpack.c.bf16 %v1029_v54, %v1028_v53  ;;  %v1204_v58 = vpack.c.bf16 %v1031_v57, %v1030_v56  ;;  %s290_s19 = scalar_lea.vmem %s1443_s7, %s1003_s17 }
  0x11   : > { %1077 = vmatpush3.msk.msra.mxu1 %vm298_vm1, %v293_v5  ;;  %v291_v12 = vld [vmem:[%s282_s20] sm:$0xff] }
  0x12   : > { %1079 = vmatmul.mubr.msk.f32.vlgmr.msra.gmra.mrb[0].mxu1 %vm294_vm2, %v292_v3  ;;  %1164 = vmatprep.subr.bf16.mxu1 %v1227_v8  ;;  %v1033_v3 = vld [vmem:[%s1442_s6] ss:$0 sm:$0xff] }
  0x13   : > { %1166 = vmatpush3.bf16.msra.mxu1 %v1165_v4  ;;  %1089 = vmatprep.mubr.msk.f32.mxu1 %vm1226_vm0, %v1225_v0 }
  0x14   : > { %1167 = vmatprep.subr.bf16.mxu1 %v1227_v8 }
  0x17   : > { %1169 = vmatpush3.bf16.msra.mxu1 %v1168_v9 }
  0x18   : > { %1092 = vmatprep.subr.mxu1 %v1225_v0 }
  0xe5   : > { %v368_v10 = vpop.f32.mrb[0].mxu1 }
  0xe6   : > { %v1080_v11 = vpop.f32.mrb[1].mxu1  ;;  %1090 = vmatmul.mubr.msk.f32.vlgmr.msra.gmra.mrb[2].mxu1 %vm376_vm3, %v368_v10 }
  0xe7   : > { %1094 = vmatprep.mubr.msk.f32.mxu1 %vm1226_vm0, %v1225_v0 }
 0x1b9   : > { %v446_v17 = vpop.f32.mrb[2].mxu1 }
 0x1ba   : > { %v450_v18 = vadd.f32 %v446_v17, %v291_v12  ;;  %v1091_v19 = vpop.f32.mrb[3].mxu1 }
 0x1bc   : > { %1093 = vmatpush3.msra.mxu1 %v450_v18  ;;  %1098 = vmatpush3.msra.mxu0 %v450_v18 }
 0x1bd   : > { %1095 = vmatmul.mubr.msk.f32.vlgmr.msra.gmra.mrb[4].mxu1 %vm452_vm4, %v451_v20  ;;  %1100 = vmatmul.mubr.msk.f32.vlgmr.msra.gmra.mrb[0].mxu0 %vm452_vm4, %v1010_v21 }
 0x1be   : > { %1170 = vmatprep.subr.bf16.mxu1 %v1227_v8  ;;  %1182 = vmatprep.subr.bf16.mxu0 %v1227_v8 }
 0x1bf   : > { %1172 = vmatpush3.bf16.msra.mxu1 %v1171_v22  ;;  %1184 = vmatpush3.bf16.msra.mxu0 %v1183_v23 }
 0x1c0   : > { %1173 = vmatprep.subr.bf16.mxu1 %v1227_v8  ;;  %1185 = vmatprep.subr.bf16.mxu0 %v1227_v8 }
 0x1c1   : > { %1118 = vmatprep.mubr.msk.f32.mxu1 %vm1226_vm0, %v1225_v0  ;;  %1137 = vmatprep.mubr.msk.f32.mxu0 %vm1226_vm0, %v1225_v0 }
 0x1c3   : > { %1175 = vmatpush3.bf16.msra.mxu1 %v1174_v28  ;;  %1187 = vmatpush3.bf16.msra.mxu0 %v1186_v29 }
 0x1c4   : > { %1176 = vmatprep.subr.bf16.mxu1 %v1227_v8  ;;  %1188 = vmatprep.subr.bf16.mxu0 %v1227_v8 }
 0x1c7   : > { %1178 = vmatpush3.bf16.msra.mxu1 %v1177_v34  ;;  %1190 = vmatpush3.bf16.msra.mxu0 %v1189_v35 }
 0x1c8   : > { %1179 = vmatprep.subr.bf16.mxu1 %v1227_v8  ;;  %1191 = vmatprep.subr.bf16.mxu0 %v1227_v8 }
 0x1cb   : > { %1181 = vmatpush3.bf16.msra.mxu1 %v1180_v40  ;;  %1193 = vmatpush3.bf16.msra.mxu0 %v1192_v41 }
 0x1cc   : > { %1140 = vmatprep.subr.mxu1 %v1225_v0  ;;  %1194 = vmatprep.subr.bf16.mxu0 %v1227_v8 }
 0x290   : > { %v522_v45 = vpop.f32.mrb[4].mxu1  ;;  %v605_v46 = vpop.f32.mrb[0].mxu0 }
 0x291   : > { %v1101_v49 = vpop.f32.mrb[1].mxu0  ;;  %1119 = vmatmul.mubr.msk.f32.vlgmr.msra.gmra.mrb[6].mxu1 %vm618_vm5, %v605_v46  ;;  %1138 = vmatmul.mubr.msk.f32.vlgmr.msra.gmra.mrb[2].mxu0 %vm618_vm5, %v522_v45  ;;  %v1096_v50 = vpop.f32.mrb[5].mxu1 }
 0x292   : > { %1141 = vmatpush3.msra.mxu1 %v450_v18  ;;  %1142 = vmatprep.mubr.msk.f32.mxu1 %vm1226_vm0, %v1225_v0 }
 0x293   : > { %1196 = vmatpush3.bf16.msra.mxu0 %v1195_v44  ;;  %1161 = vmatprep.mubr.msk.f32.mxu0 %vm1226_vm0, %v1225_v0 }
 0x294   : > { %1197 = vmatprep.subr.bf16.mxu0 %v1227_v8 }
 0x295   : > { %1143 = vmatmul.mubr.msk.f32.vlgmr.msra.gmra.mrb[8].mxu1 %vm452_vm4, %v1022_v51 }
 0x297   : > { %1199 = vmatpush3.bf16.msra.mxu0 %v1198_v52 }
 0x298   : > { %1200 = vmatprep.subr.bf16.mxu0 %v1227_v8 }
 0x29b   : > { %1202 = vmatpush3.bf16.msra.mxu0 %v1201_v55 }
 0x29c   : > { %1203 = vmatprep.subr.bf16.mxu0 %v1227_v8 }
 0x29f   : > { %1205 = vmatpush3.bf16.msra.mxu0 %v1204_v58 }
 0x364   : > { %v688_v59 = vpop.f32.mrb[6].mxu1  ;;  %v761_v60 = vpop.f32.mrb[2].mxu0 }
 0x365   : > { %v762_v61 = vadd.f32 %v761_v60, %v688_v59  ;;  %v1120_v62 = vpop.f32.mrb[7].mxu1  ;;  %v1139_v63 = vpop.f32.mrb[3].mxu0 }
 0x368   : > { %v836_v0 = vpop.f32.mrb[8].mxu1 }
 0x369   : > { %v1144_v1 = vpop.f32.mrb[9].mxu1  ;;  %1162 = vmatmul.mubr.msk.f32.vlgmr.msra.gmra.mrb[4].mxu0 %vm618_vm5, %v836_v0 }
 0x43c   : > { %v918_v2 = vpop.f32.mrb[4].mxu0 }
 0x43d   : > { %v922_v4 = vadd.f32 %v918_v2, %v762_v61  ;;  %v1163_v5 = vpop.f32.mrb[5].mxu0 }
 0x43f   : > { %v930_v6 = vadd.f32 %v1033_v3, %v922_v4 }
 0x441   : > { %v931_v7 = vmax.f32 %v930_v6, 0.0 }
 0x443   : > { %932 = vst.msk [vmem:[%s290_s19] sm:$0xff] %vm618_vm5, %v931_v7 }
 0x444 PF: > { %s17_s24 = sadd.s32 1, %s1223_s24  }
 0x445   : > { %p14_p4 = scmp.ge.s32.totalorder %s17_s24, 4  }
 0x447   :  { %16 = sbr.rel (!%p14_p4) target bundleno = 1 (0x1), region = 85 }

// kernel: u_shape_forward.18
= control target key start
LH: loop header
LB: loop body
LE: loop exit
PB: predicated region body
PF: predicated region fallthrough
CT: control target
= control target key end

     0   :  { %s1558_s24 = smov 0   ;;  %s1797_s0 = inlined_call_operand.vmem [shape: f32[2,16,128], index: 0, kind: input, shape index: {}]   ;;  %s1798_s1 = inlined_call_operand.vmem [shape: f32[2,8,64], index: 1, kind: input, shape index: {}]   ;;  %s1799_s2 = inlined_call_operand.vmem [shape: f32[16,8], index: 2, kind: input, shape index: {}]   ;;  %s1800_s3 = inlined_call_operand.vmem [shape: f32[64,128], index: 3, kind: input, shape index: {}]   ;;  %s1801_s4 = inlined_call_operand.vmem [shape: f32[3,16,16], index: 4, kind: input, shape index: {}]   ;;  %s1802_s5 = inlined_call_operand.vmem [shape: f32[3,128,128], index: 5, kind: input, shape index: {}]   ;;  %s1803_s6 = inlined_call_operand.vmem [shape: f32[1,128], index: 6, kind: input, shape index: {}]   ;;  %s1804_s7 = inlined_call_operand.vmem [shape: f32[2,16,128], index: 7, kind: output, shape index: {}]  }
   0x1 LB: > { %s1084_s25 = sadd.s32 4294967295, %s1516_s24   ;;  %p1088_p0 = scmp.ge.s32.totalorder %s1516_s24, 1  ;;  %s1516_s24 = sphi %s1558_s24, %s17_s24  }
   0x2   : > { %p246_p1 = scmp.lt.s32.totalorder %s1516_s24, 3 }
   0x4   : > { %p247_p2 = pnand %p1088_p0, %p246_p1 }
   0x5   : > { %p282_p3 = scmp.lt.s32.totalorder (!%p247_p2), %s1084_s25, 1  ;;  %v298_v0 = vld [vmem:[%s1799_s2] sm:$0xff] (!%p247_p2)  ;;  %vm301_vm0 = vcmask (!%p247_p2), 64512   ;;  %v384_v2 = vld [vmem:[%s1800_s3 + $0x8] sm:$0xff] (!%p247_p2)  ;;  %v385_v3 = vld [vmem:[%s1800_s3 + $0x10] sm:$0xff] (!%p247_p2)  ;;  %vm391_vm1 = vcmask (!%p247_p2), 523264  }
   0x6   : > { %250 = sbr.rel (%p247_p2) target bundleno = 1110 (0x456), region = 48  ;;  %1226 = vmatprep.mubr.msk.f32.mxu1 (!%p247_p2), %vm301_vm0, %v298_v0  ;;  %v383_v1 = vld [vmem:[%s1800_s3] sm:$0xff] (!%p247_p2)  ;;  %v386_v4 = vld [vmem:[%s1800_s3 + $0x18] sm:$0xff] (!%p247_p2)  ;;  %v299_v7 = vld [vmem:[%s1799_s2 + $0x8] sm:$0xff] (!%p247_p2)  ;;  %vm477_vm2 = vcmask (!%p247_p2), 130048  }
   0x7   : > { %v1374_v5 = vpack.c.bf16 (!%p247_p2), %v384_v2, %v383_v1  ;;  %v1378_v8 = vpack.c.bf16 (!%p247_p2), %v386_v4, %v385_v3  ;;  %v387_v9 = vld [vmem:[%s1800_s3 + $0x20] sm:$0xff] (!%p247_p2)  ;;  %v388_v10 = vld [vmem:[%s1800_s3 + $0x28] sm:$0xff] (!%p247_p2)  ;;  %v389_v12 = vld [vmem:[%s1800_s3 + $0x30] sm:$0xff] (!%p247_p2) }
   0x8   : > { %v1382_v11 = vpack.c.bf16 (!%p247_p2), %v388_v10, %v387_v9  ;;  %v390_v13 = vld [vmem:[%s1800_s3 + $0x38] sm:$0xff] (!%p247_p2)  ;;  %v475_v17 = vld [vmem:[%s1801_s4] sm:$0xff] (!%p247_p2)  ;;  %v560_v19 = vld [vmem:[%s1802_s5 + $0x8] sm:$0xff] (!%p247_p2) }
   0x9   : > { %v1386_v14 = vpack.c.bf16 (!%p247_p2), %v390_v13, %v389_v12  ;;  %v559_v18 = vld [vmem:[%s1802_s5] sm:$0xff] (!%p247_p2)  ;;  %v561_v20 = vld [vmem:[%s1802_s5 + $0x10] sm:$0xff] (!%p247_p2)  ;;  %v562_v22 = vld [vmem:[%s1802_s5 + $0x18] sm:$0xff] (!%p247_p2) }
   0xa   : > { %v1430_v21 = vpack.c.bf16 (!%p247_p2), %v560_v19, %v559_v18  ;;  %v1434_v23 = vpack.c.bf16 (!%p247_p2), %v562_v22, %v561_v20  ;;  %v563_v24 = vld [vmem:[%s1802_s5 + $0x20] sm:$0xff] (!%p247_p2)  ;;  %v564_v25 = vld [vmem:[%s1802_s5 + $0x28] sm:$0xff] (!%p247_p2)  ;;  %v565_v27 = vld [vmem:[%s1802_s5 + $0x30] sm:$0xff] (!%p247_p2) }
   0xb   : > { %v1438_v26 = vpack.c.bf16 (!%p247_p2), %v564_v25, %v563_v24  ;;  %v566_v28 = vld [vmem:[%s1802_s5 + $0x38] sm:$0xff] (!%p247_p2)  ;;  %v567_v30 = vld [vmem:[%s1802_s5 + $0x40] sm:$0xff] (!%p247_p2)  ;;  %v568_v31 = vld [vmem:[%s1802_s5 + $0x48] sm:$0xff] (!%p247_p2) }
   0xc   : > { %1431 = vmatprep.subr.bf16.mxu0 (!%p247_p2), %v1430_v21  ;;  %v1442_v29 = vpack.c.bf16 (!%p247_p2), %v566_v28, %v565_v27  ;;  %v1446_v32 = vpack.c.bf16 (!%p247_p2), %v568_v31, %v567_v30  ;;  %v569_v33 = vld [vmem:[%s1802_s5 + $0x50] sm:$0xff] (!%p247_p2)  ;;  %v570_v34 = vld [vmem:[%s1802_s5 + $0x58] sm:$0xff] (!%p247_p2)  ;;  %v571_v36 = vld [vmem:[%s1802_s5 + $0x60] sm:$0xff] (!%p247_p2) }
   0xd   : > { %s1806_s25 = smov (!%p282_p3, %s1084_s25), 1  ;;  %1433 = vmatpush3.bf16.msra.mxu0 %v1430_v21  ;;  %v1450_v35 = vpack.c.bf16 %v570_v34, %v569_v33  ;;  %v572_v37 = vld [vmem:[%s1802_s5 + $0x68] sm:$0xff]  ;;  %v573_v39 = vld [vmem:[%s1802_s5 + $0x70] sm:$0xff]  ;;  %v574_v40 = vld [vmem:[%s1802_s5 + $0x78] sm:$0xff] }
   0xe   : > { %s1091_s9 = sshll.u32 %s1806_s25, 3  ;;  %1435 = vmatprep.subr.bf16.mxu0 %v1434_v23  ;;  %v1454_v38 = vpack.c.bf16 %v572_v37, %v571_v36  ;;  %v1458_v41 = vpack.c.bf16 %v574_v40, %v573_v39  ;;  %s1143_s19 = sshll.u32 %s1806_s25, 4  ;;  %v1104_v49 = vld [vmem:[%s1802_s5 + $0x80] sm:$0xff]  ;;  %v1105_v50 = vld [vmem:[%s1802_s5 + $0x88] sm:$0xff]  ;;  %v1100_v52 = vld [vmem:[%s1801_s4 + $0x10] sm:$0xff] }
   0xf   : > { %s290_s16 = scalar_lea.vmem %s1798_s1, %s1091_s9  ;;  %s286_s22 = scalar_lea.vmem %s1797_s0, %s1143_s19  ;;  %v476_v51 = vld [vmem:[%s1801_s4 + $0x8] sm:$0xff]  ;;  %v1398_v53 = vpack.c.bf16 %v1105_v50, %v1104_v49  ;;  %v1106_v54 = vld [vmem:[%s1802_s5 + $0x90] sm:$0xff]  ;;  %v1107_v55 = vld [vmem:[%s1802_s5 + $0x98] sm:$0xff] }
  0x10   : > { %v300_v6 = vld [vmem:[%s290_s16] sm:$0xff]  ;;  %v297_v42 = vld [vmem:[%s286_s22 + $0x8] sm:$0xff]  ;;  %v1101_v56 = vld [vmem:[%s1801_s4 + $0x18] sm:$0xff]  ;;  %v1402_v57 = vpack.c.bf16 %v1107_v55, %v1106_v54  ;;  %s295_s21 = scalar_lea.vmem %s1804_s7, %s1143_s19 }
  0x11   : > { %1224 = vmatprep.subr.mxu1 %v300_v6  ;;  %1437 = vmatpush3.bf16.msra.mxu0 %v1434_v23  ;;  %v296_v43 = vld [vmem:[%s286_s22] sm:$0xff]  ;;  %v1109_v59 = vld [vmem:[%s1802_s5 + $0xa8] sm:$0xff]  ;;  %v1110_v61 = vld [vmem:[%s1802_s5 + $0xb0] sm:$0xff] }
  0x12   : > { %1225 = vmatpush3.msra.mxu1 %v300_v6  ;;  %1439 = vmatprep.subr.bf16.mxu0 %v1438_v26  ;;  %v1108_v58 = vld [vmem:[%s1802_s5 + $0xa0] sm:$0xff]  ;;  %v1111_v62 = vld [vmem:[%s1802_s5 + $0xb8] sm:$0xff]  ;;  %v1113_v1 = vld [vmem:[%s1802_s5 + $0xc8] sm:$0xff] }
  0x13   : > { %1227 = vmatmul.mubr.msk.f32.vlgmr.msra.gmra.mrb[0].mxu1 %vm301_vm0, %v299_v7  ;;  %1375 = vmatprep.subr.bf16.mxu1 %v1374_v5  ;;  %v1406_v60 = vpack.c.bf16 %v1109_v59, %v1108_v58  ;;  %v1410_v63 = vpack.c.bf16 %v1111_v62, %v1110_v61  ;;  %v1112_v0 = vld [vmem:[%s1802_s5 + $0xc0] sm:$0xff]  ;;  %v1114_v3 = vld [vmem:[%s1802_s5 + $0xd0] sm:$0xff]  ;;  %v1115_v4 = vld [vmem:[%s1802_s5 + $0xd8] sm:$0xff] }
  0x14   : > { %1377 = vmatpush3.bf16.msra.mxu1 %v1374_v5  ;;  %v1414_v2 = vpack.c.bf16 %v1113_v1, %v1112_v0  ;;  %v1418_v5 = vpack.c.bf16 %v1115_v4, %v1114_v3  ;;  %v1116_v6 = vld [vmem:[%s1802_s5 + $0xe0] sm:$0xff]  ;;  %v1117_v7 = vld [vmem:[%s1802_s5 + $0xe8] sm:$0xff]  ;;  %v1118_v9 = vld [vmem:[%s1802_s5 + $0xf0] sm:$0xff] }
  0x15   : > { %1379 = vmatprep.subr.bf16.mxu1 %v1378_v8  ;;  %1441 = vmatpush3.bf16.msra.mxu0 %v1438_v26  ;;  %v1119_v10 = vld [vmem:[%s1802_s5 + $0xf8] sm:$0xff]  ;;  %v1124_v12 = vld [vmem:[%s1802_s5 + $0x100] sm:$0xff]  ;;  %v1125_v13 = vld [vmem:[%s1802_s5 + $0x108] sm:$0xff] }
  0x16   : > { %1443 = vmatprep.subr.bf16.mxu0 %v1442_v29  ;;  %v1128_v20 = vld [vmem:[%s1802_s5 + $0x120] sm:$0xff]  ;;  %v1129_v21 = vld [vmem:[%s1802_s5 + $0x128] sm:$0xff]  ;;  %v1130_v26 = vld [vmem:[%s1802_s5 + $0x130] sm:$0xff] }
  0x17   : > { %v1120_v24 = vld [vmem:[%s1801_s4 + $0x20] sm:$0xff]  ;;  %v1474_v25 = vpack.c.bf16 %v1129_v21, %v1128_v20  ;;  %v1131_v27 = vld [vmem:[%s1802_s5 + $0x138] sm:$0xff]  ;;  %v1121_v28 = vld [vmem:[%s1801_s4 + $0x28] sm:$0xff] }
  0x18   : > { %1381 = vmatpush3.bf16.msra.mxu1 %v1378_v8  ;;  %v1422_v8 = vpack.c.bf16 %v1117_v7, %v1116_v6  ;;  %v1132_v30 = vld [vmem:[%s1802_s5 + $0x140] sm:$0xff]  ;;  %v1133_v31 = vld [vmem:[%s1802_s5 + $0x148] sm:$0xff]  ;;  %v1134_v33 = vld [vmem:[%s1802_s5 + $0x150] sm:$0xff] }
  0x19   : > { %1383 = vmatprep.subr.bf16.mxu1 %v1382_v11  ;;  %1445 = vmatpush3.bf16.msra.mxu0 %v1442_v29  ;;  %v1478_v29 = vpack.c.bf16 %v1131_v27, %v1130_v26  ;;  %v1135_v34 = vld [vmem:[%s1802_s5 + $0x158] sm:$0xff]  ;;  %v1136_v36 = vld [vmem:[%s1802_s5 + $0x160] sm:$0xff]  ;;  %v1137_v37 = vld [vmem:[%s1802_s5 + $0x168] sm:$0xff] }
  0x1a   : > { %1447 = vmatprep.subr.bf16.mxu0 %v1446_v32  ;;  %v1138_v39 = vld [vmem:[%s1802_s5 + $0x170] sm:$0xff]  ;;  %v1139_v40 = vld [vmem:[%s1802_s5 + $0x178] sm:$0xff] }
  0x1c   : > { %1385 = vmatpush3.bf16.msra.mxu1 %v1382_v11  ;;  %v1426_v11 = vpack.c.bf16 %v1119_v10, %v1118_v9 }
  0x1d   : > { %1387 = vmatprep.subr.bf16.mxu1 %v1386_v14  ;;  %1449 = vmatpush3.bf16.msra.mxu0 %v1446_v32  ;;  %v1482_v32 = vpack.c.bf16 %v1133_v31, %v1132_v30 }
  0x1e   : > { %1451 = vmatprep.subr.bf16.mxu0 %v1450_v35 }
  0x20   : > { %1389 = vmatpush3.bf16.msra.mxu1 %v1386_v14  ;;  %v1466_v14 = vpack.c.bf16 %v1125_v13, %v1124_v12 }
  0x21   : > { %1453 = vmatpush3.bf16.msra.mxu0 %v1450_v35  ;;  %v1486_v35 = vpack.c.bf16 %v1135_v34, %v1134_v33 }
  0x22   : > { %1455 = vmatprep.subr.bf16.mxu0 %v1454_v38 }
  0x25   : > { %1457 = vmatpush3.bf16.msra.mxu0 %v1454_v38  ;;  %v1490_v38 = vpack.c.bf16 %v1137_v37, %v1136_v36 }
  0x26   : > { %1459 = vmatprep.subr.bf16.mxu0 %v1458_v41 }
  0x29   : > { %1461 = vmatpush3.bf16.msra.mxu0 %v1458_v41  ;;  %v1494_v41 = vpack.c.bf16 %v1139_v40, %v1138_v39 }
  0x2a   : > { %1467 = vmatprep.subr.bf16.mxu0 %v1466_v14 }
  0xe6   : > { %v1228_v15 = vpop.f32.mrb[0].mxu1 }
  0xe7   : > { %v374_v16 = vpop.f32.mrb[1].mxu1 }
  0xe8   : > { %1245 = vmatprep.mubr.msk.f32.mxu1 %vm391_vm1, %v374_v16  ;;  %v1127_v16 = vld [vmem:[%s1802_s5 + $0x118] sm:$0xff] }
  0xe9   : > { %1246 = vmatmul.mubr.msk.f32.vlgmr.msra.gmra.mrb[2].mxu1 %vm391_vm1, %v1228_v15  ;;  %v1126_v15 = vld [vmem:[%s1802_s5 + $0x110] sm:$0xff] }
  0xea   : > { %1252 = vmatprep.mubr.msk.f32.mxu1 %vm477_vm2, %v475_v17  ;;  %v1470_v19 = vpack.c.bf16 %v1127_v16, %v1126_v15 }
 0x1bc   : > { %v1247_v44 = vpop.f32.mrb[2].mxu1 }
 0x1bd   : > { %v474_v45 = vadd.f32 %v1247_v44, %v297_v42  ;;  %v464_v46 = vpop.f32.mrb[3].mxu1 }
 0x1be   : > { %v473_v47 = vadd.f32 %v464_v46, %v296_v43 }
 0x1c0   : > { %v1662_v48 = vpack.c.bf16 %v474_v45, %v473_v47  ;;  %v1140_v47 = vld [vmem:[%s1803_s6] ss:$0 sm:$0xff] }
 0x1c2   : > { %1391 = vmatprep.subr.bf16.mxu1 %v1662_v48 }
 0x1c3   : > { %1393 = vmatpush3.bf16.msra.mxu1 %v1662_v48 }
 0x1c4   : > { %1395 = vmatprep.subr.bf16.mxu1 %v1662_v48 }
 0x1c6   : > { %1253 = vmatmul.mubr.msk.f32.vlgmr.msra.gmra.mrb[4].mxu1 %vm477_vm2, %v476_v51 }
 0x1c7   : > { %1397 = vmatpush3.bf16.msra.mxu1 %v1662_v48  ;;  %1259 = vmatprep.mubr.msk.f32.mxu1 %vm477_vm2, %v1100_v52 }
 0x1c8   : > { %1399 = vmatprep.subr.bf16.mxu1 %v1398_v53 }
 0x1ca   : > { %1260 = vmatmul.mubr.msk.f32.vlgmr.msra.gmra.mrb[6].mxu1 %vm477_vm2, %v1101_v56 }
 0x1cb   : > { %1401 = vmatpush3.bf16.msra.mxu1 %v1398_v53 }
 0x1cc   : > { %1403 = vmatprep.subr.bf16.mxu1 %v1402_v57 }
 0x1cf   : > { %1405 = vmatpush3.bf16.msra.mxu1 %v1402_v57 }
 0x1d0   : > { %1407 = vmatprep.subr.bf16.mxu1 %v1406_v60 }
 0x1d3   : > { %1409 = vmatpush3.bf16.msra.mxu1 %v1406_v60 }
 0x1d4   : > { %1411 = vmatprep.subr.bf16.mxu1 %v1410_v63 }
 0x1d7   : > { %1413 = vmatpush3.bf16.msra.mxu1 %v1410_v63 }
 0x1d8   : > { %1415 = vmatprep.subr.bf16.mxu1 %v1414_v2 }
 0x1db   : > { %1417 = vmatpush3.bf16.msra.mxu1 %v1414_v2 }
 0x1dc   : > { %1419 = vmatprep.subr.bf16.mxu1 %v1418_v5 }
 0x1df   : > { %1421 = vmatpush3.bf16.msra.mxu1 %v1418_v5 }
 0x1e0   : > { %1423 = vmatprep.subr.bf16.mxu1 %v1422_v8 }
 0x1e3   : > { %1425 = vmatpush3.bf16.msra.mxu1 %v1422_v8 }
 0x1e4   : > { %1427 = vmatprep.subr.bf16.mxu1 %v1426_v11 }
 0x1e7   : > { %1429 = vmatpush3.bf16.msra.mxu1 %v1426_v11 }
 0x1e8   : > { %1463 = vmatprep.subr.bf16.mxu1 %v1662_v48 }
 0x299   : > { %v1254_v17 = vpop.f32.mrb[4].mxu1 }
 0x29a   : > { %v550_v18 = vpop.f32.mrb[5].mxu1 }
 0x29b   : > { %1329 = vmatprep.mubr.f32.mxu0 %v550_v18 }
 0x29c   : > { %1330 = vmatmul.mubr.f32.vlgmr.msra.gmra.mrb[0].mxu0 %v1254_v17 }
 0x29d   : > { %v1261_v22 = vpop.f32.mrb[6].mxu1  ;;  %1469 = vmatpush3.bf16.msra.mxu0 %v1466_v14 }
 0x29e   : > { %v650_v23 = vpop.f32.mrb[7].mxu1  ;;  %1471 = vmatprep.subr.bf16.mxu0 %v1470_v19 }
 0x29f   : > { %1294 = vmatprep.mubr.f32.mxu1 %v650_v23 }
 0x2a0   : > { %1295 = vmatmul.mubr.f32.vlgmr.msra.gmra.mrb[8].mxu1 %v1261_v22 }
 0x2a1   : > { %1465 = vmatpush3.bf16.msra.mxu1 %v1662_v48  ;;  %1336 = vmatprep.mubr.msk.f32.mxu1 %vm477_vm2, %v1120_v24 }
 0x2a2   : > { %1473 = vmatpush3.bf16.msra.mxu0 %v1470_v19 }
 0x2a3   : > { %1475 = vmatprep.subr.bf16.mxu0 %v1474_v25 }
 0x2a4   : > { %1337 = vmatmul.mubr.msk.f32.vlgmr.msra.gmra.mrb[10].mxu1 %vm477_vm2, %v1121_v28 }
 0x2a6   : > { %1477 = vmatpush3.bf16.msra.mxu0 %v1474_v25 }
 0x2a7   : > { %1479 = vmatprep.subr.bf16.mxu0 %v1478_v29 }
 0x2aa   : > { %1481 = vmatpush3.bf16.msra.mxu0 %v1478_v29 }
 0x2ab   : > { %1483 = vmatprep.subr.bf16.mxu0 %v1482_v32 }
 0x2ae   : > { %1485 = vmatpush3.bf16.msra.mxu0 %v1482_v32 }
 0x2af   : > { %1487 = vmatprep.subr.bf16.mxu0 %v1486_v35 }
 0x2b2   : > { %1489 = vmatpush3.bf16.msra.mxu0 %v1486_v35 }
 0x2b3   : > { %1491 = vmatprep.subr.bf16.mxu0 %v1490_v38 }
 0x2b6   : > { %1493 = vmatpush3.bf16.msra.mxu0 %v1490_v38 }
 0x2b7   : > { %1495 = vmatprep.subr.bf16.mxu0 %v1494_v41 }
 0x2ba   : > { %1497 = vmatpush3.bf16.msra.mxu0 %v1494_v41 }
 0x373   : > { %v1296_v42 = vpop.f32.mrb[8].mxu1 }
 0x374   : > { %v742_v43 = vpop.f32.mrb[9].mxu1 }
 0x377   : > { %v1338_v44 = vpop.f32.mrb[10].mxu1 }
 0x378   : > { %v901_v45 = vpop.f32.mrb[11].mxu1 }
 0x379   : > { %1371 = vmatprep.mubr.f32.mxu0 %v901_v45 }
 0x37a   : > { %1372 = vmatmul.mubr.f32.vlgmr.msra.gmra.mrb[0].mxu0 %v1338_v44 }
 0x44d   : > { %v1373_v46 = vpop.f32.mrb[0].mxu0 }
 0x44e   : > { %v1498_v48 = vadd.f32 %v1373_v46, %v1296_v42  ;;  %v993_v49 = vpop.f32.mrb[1].mxu0 }
 0x44f   : > { %v1499_v50 = vadd.f32 %v993_v49, %v742_v43 }
 0x450   : > { %v1012_v51 = vadd.f32 %v1498_v48, %v1140_v47 }
 0x451   : > { %v1011_v52 = vadd.f32 %v1499_v50, %v1140_v47 }
 0x452   : > { %v1014_v53 = vmax.f32 %v1012_v51, 0.0 }
 0x453   : > { %v1013_v54 = vmax.f32 %v1011_v52, 0.0 }
 0x454   : > { %1016 = vst [vmem:[%s295_s21 + $0x8] sm:$0xff] %v1014_v53 }
 0x455   : > { %1015 = vst [vmem:[%s295_s21] sm:$0xff] %v1013_v54 }
 0x456 PF: > { %s17_s24 = sadd.s32 1, %s1516_s24  }
 0x457   : > { %p14_p4 = scmp.ge.s32.totalorder %s17_s24, 4  }
 0x459   :  { %16 = sbr.rel (!%p14_p4) target bundleno = 1 (0x1), region = 85 }

// kernel: u_shape_forward.19
= control target key start
LH: loop header
LB: loop body
LE: loop exit
PB: predicated region body
PF: predicated region fallthrough
CT: control target
= control target key end

     0   :  { %s1948_s24 = smov 0   ;;  %s2761_s0 = inlined_call_operand.vmem [shape: f32[2,32,256], index: 0, kind: input, shape index: {}]   ;;  %s2762_s1 = inlined_call_operand.vmem [shape: f32[2,16,128], index: 1, kind: input, shape index: {}]   ;;  %s2763_s2 = inlined_call_operand.vmem [shape: f32[32,16], index: 2, kind: input, shape index: {}]   ;;  %s2764_s3 = inlined_call_operand.vmem [shape: f32[128,256], index: 3, kind: input, shape index: {}]   ;;  %s2765_s4 = inlined_call_operand.vmem [shape: f32[3,32,32], index: 4, kind: input, shape index: {}]   ;;  %s2766_s5 = inlined_call_operand.vmem [shape: f32[3,256,256], index: 5, kind: input, shape index: {}]   ;;  %s2767_s6 = inlined_call_operand.vmem [shape: f32[1,256], index: 6, kind: input, shape index: {}]   ;;  %s2768_s7 = inlined_call_operand.vmem [shape: f32[2,32,256], index: 7, kind: output, shape index: {}]  }
   0x1 LB: > { %s1438_s25 = sadd.s32 4294967295, %s1905_s24   ;;  %p1442_p0 = scmp.ge.s32.totalorder %s1905_s24, 1  ;;  %s1905_s24 = sphi %s1948_s24, %s17_s24  }
   0x2   : > { %p247_p1 = scmp.lt.s32.totalorder %s1905_s24, 3 }
   0x4   : > { %p248_p2 = pnand %p1442_p0, %p247_p1 }
   0x5   : > { %p284_p3 = scmp.lt.s32.totalorder (!%p248_p2), %s1438_s25, 1  ;;  %v307_v0 = vld [vmem:[%s2763_s2] sm:$0xff] (!%p248_p2)  ;;  %vm313_vm0 = vcmask (!%p248_p2), 130048   ;;  %v412_v1 = vld [vmem:[%s2764_s3 + $0x8] sm:$0xff] (!%p248_p2)  ;;  %v414_v2 = vld [vmem:[%s2764_s3 + $0x18] sm:$0xff] (!%p248_p2)  ;;  %v1907_v55 = vmov (!%p248_p2), 0.0  }
   0x6   : > { %251 = sbr.rel (%p248_p2) target bundleno = 1147 (0x47b), region = 48  ;;  %1616 = vmatprep.mubr.msk.f32.mxu1 (!%p248_p2), %vm313_vm0, %v307_v0  ;;  %v1626_v6 = vpack.c.bf16 (!%p248_p2), %v414_v2, %v412_v1  ;;  %v411_v7 = vld [vmem:[%s2764_s3] sm:$0xff] (!%p248_p2)  ;;  %v413_v8 = vld [vmem:[%s2764_s3 + $0x10] sm:$0xff] (!%p248_p2)  ;;  %v416_v9 = vld [vmem:[%s2764_s3 + $0x28] sm:$0xff] (!%p248_p2)  ;;  %799 = vmatprep.mubr.f32.mxu0 (!%p248_p2), %v1907_v55  ;;  %vm552_vm1 = vcmask (!%p248_p2), 261120  }
   0x7   : > { %v418_v10 = vld [vmem:[%s2764_s3 + $0x38] sm:$0xff] (!%p248_p2)  ;;  %v308_v11 = vld [vmem:[%s2763_s2 + $0x8] sm:$0xff] (!%p248_p2)  ;;  %v1628_v12 = vpack.c.bf16 (!%p248_p2), %v413_v8, %v411_v7  ;;  %v309_v13 = vld [vmem:[%s2763_s2 + $0x10] sm:$0xff] (!%p248_p2) }
   0x8   : > { %v1630_v14 = vpack.c.bf16 (!%p248_p2), %v418_v10, %v416_v9  ;;  %v415_v15 = vld [vmem:[%s2764_s3 + $0x20] sm:$0xff] (!%p248_p2)  ;;  %v417_v16 = vld [vmem:[%s2764_s3 + $0x30] sm:$0xff] (!%p248_p2)  ;;  %v420_v17 = vld [vmem:[%s2764_s3 + $0x48] sm:$0xff] (!%p248_p2) }
   0x9   : > { %v422_v18 = vld [vmem:[%s2764_s3 + $0x58] sm:$0xff] (!%p248_p2)  ;;  %v1632_v20 = vpack.c.bf16 (!%p248_p2), %v417_v16, %v415_v15  ;;  %v419_v22 = vld [vmem:[%s2764_s3 + $0x40] sm:$0xff] (!%p248_p2)  ;;  %v421_v23 = vld [vmem:[%s2764_s3 + $0x50] sm:$0xff] (!%p248_p2) }
   0xa   : > { %v310_v19 = vld [vmem:[%s2763_s2 + $0x18] sm:$0xff] (!%p248_p2)  ;;  %v1634_v21 = vpack.c.bf16 (!%p248_p2), %v422_v18, %v420_v17  ;;  %v424_v24 = vld [vmem:[%s2764_s3 + $0x68] sm:$0xff] (!%p248_p2)  ;;  %v1636_v26 = vpack.c.bf16 (!%p248_p2), %v421_v23, %v419_v22  ;;  %v423_v28 = vld [vmem:[%s2764_s3 + $0x60] sm:$0xff] (!%p248_p2) }
   0xb   : > { %v426_v25 = vld [vmem:[%s2764_s3 + $0x78] sm:$0xff] (!%p248_p2)  ;;  %v425_v29 = vld [vmem:[%s2764_s3 + $0x70] sm:$0xff] (!%p248_p2)  ;;  %v428_v30 = vld [vmem:[%s2764_s3 + $0x88] sm:$0xff] (!%p248_p2) }
   0xc   : > { %v1638_v27 = vpack.c.bf16 (!%p248_p2), %v426_v25, %v424_v24  ;;  %v430_v31 = vld [vmem:[%s2764_s3 + $0x98] sm:$0xff] (!%p248_p2)  ;;  %v1640_v32 = vpack.c.bf16 (!%p248_p2), %v425_v29, %v423_v28  ;;  %v427_v34 = vld [vmem:[%s2764_s3 + $0x80] sm:$0xff] (!%p248_p2)  ;;  %v429_v35 = vld [vmem:[%s2764_s3 + $0x90] sm:$0xff] (!%p248_p2) }
   0xd   : > { %s2770_s25 = smov (!%p284_p3, %s1438_s25), 1  ;;  %v1642_v33 = vpack.c.bf16 %v430_v31, %v428_v30  ;;  %v432_v36 = vld [vmem:[%s2764_s3 + $0xa8] sm:$0xff]  ;;  %v434_v37 = vld [vmem:[%s2764_s3 + $0xb8] sm:$0xff]  ;;  %v1644_v38 = vpack.c.bf16 %v429_v35, %v427_v34  ;;  %v431_v40 = vld [vmem:[%s2764_s3 + $0xa0] sm:$0xff] }
   0xe   : > { %s1604_s28 = sshll.u32 %s2770_s25, 4  ;;  %v1646_v39 = vpack.c.bf16 %v434_v37, %v432_v36  ;;  %v433_v41 = vld [vmem:[%s2764_s3 + $0xb0] sm:$0xff]  ;;  %v436_v42 = vld [vmem:[%s2764_s3 + $0xc8] sm:$0xff]  ;;  %v438_v43 = vld [vmem:[%s2764_s3 + $0xd8] sm:$0xff]  ;;  %s1603_s16 = sshll.u32 %s2770_s25, 6 }
   0xf   : > { %s293_s12 = scalar_lea.vmem %s2762_s1, %s1604_s28  ;;  %v1648_v44 = vpack.c.bf16 %v433_v41, %v431_v40  ;;  %v1650_v45 = vpack.c.bf16 %v438_v43, %v436_v42  ;;  %v435_v46 = vld [vmem:[%s2764_s3 + $0xc0] sm:$0xff]  ;;  %v437_v47 = vld [vmem:[%s2764_s3 + $0xd0] sm:$0xff]  ;;  %v440_v48 = vld [vmem:[%s2764_s3 + $0xe8] sm:$0xff]  ;;  %s288_s19 = scalar_lea.vmem %s2761_s0, %s1603_s16 }
  0x10   : > { %v311_v3 = vld [vmem:[%s293_s12] sm:$0xff]  ;;  %v312_v4 = vld [vmem:[%s293_s12 + $0x8] sm:$0xff]  ;;  %v442_v49 = vld [vmem:[%s2764_s3 + $0xf8] sm:$0xff]  ;;  %v1652_v50 = vpack.c.bf16 %v437_v47, %v435_v46  ;;  %s2748_s11 = scalar_lea.vmem %s2768_s7, %s1603_s16 }
  0x11   : > { %v1622_v5 = vpack.c.bf16 %v312_v4, %v311_v3  ;;  %v1654_v51 = vpack.c.bf16 %v442_v49, %v440_v48  ;;  %v439_v52 = vld [vmem:[%s2764_s3 + $0xe0] sm:$0xff]  ;;  %v441_v53 = vld [vmem:[%s2764_s3 + $0xf0] sm:$0xff]  ;;  %v300_v61 = vld [vmem:[%s288_s19 + $0x8] sm:$0xff] }
  0x12   : > { %v1656_v54 = vpack.c.bf16 %v441_v53, %v439_v52  ;;  %v299_v60 = vld [vmem:[%s288_s19] sm:$0xff]  ;;  %v301_v2 = vld [vmem:[%s288_s19 + $0x10] sm:$0xff]  ;;  %v302_v3 = vld [vmem:[%s288_s19 + $0x18] sm:$0xff] }
  0x13   : > { %1623 = vmatprep.subr.bf16.mxu1 %v1622_v5  ;;  %v303_v8 = vld [vmem:[%s288_s19 + $0x20] sm:$0xff]  ;;  %v1466_v28 = vld [vmem:[%s2766_s5 + $0x208] sm:$0xff]  ;;  %v1468_v29 = vld [vmem:[%s2766_s5 + $0x218] sm:$0xff] }
  0x14   : > { %1625 = vmatpush3.bf16.msra.mxu1 %v1622_v5  ;;  %v1674_v34 = vpack.c.bf16 %v1468_v29, %v1466_v28  ;;  %v1465_v35 = vld [vmem:[%s2766_s5 + $0x200] sm:$0xff]  ;;  %v1467_v36 = vld [vmem:[%s2766_s5 + $0x210] sm:$0xff]  ;;  %v1470_v37 = vld [vmem:[%s2766_s5 + $0x228] sm:$0xff] }
  0x15   : > { %1627 = vmatprep.subr.bf16.mxu1 %v1626_v6  ;;  %v548_v40 = vld [vmem:[%s2765_s4] sm:$0xff]  ;;  %v1676_v41 = vpack.c.bf16 %v1467_v36, %v1465_v35  ;;  %v1476_v46 = vld [vmem:[%s2766_s5 + $0x258] sm:$0xff]  ;;  %v1458_v47 = vld [vmem:[%s2765_s4 + $0x28] sm:$0xff] }
  0x16   : > { %v1469_v43 = vld [vmem:[%s2766_s5 + $0x220] sm:$0xff]  ;;  %v549_v49 = vld [vmem:[%s2765_s4 + $0x8] sm:$0xff]  ;;  %v1475_v52 = vld [vmem:[%s2766_s5 + $0x250] sm:$0xff] }
  0x17   : > { %1617 = vmatmul.mubr.msk.f32.vlgmr.msra.gmra.mrb[0].mxu1 %vm313_vm0, %v308_v11  ;;  %v304_v11 = vld [vmem:[%s288_s19 + $0x28] sm:$0xff]  ;;  %v1504_v35 = vld [vmem:[%s2766_s5 + $0x338] sm:$0xff] }
  0x18   : > { %1619 = vmatprep.mubr.msk.f32.mxu1 %vm313_vm0, %v309_v13  ;;  %1629 = vmatpush1.bf16.msra.mxu1 %v1628_v12  ;;  %v1478_v53 = vld [vmem:[%s2766_s5 + $0x268] sm:$0xff] }
  0x19   : > { %1631 = vmatprep.subr.bf16.mxu1 %v1630_v14 }
  0x1b   : > { %1620 = vmatmul.mubr.msk.f32.gmra.mrb[2].mxu1 %vm313_vm0, %v310_v19 }
  0x1c   : > { %1633 = vmatpush1.bf16.msra.mxu1 %v1632_v20  ;;  %507 = vmatprep.mubr.f32.mxu1 %v1907_v55  ;;  %v305_v20 = vld [vmem:[%s288_s19 + $0x30] sm:$0xff] }
  0x1d   : > { %1635 = vmatprep.subr.bf16.mxu1 %v1634_v21  ;;  %v306_v21 = vld [vmem:[%s288_s19 + $0x38] sm:$0xff] }
  0x20   : > { %1637 = vmatpush1.bf16.msra.mxu1 %v1636_v26 }
  0x21   : > { %1639 = vmatprep.subr.bf16.mxu1 %v1638_v27 }
  0x24   : > { %1641 = vmatpush1.bf16.msra.mxu1 %v1640_v32 }
  0x25   : > { %1643 = vmatprep.subr.bf16.mxu1 %v1642_v33 }
  0x28   : > { %1645 = vmatpush1.bf16.msra.mxu1 %v1644_v38  ;;  %v1472_v38 = vld [vmem:[%s2766_s5 + $0x238] sm:$0xff] }
  0x29   : > { %1647 = vmatprep.subr.bf16.mxu1 %v1646_v39  ;;  %v1457_v39 = vld [vmem:[%s2765_s4 + $0x20] sm:$0xff]  ;;  %v1678_v42 = vpack.c.bf16 %v1472_v38, %v1470_v37 }
  0x2a   : > { %v1501_v38 = vld [vmem:[%s2766_s5 + $0x320] sm:$0xff] }
  0x2c   : > { %1649 = vmatpush1.bf16.msra.mxu1 %v1648_v44  ;;  %v1471_v44 = vld [vmem:[%s2766_s5 + $0x230] sm:$0xff] }
  0x2d   : > { %1651 = vmatprep.subr.bf16.mxu1 %v1650_v45  ;;  %v1474_v45 = vld [vmem:[%s2766_s5 + $0x248] sm:$0xff]  ;;  %v1680_v48 = vpack.c.bf16 %v1471_v44, %v1469_v43  ;;  %v1505_v44 = vld [vmem:[%s2766_s5 + $0x340] sm:$0xff] }
  0x30   : > { %1653 = vmatpush1.bf16.msra.mxu1 %v1652_v50  ;;  %v1682_v50 = vpack.c.bf16 %v1476_v46, %v1474_v45  ;;  %v1507_v45 = vld [vmem:[%s2766_s5 + $0x350] sm:$0xff]  ;;  %v1510_v46 = vld [vmem:[%s2766_s5 + $0x368] sm:$0xff] }
  0x31   : > { %1655 = vmatprep.subr.bf16.mxu1 %v1654_v51  ;;  %v1473_v51 = vld [vmem:[%s2766_s5 + $0x240] sm:$0xff] }
  0x34   : > { %1657 = vmatpush1.bf16.msra.mxu1 %v1656_v54  ;;  %v1480_v54 = vld [vmem:[%s2766_s5 + $0x278] sm:$0xff] }
  0xea   : > { %v1618_v56 = vpop.f32.mrb[0].mxu1 }
  0xeb   : > { %v392_v57 = vpop.f32.mrb[1].mxu1 }
  0xec   : > { %508 = vmatmul.mubr.f32.vlgmr.msra.gmra.mrb[4].mxu1 %v392_v57  ;;  %v1684_v57 = vpack.c.bf16 %v1475_v52, %v1473_v51  ;;  %v1511_v51 = vld [vmem:[%s2766_s5 + $0x370] sm:$0xff]  ;;  %v1514_v52 = vld [vmem:[%s2766_s5 + $0x388] sm:$0xff] }
  0xed   : > { %513 = vmatprep.mubr.f32.mxu1 %v1907_v55 }
  0xee   : > { %v1621_v58 = vpop.f32.mrb[2].mxu1 }
  0xef   : > { %v402_v59 = vpop.f32.mrb[3].mxu1 }
  0xf0   : > { %514 = vmatmul.mubr.f32.gmra.mrb[6].mxu1 %v1618_v56  ;;  %v1459_v56 = vld [vmem:[%s2765_s4 + $0x30] sm:$0xff] }
  0xf1   : > { %519 = vmatprep.mubr.f32.mxu1 %v1907_v55 }
  0xf4   : > { %520 = vmatmul.mubr.f32.gmra.mrb[8].mxu1 %v402_v59  ;;  %v1686_v59 = vpack.c.bf16 %v1480_v54, %v1478_v53  ;;  %v1516_v53 = vld [vmem:[%s2766_s5 + $0x398] sm:$0xff] }
  0xf5   : > { %525 = vmatprep.mubr.f32.mxu1 %v1907_v55 }
  0xf8   : > { %526 = vmatmul.mubr.f32.gmra.mrb[10].mxu1 %v1621_v58  ;;  %v550_v58 = vld [vmem:[%s2765_s4 + $0x10] sm:$0xff] }
  0xf9   : > { %629 = vmatprep.mubr.f32.mxu1 %v1907_v55 }
 0x1bf   : > { %v509_v62 = vpop.f32.mrb[4].mxu1 }
 0x1c0   : > { %v532_v63 = vadd.f32 %v509_v62, %v299_v60  ;;  %v511_v0 = vpop.f32.mrb[5].mxu1  ;;  %v1477_v60 = vld [vmem:[%s2766_s5 + $0x260] sm:$0xff]  ;;  %v1482_v62 = vld [vmem:[%s2766_s5 + $0x288] sm:$0xff] }
 0x1c1   : > { %v533_v1 = vadd.f32 %v511_v0, %v300_v61  ;;  %v1479_v61 = vld [vmem:[%s2766_s5 + $0x270] sm:$0xff]  ;;  %v1460_v0 = vld [vmem:[%s2765_s4 + $0x38] sm:$0xff] }
 0x1c2   : > { %v540_v9 = vmax.f32 %v532_v63, 0.0  ;;  %v1484_v63 = vld [vmem:[%s2766_s5 + $0x298] sm:$0xff] }
 0x1c3   : > { %v515_v4 = vpop.f32.mrb[6].mxu1  ;;  %v541_v12 = vmax.f32 %v533_v1, 0.0  ;;  %v1688_v1 = vpack.c.bf16 %v1479_v61, %v1477_v60  ;;  %v1520_v60 = vld [vmem:[%s2766_s5 + $0x3b8] sm:$0xff] }
 0x1c4   : > { %v534_v5 = vadd.f32 %v515_v4, %v301_v2  ;;  %v517_v6 = vpop.f32.mrb[7].mxu1  ;;  %v551_v2 = vld [vmem:[%s2765_s4 + $0x18] sm:$0xff]  ;;  %v1481_v4 = vld [vmem:[%s2766_s5 + $0x280] sm:$0xff] }
 0x1c5   : > { %v535_v7 = vadd.f32 %v517_v6, %v302_v3  ;;  %v1690_v3 = vpack.c.bf16 %v1484_v63, %v1482_v62  ;;  %v1486_v6 = vld [vmem:[%s2766_s5 + $0x2a8] sm:$0xff]  ;;  %v1517_v63 = vld [vmem:[%s2766_s5 + $0x3a0] sm:$0xff] }
 0x1c6   : > { %v542_v10 = vmax.f32 %v534_v5, 0.0  ;;  %v1483_v5 = vld [vmem:[%s2766_s5 + $0x290] sm:$0xff] }
 0x1c7   : > { %v543_v13 = vmax.f32 %v535_v7, 0.0  ;;  %v521_v14 = vpop.f32.mrb[8].mxu1  ;;  %v1488_v7 = vld [vmem:[%s2766_s5 + $0x2b8] sm:$0xff] }
 0x1c8   : > { %v2086_v15 = vpack.c.bf16 %v542_v10, %v540_v9  ;;  %v536_v16 = vadd.f32 %v521_v14, %v303_v8  ;;  %v523_v17 = vpop.f32.mrb[9].mxu1  ;;  %v1692_v8 = vpack.c.bf16 %v1483_v5, %v1481_v4  ;;  %v1694_v9 = vpack.c.bf16 %v1488_v7, %v1486_v6  ;;  %v1485_v10 = vld [vmem:[%s2766_s5 + $0x2a0] sm:$0xff]  ;;  %v1523_v6 = vld [vmem:[%s2766_s5 + $0x3d0] sm:$0xff]  ;;  %v1526_v7 = vld [vmem:[%s2766_s5 + $0x3e8] sm:$0xff] }
 0x1c9   : > { %v2088_v18 = vpack.c.bf16 %v543_v13, %v541_v12  ;;  %v537_v19 = vadd.f32 %v523_v17, %v304_v11  ;;  %v1487_v11 = vld [vmem:[%s2766_s5 + $0x2b0] sm:$0xff]  ;;  %v1490_v12 = vld [vmem:[%s2766_s5 + $0x2c8] sm:$0xff]  ;;  %v1492_v13 = vld [vmem:[%s2766_s5 + $0x2d8] sm:$0xff] }
 0x1ca   : > { %v544_v26 = vmax.f32 %v536_v16, 0.0  ;;  %v1696_v14 = vpack.c.bf16 %v1487_v11, %v1485_v10  ;;  %v1698_v16 = vpack.c.bf16 %v1492_v13, %v1490_v12  ;;  %v1489_v17 = vld [vmem:[%s2766_s5 + $0x2c0] sm:$0xff]  ;;  %v1527_v12 = vld [vmem:[%s2766_s5 + $0x3f0] sm:$0xff] }
 0x1cb   : > { %v527_v22 = vpop.f32.mrb[10].mxu1  ;;  %1659 = vmatprep.subr.bf16.mxu1 %v2088_v18  ;;  %1667 = vmatprep.subr.bf16.mxu0 %v2088_v18  ;;  %v545_v30 = vmax.f32 %v537_v19, 0.0  ;;  %v1491_v19 = vld [vmem:[%s2766_s5 + $0x2d0] sm:$0xff]  ;;  %v1521_v5 = vld [vmem:[%s2766_s5 + $0x3c0] sm:$0xff] }
 0x1cc   : > { %v538_v23 = vadd.f32 %v527_v22, %v305_v20  ;;  %v529_v24 = vpop.f32.mrb[11].mxu1  ;;  %1661 = vmatpush1.bf16.msra.mxu1 %v2086_v15  ;;  %1669 = vmatpush1.bf16.msra.mxu0 %v2086_v15  ;;  %v1494_v20 = vld [vmem:[%s2766_s5 + $0x2e8] sm:$0xff]  ;;  %v1700_v22 = vpack.c.bf16 %v1491_v19, %v1489_v17  ;;  %v1525_v11 = vld [vmem:[%s2766_s5 + $0x3e0] sm:$0xff] }
 0x1cd   : > { %v539_v25 = vadd.f32 %v529_v24, %v306_v21  ;;  %v1496_v21 = vld [vmem:[%s2766_s5 + $0x2f8] sm:$0xff]  ;;  %v1493_v24 = vld [vmem:[%s2766_s5 + $0x2e0] sm:$0xff]  ;;  %v1736_v13 = vpack.c.bf16 %v1527_v12, %v1525_v11  ;;  %v692_v12 = vld [vmem:[%s2766_s5 + $0x130] sm:$0xff] }
 0x1ce   : > { %v546_v27 = vmax.f32 %v538_v23, 0.0  ;;  %v1702_v23 = vpack.c.bf16 %v1496_v21, %v1494_v20  ;;  %v654_v17 = vld [vmem:[%s2766_s5] sm:$0xff]  ;;  %v656_v20 = vld [vmem:[%s2766_s5 + $0x10] sm:$0xff]  ;;  %v661_v21 = vld [vmem:[%s2766_s5 + $0x38] sm:$0xff] }
 0x1cf   : > { %v547_v31 = vmax.f32 %v539_v25, 0.0  ;;  %v1495_v25 = vld [vmem:[%s2766_s5 + $0x2f0] sm:$0xff]  ;;  %v690_v11 = vld [vmem:[%s2766_s5 + $0x120] sm:$0xff] }
 0x1d0   : > { %v2100_v32 = vpack.c.bf16 %v546_v27, %v544_v26  ;;  %v1498_v26 = vld [vmem:[%s2766_s5 + $0x308] sm:$0xff]  ;;  %v1500_v27 = vld [vmem:[%s2766_s5 + $0x318] sm:$0xff]  ;;  %v1704_v28 = vpack.c.bf16 %v1495_v25, %v1493_v24  ;;  %v658_v24 = vld [vmem:[%s2766_s5 + $0x20] sm:$0xff] }
 0x1d1   : > { %v2102_v33 = vpack.c.bf16 %v547_v31, %v545_v30  ;;  %v1706_v29 = vpack.c.bf16 %v1500_v27, %v1498_v26  ;;  %v1497_v30 = vld [vmem:[%s2766_s5 + $0x300] sm:$0xff]  ;;  %v1499_v31 = vld [vmem:[%s2766_s5 + $0x310] sm:$0xff]  ;;  %v663_v26 = vld [vmem:[%s2766_s5 + $0x48] sm:$0xff] }
 0x1d2   : > { %v1708_v36 = vpack.c.bf16 %v1499_v31, %v1497_v30  ;;  %v660_v25 = vld [vmem:[%s2766_s5 + $0x30] sm:$0xff]  ;;  %v665_v27 = vld [vmem:[%s2766_s5 + $0x58] sm:$0xff]  ;;  %v662_v30 = vld [vmem:[%s2766_s5 + $0x40] sm:$0xff] }
 0x1d3   : > { %1663 = vmatprep.subr.bf16.mxu1 %v2102_v33  ;;  %1671 = vmatprep.subr.bf16.mxu0 %v2102_v33  ;;  %v664_v31 = vld [vmem:[%s2766_s5 + $0x50] sm:$0xff] }
 0x1d4   : > { %1665 = vmatpush1.bf16.msra.mxu1 %v2100_v32  ;;  %1673 = vmatpush1.bf16.msra.mxu0 %v2100_v32 }
 0x1d5   : > { %1675 = vmatprep.subr.bf16.mxu1 %v1674_v34  ;;  %v1502_v34 = vld [vmem:[%s2766_s5 + $0x328] sm:$0xff] }
 0x1d6   : > { %v1710_v37 = vpack.c.bf16 %v1504_v35, %v1502_v34  ;;  %v667_v34 = vld [vmem:[%s2766_s5 + $0x68] sm:$0xff]  ;;  %v669_v35 = vld [vmem:[%s2766_s5 + $0x78] sm:$0xff] }
 0x1d7   : > { %1461 = vmatmul.mubr.msk.f32.vlgmr.msra.gmra.mrb[0].mxu0 %vm552_vm1, %v1457_v39  ;;  %1453 = vmatmul.mubr.msk.f32.vlgmr.msra.gmra.mrb[12].mxu1 %vm552_vm1, %v548_v40  ;;  %v1503_v39 = vld [vmem:[%s2766_s5 + $0x330] sm:$0xff]  ;;  %v1506_v40 = vld [vmem:[%s2766_s5 + $0x348] sm:$0xff] }
 0x1d8   : > { %1677 = vmatpush1.bf16.msra.mxu1 %v1676_v41  ;;  %805 = vmatprep.mubr.f32.mxu0 %v1907_v55  ;;  %v1508_v41 = vld [vmem:[%s2766_s5 + $0x358] sm:$0xff] }
 0x1d9   : > { %1679 = vmatprep.subr.bf16.mxu1 %v1678_v42  ;;  %635 = vmatprep.mubr.f32.mxu1 %v1907_v55  ;;  %v1712_v42 = vpack.c.bf16 %v1503_v39, %v1501_v38  ;;  %v1714_v43 = vpack.c.bf16 %v1508_v41, %v1506_v40  ;;  %v666_v38 = vld [vmem:[%s2766_s5 + $0x60] sm:$0xff]  ;;  %v668_v39 = vld [vmem:[%s2766_s5 + $0x70] sm:$0xff]  ;;  %v671_v40 = vld [vmem:[%s2766_s5 + $0x88] sm:$0xff] }
 0x1da   : > { %v673_v41 = vld [vmem:[%s2766_s5 + $0x98] sm:$0xff] }
 0x1db   : > { %1462 = vmatmul.mubr.msk.f32.gmra.mrb[2].mxu0 %vm552_vm1, %v1458_v47  ;;  %1454 = vmatmul.mubr.msk.f32.gmra.mrb[14].mxu1 %vm552_vm1, %v549_v49  ;;  %v1512_v47 = vld [vmem:[%s2766_s5 + $0x378] sm:$0xff] }
 0x1dc   : > { %1681 = vmatpush1.bf16.msra.mxu1 %v1680_v48  ;;  %811 = vmatprep.mubr.f32.mxu0 %v1907_v55  ;;  %v1716_v48 = vpack.c.bf16 %v1507_v45, %v1505_v44  ;;  %v1718_v49 = vpack.c.bf16 %v1512_v47, %v1510_v46  ;;  %v670_v44 = vld [vmem:[%s2766_s5 + $0x80] sm:$0xff]  ;;  %v672_v45 = vld [vmem:[%s2766_s5 + $0x90] sm:$0xff]  ;;  %v675_v46 = vld [vmem:[%s2766_s5 + $0xa8] sm:$0xff] }
 0x1dd   : > { %1683 = vmatprep.subr.bf16.mxu1 %v1682_v50  ;;  %641 = vmatprep.mubr.f32.mxu1 %v1907_v55  ;;  %v1509_v50 = vld [vmem:[%s2766_s5 + $0x360] sm:$0xff]  ;;  %v677_v47 = vld [vmem:[%s2766_s5 + $0xb8] sm:$0xff] }
 0x1de   : > { %v1720_v54 = vpack.c.bf16 %v1511_v51, %v1509_v50  ;;  %v674_v50 = vld [vmem:[%s2766_s5 + $0xa0] sm:$0xff]  ;;  %v676_v51 = vld [vmem:[%s2766_s5 + $0xb0] sm:$0xff] }
 0x1df   : > { %1463 = vmatmul.mubr.msk.f32.gmra.mrb[4].mxu0 %vm552_vm1, %v1459_v56  ;;  %1455 = vmatmul.mubr.msk.f32.gmra.mrb[16].mxu1 %vm552_vm1, %v550_v58  ;;  %v1722_v56 = vpack.c.bf16 %v1516_v53, %v1514_v52  ;;  %v1515_v58 = vld [vmem:[%s2766_s5 + $0x390] sm:$0xff]  ;;  %v679_v52 = vld [vmem:[%s2766_s5 + $0xc8] sm:$0xff]  ;;  %v681_v53 = vld [vmem:[%s2766_s5 + $0xd8] sm:$0xff] }
 0x1e0   : > { %1685 = vmatpush1.bf16.msra.mxu1 %v1684_v57  ;;  %817 = vmatprep.mubr.f32.mxu0 %v1907_v55  ;;  %v1513_v57 = vld [vmem:[%s2766_s5 + $0x380] sm:$0xff] }
 0x1e1   : > { %1687 = vmatprep.subr.bf16.mxu1 %v1686_v59  ;;  %647 = vmatprep.mubr.f32.mxu1 %v1907_v55  ;;  %v1518_v59 = vld [vmem:[%s2766_s5 + $0x3a8] sm:$0xff]  ;;  %v1724_v61 = vpack.c.bf16 %v1515_v58, %v1513_v57  ;;  %v678_v57 = vld [vmem:[%s2766_s5 + $0xc0] sm:$0xff]  ;;  %v680_v58 = vld [vmem:[%s2766_s5 + $0xd0] sm:$0xff] }
 0x1e2   : > { %v1726_v62 = vpack.c.bf16 %v1520_v60, %v1518_v59  ;;  %v683_v59 = vld [vmem:[%s2766_s5 + $0xe8] sm:$0xff]  ;;  %v685_v60 = vld [vmem:[%s2766_s5 + $0xf8] sm:$0xff] }
 0x1e3   : > { %1464 = vmatmul.mubr.msk.f32.gmra.mrb[6].mxu0 %vm552_vm1, %v1460_v0  ;;  %1456 = vmatmul.mubr.msk.f32.gmra.mrb[18].mxu1 %vm552_vm1, %v551_v2  ;;  %v1519_v0 = vld [vmem:[%s2766_s5 + $0x3b0] sm:$0xff]  ;;  %v1524_v2 = vld [vmem:[%s2766_s5 + $0x3d8] sm:$0xff] }
 0x1e4   : > { %1689 = vmatpush1.bf16.msra.mxu1 %v1688_v1  ;;  %v1522_v1 = vld [vmem:[%s2766_s5 + $0x3c8] sm:$0xff] }
 0x1e5   : > { %1691 = vmatprep.subr.bf16.mxu1 %v1690_v3  ;;  %v1728_v3 = vpack.c.bf16 %v1519_v0, %v1517_v63  ;;  %v1730_v4 = vpack.c.bf16 %v1524_v2, %v1522_v1  ;;  %v682_v63 = vld [vmem:[%s2766_s5 + $0xe0] sm:$0xff]  ;;  %v684_v0 = vld [vmem:[%s2766_s5 + $0xf0] sm:$0xff]  ;;  %v687_v1 = vld [vmem:[%s2766_s5 + $0x108] sm:$0xff] }
 0x1e6   : > { %v689_v2 = vld [vmem:[%s2766_s5 + $0x118] sm:$0xff] }
 0x1e8   : > { %1693 = vmatpush1.bf16.msra.mxu1 %v1692_v8  ;;  %v1528_v8 = vld [vmem:[%s2766_s5 + $0x3f8] sm:$0xff] }
 0x1e9   : > { %1695 = vmatprep.subr.bf16.mxu1 %v1694_v9  ;;  %v1732_v9 = vpack.c.bf16 %v1523_v6, %v1521_v5  ;;  %v1734_v10 = vpack.c.bf16 %v1528_v8, %v1526_v7  ;;  %v686_v5 = vld [vmem:[%s2766_s5 + $0x100] sm:$0xff]  ;;  %v688_v6 = vld [vmem:[%s2766_s5 + $0x110] sm:$0xff]  ;;  %v691_v7 = vld [vmem:[%s2766_s5 + $0x128] sm:$0xff] }
 0x1ea   : > { %v693_v8 = vld [vmem:[%s2766_s5 + $0x138] sm:$0xff] }
 0x1ec   : > { %1697 = vmatpush1.bf16.msra.mxu1 %v1696_v14  ;;  %v655_v14 = vld [vmem:[%s2766_s5 + $0x8] sm:$0xff] }
 0x1ed   : > { %1699 = vmatprep.subr.bf16.mxu1 %v1698_v16  ;;  %v657_v16 = vld [vmem:[%s2766_s5 + $0x18] sm:$0xff] }
 0x1ee   : > { %v1738_v19 = vpack.c.bf16 %v657_v16, %v655_v14  ;;  %v697_v14 = vld [vmem:[%s2766_s5 + $0x158] sm:$0xff]  ;;  %v1776_v16 = vpack.c.bf16 %v692_v12, %v690_v11  ;;  %v1545_v12 = vld [vmem:[%s2766_s5 + $0x440] sm:$0xff] }
 0x1f0   : > { %1701 = vmatpush1.bf16.msra.mxu1 %v1700_v22  ;;  %v1740_v22 = vpack.c.bf16 %v656_v20, %v654_v17  ;;  %1739 = vmatprep.subr.bf16.mxu0 %v1738_v19  ;;  %v694_v19 = vld [vmem:[%s2766_s5 + $0x140] sm:$0xff]  ;;  %v696_v20 = vld [vmem:[%s2766_s5 + $0x150] sm:$0xff] }
 0x1f1   : > { %1703 = vmatprep.subr.bf16.mxu1 %v1702_v23 }
 0x1f2   : > { %1741 = vmatpush1.bf16.msra.mxu0 %v1740_v22  ;;  %v1780_v22 = vpack.c.bf16 %v696_v20, %v694_v19 }
 0x1f4   : > { %1705 = vmatpush1.bf16.msra.mxu1 %v1704_v28  ;;  %v1744_v28 = vpack.c.bf16 %v660_v25, %v658_v24  ;;  %v698_v24 = vld [vmem:[%s2766_s5 + $0x160] sm:$0xff]  ;;  %v700_v25 = vld [vmem:[%s2766_s5 + $0x170] sm:$0xff] }
 0x1f5   : > { %1707 = vmatprep.subr.bf16.mxu1 %v1706_v29  ;;  %v1746_v29 = vpack.c.bf16 %v665_v27, %v663_v26  ;;  %v703_v26 = vld [vmem:[%s2766_s5 + $0x188] sm:$0xff]  ;;  %v705_v27 = vld [vmem:[%s2766_s5 + $0x198] sm:$0xff] }
 0x1f8   : > { %1709 = vmatpush1.bf16.msra.mxu1 %v1708_v36  ;;  %v1748_v36 = vpack.c.bf16 %v664_v31, %v662_v30  ;;  %v702_v30 = vld [vmem:[%s2766_s5 + $0x180] sm:$0xff]  ;;  %v704_v31 = vld [vmem:[%s2766_s5 + $0x190] sm:$0xff] }
 0x1f9   : > { %1711 = vmatprep.subr.bf16.mxu1 %v1710_v37  ;;  %v1750_v37 = vpack.c.bf16 %v669_v35, %v667_v34  ;;  %v707_v34 = vld [vmem:[%s2766_s5 + $0x1a8] sm:$0xff]  ;;  %v709_v35 = vld [vmem:[%s2766_s5 + $0x1b8] sm:$0xff] }
 0x1fc   : > { %1713 = vmatpush1.bf16.msra.mxu1 %v1712_v42  ;;  %v1752_v42 = vpack.c.bf16 %v668_v39, %v666_v38  ;;  %v706_v38 = vld [vmem:[%s2766_s5 + $0x1a0] sm:$0xff]  ;;  %v708_v39 = vld [vmem:[%s2766_s5 + $0x1b0] sm:$0xff] }
 0x1fd   : > { %1715 = vmatprep.subr.bf16.mxu1 %v1714_v43  ;;  %v1754_v43 = vpack.c.bf16 %v673_v41, %v671_v40  ;;  %v711_v40 = vld [vmem:[%s2766_s5 + $0x1c8] sm:$0xff]  ;;  %v713_v41 = vld [vmem:[%s2766_s5 + $0x1d8] sm:$0xff] }
 0x200   : > { %1717 = vmatpush1.bf16.msra.mxu1 %v1716_v48  ;;  %v1756_v48 = vpack.c.bf16 %v672_v45, %v670_v44  ;;  %v710_v44 = vld [vmem:[%s2766_s5 + $0x1c0] sm:$0xff]  ;;  %v712_v45 = vld [vmem:[%s2766_s5 + $0x1d0] sm:$0xff] }
 0x201   : > { %1719 = vmatprep.subr.bf16.mxu1 %v1718_v49  ;;  %v1758_v49 = vpack.c.bf16 %v677_v47, %v675_v46  ;;  %v715_v46 = vld [vmem:[%s2766_s5 + $0x1e8] sm:$0xff]  ;;  %v717_v47 = vld [vmem:[%s2766_s5 + $0x1f8] sm:$0xff] }
 0x204   : > { %1721 = vmatpush1.bf16.msra.mxu1 %v1720_v54  ;;  %v1760_v54 = vpack.c.bf16 %v676_v51, %v674_v50  ;;  %v714_v50 = vld [vmem:[%s2766_s5 + $0x1e0] sm:$0xff]  ;;  %v716_v51 = vld [vmem:[%s2766_s5 + $0x1f0] sm:$0xff] }
 0x205   : > { %1723 = vmatprep.subr.bf16.mxu1 %v1722_v56  ;;  %v1762_v56 = vpack.c.bf16 %v681_v53, %v679_v52  ;;  %v1538_v52 = vld [vmem:[%s2766_s5 + $0x408] sm:$0xff]  ;;  %v1540_v53 = vld [vmem:[%s2766_s5 + $0x418] sm:$0xff] }
 0x208   : > { %1725 = vmatpush1.bf16.msra.mxu1 %v1724_v61  ;;  %v1764_v61 = vpack.c.bf16 %v680_v58, %v678_v57  ;;  %v1537_v57 = vld [vmem:[%s2766_s5 + $0x400] sm:$0xff]  ;;  %v1539_v58 = vld [vmem:[%s2766_s5 + $0x410] sm:$0xff] }
 0x209   : > { %1727 = vmatprep.subr.bf16.mxu1 %v1726_v62  ;;  %v1766_v62 = vpack.c.bf16 %v685_v60, %v683_v59  ;;  %v1542_v59 = vld [vmem:[%s2766_s5 + $0x428] sm:$0xff]  ;;  %v1544_v60 = vld [vmem:[%s2766_s5 + $0x438] sm:$0xff] }
 0x20c   : > { %1729 = vmatpush1.bf16.msra.mxu1 %v1728_v3  ;;  %v1768_v3 = vpack.c.bf16 %v684_v0, %v682_v63  ;;  %v1812_v63 = vpack.c.bf16 %v1539_v58, %v1537_v57  ;;  %v1570_v57 = vld [vmem:[%s2766_s5 + $0x508] sm:$0xff]  ;;  %v1572_v58 = vld [vmem:[%s2766_s5 + $0x518] sm:$0xff] }
 0x20d   : > { %1731 = vmatprep.subr.bf16.mxu1 %v1730_v4  ;;  %v1770_v4 = vpack.c.bf16 %v689_v2, %v687_v1  ;;  %v1814_v2 = vpack.c.bf16 %v1544_v60, %v1542_v59  ;;  %v1532_v59 = vld [vmem:[%s2765_s4 + $0x58] sm:$0xff] }
 0x210   : > { %1733 = vmatpush1.bf16.msra.mxu1 %v1732_v9  ;;  %v1772_v9 = vpack.c.bf16 %v688_v6, %v686_v5  ;;  %v1546_v5 = vld [vmem:[%s2766_s5 + $0x448] sm:$0xff]  ;;  %v1548_v6 = vld [vmem:[%s2766_s5 + $0x458] sm:$0xff] }
 0x211   : > { %1735 = vmatprep.subr.bf16.mxu1 %v1734_v10  ;;  %v1774_v10 = vpack.c.bf16 %v693_v8, %v691_v7  ;;  %v1818_v11 = vpack.c.bf16 %v1548_v6, %v1546_v5  ;;  %v1578_v5 = vld [vmem:[%s2766_s5 + $0x548] sm:$0xff]  ;;  %v1580_v6 = vld [vmem:[%s2766_s5 + $0x558] sm:$0xff] }
 0x214   : > { %1737 = vmatpush1.bf16.msra.mxu1 %v1736_v13  ;;  %v695_v13 = vld [vmem:[%s2766_s5 + $0x148] sm:$0xff] }
 0x215   : > { %1803 = vmatprep.subr.bf16.mxu1 %v2088_v18  ;;  %v659_v18 = vld [vmem:[%s2766_s5 + $0x28] sm:$0xff]  ;;  %v1778_v17 = vpack.c.bf16 %v697_v14, %v695_v13  ;;  %v1547_v13 = vld [vmem:[%s2766_s5 + $0x450] sm:$0xff] }
 0x216   : > { %v1742_v23 = vpack.c.bf16 %v661_v21, %v659_v18  ;;  %v699_v18 = vld [vmem:[%s2766_s5 + $0x168] sm:$0xff]  ;;  %v701_v21 = vld [vmem:[%s2766_s5 + $0x178] sm:$0xff] }
 0x218   : > { %1743 = vmatprep.subr.bf16.mxu0 %v1742_v23  ;;  %v1782_v23 = vpack.c.bf16 %v701_v21, %v699_v18  ;;  %v1549_v21 = vld [vmem:[%s2766_s5 + $0x460] sm:$0xff] }
 0x219   : > { %1745 = vmatpush1.bf16.msra.mxu0 %v1744_v28  ;;  %v1784_v28 = vpack.c.bf16 %v700_v25, %v698_v24  ;;  %v1556_v24 = vld [vmem:[%s2766_s5 + $0x498] sm:$0xff] }
 0x21a   : > { %1747 = vmatprep.subr.bf16.mxu0 %v1746_v29  ;;  %v1786_v29 = vpack.c.bf16 %v705_v27, %v703_v26 }
 0x21d   : > { %1749 = vmatpush1.bf16.msra.mxu0 %v1748_v36  ;;  %v1788_v36 = vpack.c.bf16 %v704_v31, %v702_v30  ;;  %v1553_v30 = vld [vmem:[%s2766_s5 + $0x480] sm:$0xff]  ;;  %v1555_v31 = vld [vmem:[%s2766_s5 + $0x490] sm:$0xff] }
 0x21e   : > { %1751 = vmatprep.subr.bf16.mxu0 %v1750_v37  ;;  %v1790_v37 = vpack.c.bf16 %v709_v35, %v707_v34  ;;  %v1558_v35 = vld [vmem:[%s2766_s5 + $0x4a8] sm:$0xff] }
 0x221   : > { %1753 = vmatpush1.bf16.msra.mxu0 %v1752_v42  ;;  %v1792_v42 = vpack.c.bf16 %v708_v39, %v706_v38  ;;  %v1828_v38 = vpack.c.bf16 %v1555_v31, %v1553_v30  ;;  %v1593_v31 = vld [vmem:[%s2766_s5 + $0x5c0] sm:$0xff] }
 0x222   : > { %1755 = vmatprep.subr.bf16.mxu0 %v1754_v43  ;;  %v1794_v43 = vpack.c.bf16 %v713_v41, %v711_v40  ;;  %v1557_v40 = vld [vmem:[%s2766_s5 + $0x4a0] sm:$0xff]  ;;  %v1559_v41 = vld [vmem:[%s2766_s5 + $0x4b0] sm:$0xff] }
 0x225   : > { %1757 = vmatpush1.bf16.msra.mxu0 %v1756_v48  ;;  %v1796_v48 = vpack.c.bf16 %v712_v45, %v710_v44  ;;  %v1530_v44 = vld [vmem:[%s2765_s4 + $0x48] sm:$0xff]  ;;  %v1832_v45 = vpack.c.bf16 %v1559_v41, %v1557_v40  ;;  %v1599_v40 = vld [vmem:[%s2766_s5 + $0x5f0] sm:$0xff] }
 0x226   : > { %1759 = vmatprep.subr.bf16.mxu0 %v1758_v49  ;;  %v1798_v49 = vpack.c.bf16 %v717_v47, %v715_v46  ;;  %v1561_v47 = vld [vmem:[%s2766_s5 + $0x4c0] sm:$0xff] }
 0x229   : > { %1761 = vmatpush1.bf16.msra.mxu0 %v1760_v54  ;;  %v1800_v54 = vpack.c.bf16 %v716_v51, %v714_v50  ;;  %v1568_v50 = vld [vmem:[%s2766_s5 + $0x4f8] sm:$0xff]  ;;  %v1531_v51 = vld [vmem:[%s2765_s4 + $0x50] sm:$0xff] }
 0x22a   : > { %1763 = vmatprep.subr.bf16.mxu0 %v1762_v56  ;;  %v1810_v56 = vpack.c.bf16 %v1540_v53, %v1538_v52 }
 0x22d   : > { %1765 = vmatpush1.bf16.msra.mxu0 %v1764_v61 }
 0x22e   : > { %1767 = vmatprep.subr.bf16.mxu0 %v1766_v62 }
 0x231   : > { %1769 = vmatpush1.bf16.msra.mxu0 %v1768_v3  ;;  %v1541_v3 = vld [vmem:[%s2766_s5 + $0x420] sm:$0xff] }
 0x232   : > { %1771 = vmatprep.subr.bf16.mxu0 %v1770_v4  ;;  %v1543_v4 = vld [vmem:[%s2766_s5 + $0x430] sm:$0xff] }
 0x233   : > { %v1816_v8 = vpack.c.bf16 %v1543_v4, %v1541_v3  ;;  %v1573_v3 = vld [vmem:[%s2766_s5 + $0x520] sm:$0xff]  ;;  %v1575_v4 = vld [vmem:[%s2766_s5 + $0x530] sm:$0xff] }
 0x235   : > { %1773 = vmatpush1.bf16.msra.mxu0 %v1772_v9 }
 0x236   : > { %1775 = vmatprep.subr.bf16.mxu0 %v1774_v10 }
 0x239   : > { %1777 = vmatpush1.bf16.msra.mxu0 %v1776_v16 }
 0x23a   : > { %1779 = vmatprep.subr.bf16.mxu0 %v1778_v17  ;;  %v1820_v17 = vpack.c.bf16 %v1547_v13, %v1545_v12  ;;  %v1584_v12 = vld [vmem:[%s2766_s5 + $0x578] sm:$0xff] }
 0x23d   : > { %1781 = vmatpush1.bf16.msra.mxu0 %v1780_v22  ;;  %v1551_v22 = vld [vmem:[%s2766_s5 + $0x470] sm:$0xff] }
 0x23e   : > { %1783 = vmatprep.subr.bf16.mxu0 %v1782_v23  ;;  %v1824_v26 = vpack.c.bf16 %v1551_v22, %v1549_v21  ;;  %v1587_v21 = vld [vmem:[%s2766_s5 + $0x590] sm:$0xff] }
 0x241   : > { %1785 = vmatpush1.bf16.msra.mxu0 %v1784_v28 }
 0x242   : > { %1787 = vmatprep.subr.bf16.mxu0 %v1786_v29 }
 0x245   : > { %1789 = vmatpush1.bf16.msra.mxu0 %v1788_v36  ;;  %v1560_v36 = vld [vmem:[%s2766_s5 + $0x4b8] sm:$0xff] }
 0x246   : > { %1791 = vmatprep.subr.bf16.mxu0 %v1790_v37  ;;  %v1529_v37 = vld [vmem:[%s2765_s4 + $0x40] sm:$0xff]  ;;  %v1830_v39 = vpack.c.bf16 %v1560_v36, %v1558_v35  ;;  %v1598_v36 = vld [vmem:[%s2766_s5 + $0x5e8] sm:$0xff] }
 0x249   : > { %1793 = vmatpush1.bf16.msra.mxu0 %v1792_v42  ;;  %v1562_v42 = vld [vmem:[%s2766_s5 + $0x4c8] sm:$0xff] }
 0x24a   : > { %1795 = vmatprep.subr.bf16.mxu0 %v1794_v43  ;;  %v1564_v43 = vld [vmem:[%s2766_s5 + $0x4d8] sm:$0xff] }
 0x24b   : > { %v1834_v46 = vpack.c.bf16 %v1564_v43, %v1562_v42 }
 0x24d   : > { %1797 = vmatpush1.bf16.msra.mxu0 %v1796_v48  ;;  %v1563_v48 = vld [vmem:[%s2766_s5 + $0x4d0] sm:$0xff] }
 0x24e   : > { %1799 = vmatprep.subr.bf16.mxu0 %v1798_v49  ;;  %v1566_v49 = vld [vmem:[%s2766_s5 + $0x4e8] sm:$0xff]  ;;  %v1836_v52 = vpack.c.bf16 %v1563_v48, %v1561_v47 }
 0x24f   : > { %v1838_v53 = vpack.c.bf16 %v1568_v50, %v1566_v49 }
 0x251   : > { %1801 = vmatpush1.bf16.msra.mxu0 %v1800_v54  ;;  %v1565_v54 = vld [vmem:[%s2766_s5 + $0x4e0] sm:$0xff] }
 0x252   : > { %1811 = vmatprep.subr.bf16.mxu0 %v1810_v56  ;;  %v1567_v56 = vld [vmem:[%s2766_s5 + $0x4f0] sm:$0xff] }
 0x253   : > { %v1840_v60 = vpack.c.bf16 %v1567_v56, %v1565_v54 }
 0x2aa   : > { %v801_v61 = vpop.f32.mrb[0].mxu0  ;;  %v631_v62 = vpop.f32.mrb[12].mxu1 }
 0x2ab   : > { %v803_v0 = vpop.f32.mrb[1].mxu0  ;;  %v633_v1 = vpop.f32.mrb[13].mxu1 }
 0x2ac   : > { %953 = vmatprep.mubr.f32.mxu1 %v803_v0  ;;  %1042 = vmatprep.mubr.f32.mxu0 %v633_v1  ;;  %v1576_v0 = vld [vmem:[%s2766_s5 + $0x538] sm:$0xff] }
 0x2ad   : > { %954 = vmatmul.mubr.f32.vlgmr.msra.gmra.mrb[20].mxu1 %v801_v61  ;;  %1043 = vmatmul.mubr.f32.vlgmr.msra.gmra.mrb[8].mxu0 %v631_v62  ;;  %v1842_v61 = vpack.c.bf16 %v1572_v58, %v1570_v57  ;;  %v1569_v62 = vld [vmem:[%s2766_s5 + $0x500] sm:$0xff] }
 0x2ae   : > { %1805 = vmatpush1.bf16.msra.mxu1 %v2086_v15  ;;  %v807_v7 = vpop.f32.mrb[2].mxu0  ;;  %1813 = vmatpush1.bf16.msra.mxu0 %v1812_v63  ;;  %v637_v9 = vpop.f32.mrb[14].mxu1  ;;  %v1550_v15 = vld [vmem:[%s2766_s5 + $0x468] sm:$0xff]  ;;  %v1571_v63 = vld [vmem:[%s2766_s5 + $0x510] sm:$0xff] }
 0x2af   : > { %1807 = vmatprep.subr.bf16.mxu1 %v2102_v33  ;;  %v809_v10 = vpop.f32.mrb[3].mxu0  ;;  %1815 = vmatprep.subr.bf16.mxu0 %v1814_v2  ;;  %v639_v14 = vpop.f32.mrb[15].mxu1  ;;  %v1552_v33 = vld [vmem:[%s2766_s5 + $0x478] sm:$0xff]  ;;  %v1844_v1 = vpack.c.bf16 %v1571_v63, %v1569_v62  ;;  %v1335_v62 = vld [vmem:[%s2767_s6] sm:$0x3] }
 0x2b0   : > { %959 = vmatprep.mubr.f32.mxu1 %v809_v10  ;;  %1048 = vmatprep.mubr.f32.mxu0 %v639_v14  ;;  %v1822_v18 = vpack.c.bf16 %v1552_v33, %v1550_v15  ;;  %v1579_v10 = vld [vmem:[%s2766_s5 + $0x550] sm:$0xff]  ;;  %v1581_v15 = vld [vmem:[%s2766_s5 + $0x560] sm:$0xff] }
 0x2b1   : > { %960 = vmatmul.mubr.f32.gmra.mrb[22].mxu1 %v807_v7  ;;  %1049 = vmatmul.mubr.f32.gmra.mrb[10].mxu0 %v637_v9  ;;  %v1848_v7 = vpack.c.bf16 %v1575_v4, %v1573_v3  ;;  %v1577_v9 = vld [vmem:[%s2766_s5 + $0x540] sm:$0xff]  ;;  %v1583_v33 = vld [vmem:[%s2766_s5 + $0x570] sm:$0xff] }
 0x2b2   : > { %1809 = vmatpush1.bf16.msra.mxu1 %v2100_v32  ;;  %v813_v16 = vpop.f32.mrb[4].mxu0  ;;  %1817 = vmatpush1.bf16.msra.mxu0 %v1816_v8  ;;  %v643_v19 = vpop.f32.mrb[16].mxu1  ;;  %v1554_v32 = vld [vmem:[%s2766_s5 + $0x488] sm:$0xff]  ;;  %v1850_v8 = vpack.c.bf16 %v1580_v6, %v1578_v5  ;;  %v1852_v13 = vpack.c.bf16 %v1579_v10, %v1577_v9 }
 0x2b3   : > { %v815_v20 = vpop.f32.mrb[5].mxu0  ;;  %1819 = vmatprep.subr.bf16.mxu0 %v1818_v11  ;;  %v645_v23 = vpop.f32.mrb[17].mxu1  ;;  %v1826_v29 = vpack.c.bf16 %v1556_v24, %v1554_v32  ;;  %v1582_v11 = vld [vmem:[%s2766_s5 + $0x568] sm:$0xff]  ;;  %v1592_v32 = vld [vmem:[%s2766_s5 + $0x5b8] sm:$0xff] }
 0x2b4   : > { %965 = vmatprep.mubr.f32.mxu1 %v815_v20  ;;  %1054 = vmatprep.mubr.f32.mxu0 %v645_v23  ;;  %v1854_v14 = vpack.c.bf16 %v1584_v12, %v1582_v11  ;;  %v1590_v23 = vld [vmem:[%s2766_s5 + $0x5a8] sm:$0xff] }
 0x2b5   : > { %966 = vmatmul.mubr.f32.gmra.mrb[24].mxu1 %v813_v16  ;;  %1055 = vmatmul.mubr.f32.gmra.mrb[12].mxu0 %v643_v19  ;;  %v1856_v16 = vpack.c.bf16 %v1583_v33, %v1581_v15  ;;  %v1588_v19 = vld [vmem:[%s2766_s5 + $0x598] sm:$0xff]  ;;  %v1862_v24 = vpack.c.bf16 %v1592_v32, %v1590_v23 }
 0x2b6   : > { %v819_v25 = vpop.f32.mrb[6].mxu0  ;;  %1821 = vmatpush1.bf16.msra.mxu0 %v1820_v17  ;;  %v649_v27 = vpop.f32.mrb[18].mxu1  ;;  %v1586_v17 = vld [vmem:[%s2766_s5 + $0x588] sm:$0xff] }
 0x2b7   : > { %v821_v28 = vpop.f32.mrb[7].mxu0  ;;  %1823 = vmatprep.subr.bf16.mxu0 %v1822_v18  ;;  %v651_v34 = vpop.f32.mrb[19].mxu1  ;;  %v1858_v20 = vpack.c.bf16 %v1588_v19, %v1586_v17  ;;  %v1585_v18 = vld [vmem:[%s2766_s5 + $0x580] sm:$0xff] }
 0x2b8   : > { %971 = vmatprep.mubr.f32.mxu1 %v821_v28  ;;  %1060 = vmatprep.mubr.f32.mxu0 %v651_v34  ;;  %v1860_v22 = vpack.c.bf16 %v1587_v21, %v1585_v18  ;;  %v1594_v28 = vld [vmem:[%s2766_s5 + $0x5c8] sm:$0xff]  ;;  %v1595_v34 = vld [vmem:[%s2766_s5 + $0x5d0] sm:$0xff] }
 0x2b9   : > { %972 = vmatmul.mubr.f32.gmra.mrb[26].mxu1 %v819_v25  ;;  %1061 = vmatmul.mubr.f32.gmra.mrb[14].mxu0 %v649_v27  ;;  %v1589_v25 = vld [vmem:[%s2766_s5 + $0x5a0] sm:$0xff]  ;;  %v1868_v35 = vpack.c.bf16 %v1595_v34, %v1593_v31 }
 0x2ba   : > { %1148 = vmatprep.mubr.f32.mxu1 %v1907_v55  ;;  %1825 = vmatpush1.bf16.msra.mxu0 %v1824_v26  ;;  %v1591_v26 = vld [vmem:[%s2766_s5 + $0x5b0] sm:$0xff] }
 0x2bb   : > { %1827 = vmatprep.subr.bf16.mxu0 %v1826_v29  ;;  %v1864_v27 = vpack.c.bf16 %v1591_v26, %v1589_v25  ;;  %v1596_v29 = vld [vmem:[%s2766_s5 + $0x5d8] sm:$0xff] }
 0x2bc   : > { %v1866_v30 = vpack.c.bf16 %v1596_v29, %v1594_v28 }
 0x2bd   : > { %1533 = vmatmul.mubr.msk.f32.vlgmr.msra.gmra.mrb[28].mxu1 %vm552_vm1, %v1529_v37  ;;  %v1600_v37 = vld [vmem:[%s2766_s5 + $0x5f8] sm:$0xff] }
 0x2be   : > { %1154 = vmatprep.mubr.f32.mxu1 %v1907_v55  ;;  %1829 = vmatpush1.bf16.msra.mxu0 %v1828_v38  ;;  %v1870_v38 = vpack.c.bf16 %v1600_v37, %v1598_v36 }
 0x2bf   : > { %1831 = vmatprep.subr.bf16.mxu0 %v1830_v39  ;;  %v1597_v39 = vld [vmem:[%s2766_s5 + $0x5e0] sm:$0xff] }
 0x2c0   : > { %v1872_v41 = vpack.c.bf16 %v1599_v40, %v1597_v39 }
 0x2c1   : > { %1534 = vmatmul.mubr.msk.f32.gmra.mrb[30].mxu1 %vm552_vm1, %v1530_v44 }
 0x2c2   : > { %1160 = vmatprep.mubr.f32.mxu1 %v1907_v55  ;;  %1833 = vmatpush1.bf16.msra.mxu0 %v1832_v45 }
 0x2c3   : > { %1835 = vmatprep.subr.bf16.mxu0 %v1834_v46 }
 0x2c5   : > { %1535 = vmatmul.mubr.msk.f32.gmra.mrb[32].mxu1 %vm552_vm1, %v1531_v51 }
 0x2c6   : > { %1166 = vmatprep.mubr.f32.mxu1 %v1907_v55  ;;  %1837 = vmatpush1.bf16.msra.mxu0 %v1836_v52  ;;  %v1574_v55 = vld [vmem:[%s2766_s5 + $0x528] sm:$0xff] }
 0x2c7   : > { %1839 = vmatprep.subr.bf16.mxu0 %v1838_v53  ;;  %v1846_v2 = vpack.c.bf16 %v1576_v0, %v1574_v55 }
 0x2c9   : > { %1536 = vmatmul.mubr.msk.f32.gmra.mrb[34].mxu1 %vm552_vm1, %v1532_v59  ;;  %v1337_v59 = vlaneseq }
 0x2ca   : > { %1841 = vmatpush1.bf16.msra.mxu0 %v1840_v60 }
 0x2cb   : > { %1843 = vmatprep.subr.bf16.mxu0 %v1842_v61  ;;  %v1338_v60 = vshrl.u32 %v1337_v59, 7 }
 0x2cd   : > { %v1339_v61 = vsub.s32 0, %v1338_v60  ;;  %v1343_v63 = vsub.s32 1, %v1338_v60 }
 0x2ce   : > { %1845 = vmatpush1.bf16.msra.mxu0 %v1844_v1 }
 0x2cf   : > { %1847 = vmatprep.subr.bf16.mxu0 %v1846_v2  ;;  %v1340_v55 = vrot.slane %v1335_v62, %v1339_v61  ;;  %v1344_v1 = vrot.slane %v1335_v62, %v1343_v63 }
 0x2d2   : > { %1849 = vmatpush1.bf16.msra.mxu0 %v1848_v7 }
 0x2d3   : > { %1851 = vmatprep.subr.bf16.mxu0 %v1850_v8 }
 0x2d6   : > { %1853 = vmatpush1.bf16.msra.mxu0 %v1852_v13 }
 0x2d7   : > { %1855 = vmatprep.subr.bf16.mxu0 %v1854_v14 }
 0x2da   : > { %1857 = vmatpush1.bf16.msra.mxu0 %v1856_v16 }
 0x2db   : > { %1859 = vmatprep.subr.bf16.mxu0 %v1858_v20 }
 0x2de   : > { %1861 = vmatpush1.bf16.msra.mxu0 %v1860_v22 }
 0x2df   : > { %1863 = vmatprep.subr.bf16.mxu0 %v1862_v24 }
 0x2e2   : > { %1865 = vmatpush1.bf16.msra.mxu0 %v1864_v27 }
 0x2e3   : > { %1867 = vmatprep.subr.bf16.mxu0 %v1866_v30 }
 0x2e6   : > { %1869 = vmatpush1.bf16.msra.mxu0 %v1868_v35 }
 0x2e7   : > { %1871 = vmatprep.subr.bf16.mxu0 %v1870_v38 }
 0x2ea   : > { %1873 = vmatpush1.bf16.msra.mxu0 %v1872_v41 }
 0x380   : > { %v955_v42 = vpop.f32.mrb[20].mxu1 }
 0x381   : > { %v957_v43 = vpop.f32.mrb[21].mxu1 }
 0x384   : > { %v961_v44 = vpop.f32.mrb[22].mxu1 }
 0x385   : > { %v963_v45 = vpop.f32.mrb[23].mxu1 }
 0x388   : > { %v967_v46 = vpop.f32.mrb[24].mxu1 }
 0x389   : > { %v969_v47 = vpop.f32.mrb[25].mxu1 }
 0x38c   : > { %v973_v48 = vpop.f32.mrb[26].mxu1 }
 0x38d   : > { %v975_v49 = vpop.f32.mrb[27].mxu1 }
 0x390   : > { %v1150_v50 = vpop.f32.mrb[28].mxu1 }
 0x391   : > { %v1152_v51 = vpop.f32.mrb[29].mxu1 }
 0x392   : > { %1302 = vmatprep.mubr.f32.mxu0 %v1152_v51 }
 0x393   : > { %1303 = vmatmul.mubr.f32.vlgmr.msra.gmra.mrb[8].mxu0 %v1150_v50 }
 0x394   : > { %v1156_v52 = vpop.f32.mrb[30].mxu1 }
 0x395   : > { %v1158_v53 = vpop.f32.mrb[31].mxu1 }
 0x396   : > { %1308 = vmatprep.mubr.f32.mxu0 %v1158_v53 }
 0x397   : > { %1309 = vmatmul.mubr.f32.gmra.mrb[10].mxu0 %v1156_v52 }
 0x398   : > { %v1162_v54 = vpop.f32.mrb[32].mxu1 }
 0x399   : > { %v1164_v56 = vpop.f32.mrb[33].mxu1 }
 0x39a   : > { %1314 = vmatprep.mubr.f32.mxu0 %v1164_v56 }
 0x39b   : > { %1315 = vmatmul.mubr.f32.gmra.mrb[12].mxu0 %v1162_v54 }
 0x39c   : > { %v1168_v57 = vpop.f32.mrb[34].mxu1 }
 0x39d   : > { %v1170_v58 = vpop.f32.mrb[35].mxu1 }
 0x39e   : > { %1320 = vmatprep.mubr.f32.mxu0 %v1170_v58 }
 0x39f   : > { %1321 = vmatmul.mubr.f32.gmra.mrb[14].mxu0 %v1168_v57 }
 0x466   : > { %v1304_v0 = vpop.f32.mrb[8].mxu0 }
 0x467   : > { %v1874_v2 = vadd.f32 %v1304_v0, %v955_v42  ;;  %v1306_v3 = vpop.f32.mrb[9].mxu0 }
 0x468   : > { %v1875_v4 = vadd.f32 %v1306_v3, %v957_v43 }
 0x469   : > { %v1347_v5 = vadd.f32 %v1874_v2, %v1340_v55 }
 0x46a   : > { %v1348_v6 = vadd.f32 %v1875_v4, %v1344_v1  ;;  %v1310_v7 = vpop.f32.mrb[10].mxu0 }
 0x46b   : > { %v1355_v8 = vmax.f32 %v1347_v5, 0.0  ;;  %v1876_v9 = vadd.f32 %v1310_v7, %v961_v44  ;;  %v1312_v10 = vpop.f32.mrb[11].mxu0 }
 0x46c   : > { %v1356_v11 = vmax.f32 %v1348_v6, 0.0  ;;  %v1877_v12 = vadd.f32 %v1312_v10, %v963_v45 }
 0x46d   : > { %1363 = vst [vmem:[%s2748_s11] sm:$0xff] %v1355_v8  ;;  %v1349_v13 = vadd.f32 %v1876_v9, %v1340_v55 }
 0x46e   : > { %1364 = vst [vmem:[%s2748_s11 + $0x8] sm:$0xff] %v1356_v11  ;;  %v1350_v14 = vadd.f32 %v1877_v12, %v1344_v1  ;;  %v1316_v15 = vpop.f32.mrb[12].mxu0 }
 0x46f   : > { %v1357_v33 = vmax.f32 %v1349_v13, 0.0  ;;  %v1878_v16 = vadd.f32 %v1316_v15, %v967_v46  ;;  %v1318_v17 = vpop.f32.mrb[13].mxu0 }
 0x470   : > { %v1358_v19 = vmax.f32 %v1350_v14, 0.0  ;;  %v1879_v20 = vadd.f32 %v1318_v17, %v969_v47 }
 0x471   : > { %1365 = vst [vmem:[%s2748_s11 + $0x10] sm:$0xff] %v1357_v33  ;;  %v1351_v18 = vadd.f32 %v1878_v16, %v1340_v55 }
 0x472   : > { %1366 = vst [vmem:[%s2748_s11 + $0x18] sm:$0xff] %v1358_v19  ;;  %v1352_v21 = vadd.f32 %v1879_v20, %v1344_v1  ;;  %v1322_v22 = vpop.f32.mrb[14].mxu0 }
 0x473   : > { %v1359_v23 = vmax.f32 %v1351_v18, 0.0  ;;  %v1880_v32 = vadd.f32 %v1322_v22, %v973_v48  ;;  %v1324_v24 = vpop.f32.mrb[15].mxu0 }
 0x474   : > { %v1360_v25 = vmax.f32 %v1352_v21, 0.0  ;;  %v1881_v26 = vadd.f32 %v1324_v24, %v975_v49 }
 0x475   : > { %1367 = vst [vmem:[%s2748_s11 + $0x20] sm:$0xff] %v1359_v23  ;;  %v1353_v27 = vadd.f32 %v1880_v32, %v1340_v55 }
 0x476   : > { %1368 = vst [vmem:[%s2748_s11 + $0x28] sm:$0xff] %v1360_v25  ;;  %v1354_v28 = vadd.f32 %v1881_v26, %v1344_v1 }
 0x477   : > { %v1361_v29 = vmax.f32 %v1353_v27, 0.0 }
 0x478   : > { %v1362_v30 = vmax.f32 %v1354_v28, 0.0 }
 0x479   : > { %1369 = vst [vmem:[%s2748_s11 + $0x30] sm:$0xff] %v1361_v29 }
 0x47a   : > { %1370 = vst [vmem:[%s2748_s11 + $0x38] sm:$0xff] %v1362_v30 }
 0x47b PF: > { %s17_s24 = sadd.s32 1, %s1905_s24  }
 0x47c   : > { %p14_p4 = scmp.ge.s32.totalorder %s17_s24, 4  }
 0x47e   :  { %16 = sbr.rel (!%p14_p4) target bundleno = 1 (0x1), region = 85 }

</bundles_post_ra>
